<compile_context>
chip_gen: v6e
topology: v6e:2x2x1
jax: 0.10.0
libtpu: 0.0.40
codegen_flags: <defaults>
</compile_context>

<pallas_src>
import functools

import jax
import jax.numpy as jnp
from jax.experimental import pallas as pl
from jax.experimental.pallas import tpu as pltpu

_LANE = 128
_SUBLANE = 8

# Below this many elements, kernel-launch + a single sub-us grid step loses to
# XLA's fused elementwise path.
_MIN_PALLAS_ELEMS = 64 * 1024

# Force >=2 grid steps above ~1 MiB, >=4 above ~4 MiB (pipelining / megacore).
_MIN_PIPELINE_BYTES_2 = 1 * 1024 * 1024
_MIN_PIPELINE_BYTES_4 = 4 * 1024 * 1024

# Target per-buffer block size.
_TARGET_BLOCK_BYTES = 8 * 1024 * 1024


@functools.lru_cache(maxsize=None)
def _vmem_physical_bytes() -> int:
    """Physical VMEM per TensorCore (trace-time query, safe fallback)."""
    try:
        cap = int(pltpu.get_tpu_info().vmem_capacity_bytes)
        if cap > 0:
            return cap
    except Exception:
        pass
    return 128 * 1024 * 1024  # v5e/v6e default


def _block_and_limit_bytes() -> tuple[int, int]:
    phys = _vmem_physical_bytes()
    # Footprint ~= 4 * block (in+out, each double-buffered); keep it under
    # ~half of physical VMEM.  v5e/v6e (128 MiB) -> 8 MiB blocks; v7x (64 MiB)
    # -> 8 MiB blocks with 32 MiB footprint vs a 48 MiB scoped limit.
    block = min(_TARGET_BLOCK_BYTES, (phys // 2) // 4)
    block = max(block, 512 * 1024)
    # Explicit scoped-VMEM limit: 64 MiB on v5e/v6e, 48 MiB on v7x.
    limit = min(64 * 1024 * 1024, (phys * 3) // 4)
    return block, limit


def _round_down_multiple(x: int, m: int) -> int:
    return max(m, (x // m) * m)


def _min_steps_for(total_bytes: int) -> int:
    if total_bytes >= _MIN_PIPELINE_BYTES_4:
        return 4
    if total_bytes > _MIN_PIPELINE_BYTES_2:
        return 2
    return 1


def _swish_kernel(x_ref, o_ref):
    x = x_ref[...]
    # One-shot upcast so exp runs on the f32 EUP path (v5e has no bf16
    # VPU/EUP); no-op for f32 inputs.  HBM-bound, so the casts are free.
    xf = x.astype(jnp.float32)
    o_ref[...] = (xf * jax.nn.sigmoid(xf)).astype(o_ref.dtype)


def swish(x: jax.Array) -> jax.Array:
    """Elementwise x * sigmoid(x); Pallas TPU kernel for large tensors."""
    orig_shape = x.shape
    n = x.size
    itemsize = jnp.dtype(x.dtype).itemsize
    total_bytes = n * itemsize

    # Tiny activations: let XLA fuse it (Pallas launch overhead dominates).
    if n < _MIN_PALLAS_ELEMS:
        return x * jax.nn.sigmoid(x)

    block_bytes, vmem_limit = _block_and_limit_bytes()
    block_elems = max(_SUBLANE * _LANE, block_bytes // itemsize)
    min_steps = _min_steps_for(total_bytes)
    compiler_params = pltpu.CompilerParams(
        dimension_semantics=("parallel",),
        vmem_limit_bytes=vmem_limit,
    )

    # ---- Preferred path: lane-dense (rows, width) view with width | n ------
    candidates = (32 * _LANE, 16 * _LANE, 8 * _LANE, 4 * _LANE, 2 * _LANE, _LANE)
    divisible = [c for c in candidates if n % c == 0]
    width = 0
    if divisible:
        wide_enough = [c for c in divisible if n // c >= _SUBLANE]
        width = wide_enough[0] if wide_enough else divisible[0]

    if width:
        rows = n // width
        tr = min(rows, _round_down_multiple(block_elems // width, _SUBLANE))
        # Guarantee >= min_steps grid steps so the pipeline (and v7x's two
        # TensorCores via the "parallel" axis) actually engage.
        if min_steps > 1 and pl.cdiv(rows, tr) < min_steps:
            tr = min(tr, _round_down_multiple(rows // min_steps, _SUBLANE))
        # Prefer a nearby divisor of rows (multiple of 8, within ~25%) so the
        # last grid step is not a masked partial block.
        if rows % tr != 0:
            for d in range(tr, max(_SUBLANE, (3 * tr) // 4) - 1, -_SUBLANE):
                if rows % d == 0:
                    tr = d
                    break
        x2d = x.reshape(rows, width)
        out2d = pl.pallas_call(
            _swish_kernel,
            out_shape=jax.ShapeDtypeStruct((rows, width), x.dtype),
            grid=(pl.cdiv(rows, tr),),
            in_specs=[pl.BlockSpec((tr, width), lambda i: (i, 0))],
            out_specs=pl.BlockSpec((tr, width), lambda i: (i, 0)),
            compiler_params=compiler_params,
        )(x2d)
        return out2d.reshape(orig_shape)

    # ---- n % 8 == 0 but n % 128 != 0: (8, n//8) view, lane-dim tiled -------
    if n % _SUBLANE == 0:
        cols = n // _SUBLANE
        blk_w = min(cols, _round_down_multiple(block_elems // _SUBLANE, _LANE))
        if min_steps > 1 and pl.cdiv(cols, blk_w) < min_steps:
            blk_w = min(blk_w, _round_down_multiple(cols // min_steps, _LANE))
        x2d = x.reshape(_SUBLANE, cols)
        out2d = pl.pallas_call(
            _swish_kernel,
            out_shape=jax.ShapeDtypeStruct((_SUBLANE, cols), x.dtype),
            grid=(pl.cdiv(cols, blk_w),),
            in_specs=[pl.BlockSpec((_SUBLANE, blk_w), lambda i: (0, i))],
            out_specs=pl.BlockSpec((_SUBLANE, blk_w), lambda i: (0, i)),
            compiler_params=compiler_params,
        )(x2d)
        return out2d.reshape(orig_shape)

    # Truly ragged sizes: a 1-D Pallas block wastes 7/8 of every vreg's
    # sublanes; plain XLA is already at the HBM roofline for this case.
    return x * jax.nn.sigmoid(x)


if __name__ == "__main__":
    key = jax.random.PRNGKey(0)
    k1, k2, k3, k4 = jax.random.split(key, 4)

    # 1) Module-sized demo (NCHW: batch=2, channels=4, 16x16) -> below the
    #    Pallas cutoff, exercises the small-tensor plain-JAX path.
    x_small = jax.random.normal(k1, (2, 4, 16, 16), dtype=jnp.float32)
    y_small = swish(x_small)

    # 2) Larger f32 activation -> lane-dense 2-D Pallas path, >=2 grid steps.
    x_big = jax.random.normal(k2, (2, 8, 256, 128), dtype=jnp.float32)
    y_big = swish(x_big)

    # 3) bf16 activation (f32 compute in-kernel, looser tolerance).
    x_bf16 = jax.random.normal(k3, (2, 8, 256, 256), dtype=jnp.bfloat16)
    y_bf16 = swish(x_bf16)

    # 4) Divisible by 8 but not by 128 -> (8, n//8) Pallas path.
    x_rag = jax.random.normal(k4, (8, 8200), dtype=jnp.float32)
    y_rag = swish(x_rag)

    jax.block_until_ready((y_small, y_big, y_bf16, y_rag))

    def _ref(v):
        vf = v.astype(jnp.float32)
        return (vf * jax.nn.sigmoid(vf)).astype(v.dtype)

    for got, inp, tol in (
        (y_small, x_small, 1e-6),
        (y_big, x_big, 1e-6),
        (y_bf16, x_bf16, 2e-2),
        (y_rag, x_rag, 1e-6),
    ):
        assert got.shape == inp.shape and got.dtype == inp.dtype
        assert jnp.allclose(
            got.astype(jnp.float32), _ref(inp).astype(jnp.float32),
            atol=tol, rtol=tol,
        )

    print("KERNEL_OK")
</pallas_src>

<mosaic_0001>
module attributes {stable_mosaic.version = 11 : i64} {
  func.func @_swish_kernel(%arg0: i32, %arg1: memref<64x4096xf32, #tpu.memory_space<vmem>>, %arg2: memref<64x4096xf32, #tpu.memory_space<vmem>>) attributes {dimension_semantics = [#tpu.dimension_semantics<parallel>], iteration_bounds = array<i64: 2>, scalar_prefetch = 0 : i64, scratch_operands = 0 : i64, tpu.core_type = #tpu.core_type<tc>, window_params = [{transform_indices = @transform_0, window_bounds = array<i64: 64, 4096>}, {transform_indices = @transform_1, window_bounds = array<i64: 64, 4096>}]} {
    %c0 = arith.constant 0 : index
    %c0_0 = arith.constant 0 : index
    %0 = vector.load %arg1[%c0, %c0_0] : memref<64x4096xf32, #tpu.memory_space<vmem>>, vector<64x4096xf32>
    %1 = arith.negf %0 : vector<64x4096xf32>
    %2 = math.exp %1 : vector<64x4096xf32>
    %cst = arith.constant 1.000000e+00 : f32
    %3 = vector.broadcast %cst : f32 to vector<64x4096xf32>
    %4 = arith.addf %3, %2 : vector<64x4096xf32>
    %5 = arith.divf %3, %4 : vector<64x4096xf32>
    %6 = arith.mulf %0, %5 : vector<64x4096xf32>
    %c0_1 = arith.constant 0 : index
    %c0_2 = arith.constant 0 : index
    %7 = vector.load %arg2[%c0_1, %c0_2] : memref<64x4096xf32, #tpu.memory_space<vmem>>, vector<64x4096xf32>
    tpu.vector_store %arg2[%c0_1, %c0_2], %6 {strides = array<i32>} : memref<64x4096xf32, #tpu.memory_space<vmem>>, vector<64x4096xf32>,
    return
  }
  func.func @transform_0(%arg0: i32) -> (i32, i32) {
    %c0_i32 = arith.constant 0 : i32
    %c0_i32_0 = arith.constant 0 : i32
    return %arg0, %c0_i32 : i32, i32
  }
  func.func @transform_1(%arg0: i32) -> (i32, i32) {
    %c0_i32 = arith.constant 0 : i32
    %c0_i32_0 = arith.constant 0 : i32
    return %arg0, %c0_i32 : i32, i32
  }
}

</mosaic_0001>

<bundles_post_ra>
// kernel: tpu_custom_call.1
= control target key start
LH: loop header
LB: loop body
LE: loop exit
PB: predicated region body
PF: predicated region fallthrough
CT: control target
= control target key end

     0   :  { %6 = vsyncpa [#allocation3], 0  ;;  %s5689_s0 = inlined_call_operand.hbm [shape: f32[128,4096], index: 0, kind: input, shape index: {}]   ;;  %s5690_s1 = inlined_call_operand.hbm [shape: f32[128,4096], index: 1, kind: output, shape index: {}]  }
   0x1   :  { %8 = vsyncpa [#allocation3 + $0x1], 0 }
   0x2   :  { %9 = vsyncpa [#allocation4], 0 }
   0x3   :  { %11 = vsyncpa [#allocation4 + $0x1], 0  ;;  %s3990_s6 = smov 0   ;;  %s3992_s7 = smov 0  }
   0x4   :  { %s3994_s8 = smov 0   ;;  %s3996_s9 = smov 0  }
   0x5 LB: > { %s4011_s10 = sadd.s32 4294967295, %s3972_s9   ;;  %s2530_s11 = sadd.s32 4294967294, %s3972_s9   ;;  %s3972_s9 = sphi %s3996_s9, %s5705_s9   ;;  %s3968_s8 = sphi %s3994_s8, %s5704_s8   ;;  %s3964_s7 = sphi %s3992_s7, %s5703_s7   ;;  %s3960_s6 = sphi %s3990_s6, %s5702_s6  }
   0x6   : > { %s4015_s12 = sadd.s32 1, %s3972_s9   ;;  %s24_s13 = sadd.s32 1, %s3968_s8 }
   0x7   : > { %s21_s14 = ssub.s32 %s3972_s9, %s4015_s12  ;;  %p31_p0 = scmp.ne.s32.totalorder %s3968_s8, %s3964_s7 }
   0x8   : > { %p22_p1 = scmp.eq.s32.totalorder %s21_s14, 0  ;;  %p32_p2 = scmp.eq.s32.totalorder %s3972_s9, 0 }
   0x9   : > { %p37_p3 = scmp.ne.s32.totalorder %s3964_s7, %s3960_s6  ;;  %p38_p4 = scmp.eq.s32.totalorder %s4011_s10, 0 }
   0xa   : > { %s4027_s15 = scalar_select %p22_p1, %s3968_s8, %s24_s13  }
   0xb   : > { %p4029_p5 = por %p32_p2, %p31_p0  ;;  %p4033_p6 = por %p38_p4, %p37_p3 }
   0xc   : > { %p61_p7 = scmp.eq.s32.totalorder %s4011_s10, 1  ;;  %p67_p8 = scmp.eq.s32.totalorder %s2530_s11, 1 }
   0xd   : > { %s5694_s17 = scalar_select %p4033_p6, 1, 0 }
   0xe   : > { %p2818_p10 = scmp.lt.s32.totalorder %s3972_s9, 2  ;;  %p4040_p11 = por %p61_p7, %p31_p0 }
   0xf   : > { %p4044_p12 = por %p67_p8, %p37_p3  ;;  %s87_s20 = sand.u32 1, %s3968_s8  }
  0x10   : > { %s5695_s18 = scalar_select %p4040_p11, 1, 0 }
  0x11   : > { %s5696_s19 = scalar_select %p4044_p12, 1, 0 }
  0x12   : > { %s2803_s21 = sshll.u32 %s3972_s9, 15  ;;  %s2533_s22 = sshll.u32 %s87_s20, 11 }
  0x13   : > { %s4053_s25 = scalar_lea.hbm %s5689_s0, %s2803_s21  ;;  %s91_s26 = scalar_lea.vmem [#allocation2], %s2533_s22 }
  0x14   : > { %s99_s27 = sshll.u32 %s91_s26, 4  ;;  %p4057_p13 = pnand %p2818_p10, %p4029_p5  ;;  %s4061_s27 = int_to_ptr.vmem [resolvable:$true] %s99_s27 }
  0x15   : > { %s4063_s29 = scalar_lea.sflag [#allocation3], %s87_s20  ;;  %s3880_s30 = scalar_lea.hbm %s4053_s25, 32768 }
  0x16   : > { %p3881_p0 = scmp.ne.s32.totalorder %s4053_s25, %s3880_s30  ;;  %p3882_p1 = pneg %p4057_p13 }
  0x17   : > { %s3885_s4 = scalar_lea.hbm %s5689_s0, 65536  ;;  %p3886_p4 = scmp.lt.s32.totalorder %s4053_s25, %s5689_s0 }
  0x18   : > { %p3883_p2 = pnand %p3882_p1, %p3881_p0  ;;  %p3887_p5 = scmp.lt.s32.totalorder %s3885_s4, %s3880_s30 }
  0x1a   : > { %p3884_p3 = pneg %p3883_p2  ;;  %p3888_p7 = por %p3887_p5, %p3886_p4 }
  0x1c   : > { %p3889_p8 = pnand %p3888_p7, %p3884_p3 }
  0x1e   : > { %3892 = shalt.err (!%p3889_p8)
}
  0x1f   : > { %s3893_s13 = scalar_lea.vmem %s4061_s27, 32768  ;;  %s3974_s14 = smov [#allocation2]  }
  0x20   : > { %p3894_p10 = scmp.ne.s32.totalorder %s4061_s27, %s3893_s13  ;;  %s3898_s16 = sshll.u32 %s3974_s14, 4  ;;  %s3899_s16 = int_to_ptr.vmem [resolvable:$false] %s3898_s16 }
  0x21   : > { %s3900_s20 = scalar_lea.vmem %s3899_s16, 65536  ;;  %p3901_p2 = scmp.lt.s32.totalorder %s4061_s27, %s3899_s16 }
  0x22   : > { %p3896_p9 = pnand %p3894_p10, %p3882_p1  ;;  %p3902_p12 = scmp.lt.s32.totalorder %s3900_s20, %s3893_s13 }
  0x24   : > { %p3897_p0 = pneg %p3896_p9  ;;  %p3903_p11 = por %p3902_p12, %p3901_p2 }
  0x26   : > { %p3904_p6 = pnand %p3903_p11, %p3897_p0 }
  0x28   : > { %3907 = shalt.err (!%p3904_p6)
}
  0x29   : > { %s3975_s21 = smov 4096   ;;  %s3976_s22 = smov 256  }
  0x2a   : > { %2813 = dma.hbm_to_vmem [thread:$0]  (!%p4057_p13), %s4053_s25, 32768, %s4061_s27, %s4063_s29, %s3975_s21, %s3975_s21, %s3976_s22  }
  0x2b   : > { %p2537_p9 = scmp.ge.s32.totalorder %s3972_s9, 1  ;;  %p107_p1 = scmp.lt.s32.totalorder %s3972_s9, 3 }
  0x2d   : > { %p108_p3 = pnand %p2537_p9, %p107_p1 }
  0x2e   : > { %s4087_s23 = sand.u32 (!%p108_p3), 1, %s3964_s7   ;;  %p5698_p6 = scmp.ne.s32.totalorder (!%p108_p3), %s5694_s17, 0 }
  0x2f   : > { %111 = sbr.rel (%p108_p3) target bundleno = 597 (0x255), region = 24  ;;  %s2538_s24 = sshll.u32 (!%p108_p3), %s4087_s23, 11 }
  0x30   : > { %s114_s26 = scalar_lea.sflag (!%p108_p3), [#allocation3], %s4087_s23  ;;  %s4093_s30 = scalar_lea.vmem (!%p108_p3), [#allocation2], %s2538_s24 }
  0x34   : > { %3951 = dma.done.wait (%p5698_p6), %s114_s26, 32768  }
  0x35   : > { %3953 = vsyncadd (%p5698_p6), %s114_s26, 4294934528  ;;  %v4100_v0 = vld [vmem:[%s4093_s30] sm:$0xff]  ;;  %v4103_v1 = vld [vmem:[%s4093_s30 + $0x8] sm:$0xff]  ;;  %s4192_s17 = scalar_lea.vmem [#allocation5], %s2538_s24  ;;  %s2805_s25 = sshll.u32 %s4011_s10, 15 }
  0x36   : > { %v4106_v2 = vld [vmem:[%s4093_s30 + $0x10] sm:$0xff]  ;;  %v2540_v3 = vmul.f32 -1.442695, %v4100_v0  ;;  %v2541_v4 = vmul.f32 -1.442695, %v4103_v1  ;;  %v4112_v6 = vld [vmem:[%s4093_s30 + $0x18] sm:$0xff]  ;;  %s5640_s10 = scalar_lea.hbm %s5690_s1, %s2805_s25 }
  0x37   : > { %v2542_v5 = vmul.f32 -1.442695, %v4106_v2  ;;  %v4115_v7 = vld [vmem:[%s4093_s30 + $0x20] sm:$0xff]  ;;  %v4118_v8 = vld [vmem:[%s4093_s30 + $0x28] sm:$0xff]  ;;  %v2543_v9 = vmul.f32 -1.442695, %v4112_v6 }
  0x38   : > { %2856 = vpow2.f32 %v2540_v3  ;;  %v2544_v10 = vmul.f32 -1.442695, %v4115_v7  ;;  %v2545_v11 = vmul.f32 -1.442695, %v4118_v8  ;;  %v4124_v12 = vld [vmem:[%s4093_s30 + $0x30] sm:$0xff]  ;;  %v4127_v13 = vld [vmem:[%s4093_s30 + $0x38] sm:$0xff] }
  0x39   : > { %2858 = vpow2.f32 %v2541_v4  ;;  %v4130_v14 = vld [vmem:[%s4093_s30 + $0x40] sm:$0xff]  ;;  %v2546_v15 = vmul.f32 -1.442695, %v4124_v12  ;;  %v2547_v16 = vmul.f32 -1.442695, %v4127_v13  ;;  %v4135_v17 = vld [vmem:[%s4093_s30 + $0x48] sm:$0xff] }
  0x3a   : > { %2860 = vpow2.f32 %v2542_v5  ;;  %v4138_v18 = vld [vmem:[%s4093_s30 + $0x50] sm:$0xff]  ;;  %v2548_v19 = vmul.f32 -1.442695, %v4130_v14  ;;  %v4142_v20 = vld [vmem:[%s4093_s30 + $0x58] sm:$0xff]  ;;  %v2549_v21 = vmul.f32 -1.442695, %v4135_v17 }
  0x3b   : > { %2862 = vpow2.f32 %v2543_v9  ;;  %v4146_v22 = vld [vmem:[%s4093_s30 + $0x60] sm:$0xff]  ;;  %v2550_v23 = vmul.f32 -1.442695, %v4138_v18  ;;  %v4150_v24 = vld [vmem:[%s4093_s30 + $0x68] sm:$0xff]  ;;  %v2551_v25 = vmul.f32 -1.442695, %v4142_v20 }
  0x3c   : > { %2864 = vpow2.f32 %v2544_v10  ;;  %v4154_v26 = vld [vmem:[%s4093_s30 + $0x70] sm:$0xff]  ;;  %v2552_v27 = vmul.f32 -1.442695, %v4146_v22  ;;  %v4158_v28 = vld [vmem:[%s4093_s30 + $0x78] sm:$0xff]  ;;  %v2553_v29 = vmul.f32 -1.442695, %v4150_v24 }
  0x3d   : > { %2866 = vpow2.f32 %v2545_v11  ;;  %v2554_v30 = vmul.f32 -1.442695, %v4154_v26  ;;  %v2555_v31 = vmul.f32 -1.442695, %v4158_v28  ;;  %v4164_v57 = vld [vmem:[%s4093_s30 + $0x80] sm:$0xff]  ;;  %v4167_v60 = vld [vmem:[%s4093_s30 + $0x88] sm:$0xff] }
  0x3e   : > { %2868 = vpow2.f32 %v2546_v15  ;;  %v4170_v63 = vld [vmem:[%s4093_s30 + $0x90] sm:$0xff]  ;;  %v2556_v5 = vmul.f32 -1.442695, %v4164_v57  ;;  %v4174_v9 = vld [vmem:[%s4093_s30 + $0x98] sm:$0xff]  ;;  %v2557_v15 = vmul.f32 -1.442695, %v4167_v60 }
  0x3f   : > { %2870 = vpow2.f32 %v2547_v16  ;;  %v4178_v16 = vld [vmem:[%s4093_s30 + $0xa0] sm:$0xff]  ;;  %s2457_s27 = sshll.u32 %s4192_s17, 4  ;;  %s2443_s2 = scalar_lea.sflag [#allocation4], %s4087_s23  ;;  %s5642_s27 = int_to_ptr.vmem [resolvable:$true] %s2457_s27 }
  0x40   : > { %2872 = vpow2.f32 %v2548_v19  ;;  %s3908_s3 = scalar_lea.vmem %s5642_s27, 32768  ;;  %p5699_p12 = scmp.ne.s32.totalorder %s5695_s18, 0 }
  0x41   : > { %2874 = vpow2.f32 %v2549_v21  ;;  %p3909_p11 = scmp.ne.s32.totalorder %s5642_s27, %s3908_s3  ;;  %s3977_s4 = smov [#allocation5]  }
  0x42   : > { %2876 = vpow2.f32 %v2550_v23  ;;  %v2558_v23 = vmul.f32 -1.442695, %v4170_v63  ;;  %s3912_s5 = sshll.u32 %s3977_s4, 4  ;;  %s3913_s5 = int_to_ptr.vmem [resolvable:$false] %s3912_s5 }
  0x43   : > { %2878 = vpow2.f32 %v2551_v25  ;;  %v4183_v25 = vld [vmem:[%s4093_s30 + $0xa8] sm:$0xff]  ;;  %p3910_p13 = pnand %p3909_p11, %p5699_p12  ;;  %s3914_s11 = scalar_lea.vmem %s3913_s5, 65536 }
  0x44   : > { %2880 = vpow2.f32 %v2552_v27  ;;  %p3915_p5 = scmp.lt.s32.totalorder %s5642_s27, %s3913_s5  ;;  %p3916_p7 = scmp.lt.s32.totalorder %s3914_s11, %s3908_s3 }
  0x45   : > { %v2857_v32 = vpop.eup %2856  ;;  %2882 = vpow2.f32 %v2553_v29  ;;  %p3911_p4 = pneg %p3910_p13 }
  0x46   : > { %v2859_v33 = vpop.eup %2858  ;;  %v1162_v34 = vadd.f32 1.0, %v2857_v32  ;;  %2884 = vpow2.f32 %v2554_v30  ;;  %v2559_v30 = vmul.f32 -1.442695, %v4174_v9  ;;  %p3917_p8 = por %p3916_p7, %p3915_p5 }
  0x47   : > { %v2861_v35 = vpop.eup %2860  ;;  %v1163_v36 = vadd.f32 1.0, %v2859_v33  ;;  %2886 = vpow2.f32 %v2555_v31  ;;  %v4188_v31 = vld [vmem:[%s4093_s30 + $0xb0] sm:$0xff]  ;;  %v4198_v33 = vld [vmem:[%s4093_s30 + $0xb8] sm:$0xff] }
  0x48   : > { %v2863_v37 = vpop.eup %2862  ;;  %2888 = vrcp.f32 %v1162_v34  ;;  %v1164_v38 = vadd.f32 1.0, %v2861_v35  ;;  %p3918_p10 = pnand %p3917_p8, %p3911_p4 }
  0x49   : > { %v2865_v39 = vpop.eup %2864  ;;  %2890 = vrcp.f32 %v1163_v36  ;;  %v1165_v40 = vadd.f32 1.0, %v2863_v37  ;;  %v2561_v36 = vmul.f32 -1.442695, %v4183_v25  ;;  %v4204_v37 = vld [vmem:[%s4093_s30 + $0xc0] sm:$0xff] }
  0x4a   : > { %v2867_v41 = vpop.eup %2866  ;;  %2892 = vrcp.f32 %v1164_v38  ;;  %v1166_v42 = vadd.f32 1.0, %v2865_v39  ;;  %v2562_v39 = vmul.f32 -1.442695, %v4188_v31 }
  0x4b   : > { %v2869_v43 = vpop.eup %2868  ;;  %2894 = vrcp.f32 %v1165_v40  ;;  %v1167_v44 = vadd.f32 1.0, %v2867_v41  ;;  %v4210_v40 = vld [vmem:[%s4093_s30 + $0xc8] sm:$0xff] }
  0x4c   : > { %v2871_v45 = vpop.eup %2870  ;;  %2896 = vrcp.f32 %v1166_v42  ;;  %v1168_v46 = vadd.f32 1.0, %v2869_v43  ;;  %v2563_v42 = vmul.f32 -1.442695, %v4198_v33  ;;  %v4216_v43 = vld [vmem:[%s4093_s30 + $0xd0] sm:$0xff] }
  0x4d   : > { %v2873_v47 = vpop.eup %2872  ;;  %2898 = vrcp.f32 %v1167_v44  ;;  %v1169_v48 = vadd.f32 1.0, %v2871_v45  ;;  %v2564_v45 = vmul.f32 -1.442695, %v4204_v37 }
  0x4e   : > { %v2875_v49 = vpop.eup %2874  ;;  %2900 = vrcp.f32 %v1168_v46  ;;  %v1170_v50 = vadd.f32 1.0, %v2873_v47  ;;  %v4222_v46 = vld [vmem:[%s4093_s30 + $0xd8] sm:$0xff] }
  0x4f   : > { %v2877_v51 = vpop.eup %2876  ;;  %2902 = vrcp.f32 %v1169_v48  ;;  %v1171_v52 = vadd.f32 1.0, %v2875_v49  ;;  %v2565_v48 = vmul.f32 -1.442695, %v4210_v40  ;;  %v4228_v49 = vld [vmem:[%s4093_s30 + $0xe0] sm:$0xff] }
  0x50   : > { %v2879_v53 = vpop.eup %2878  ;;  %2904 = vrcp.f32 %v1170_v50  ;;  %v1172_v54 = vadd.f32 1.0, %v2877_v51  ;;  %v2566_v51 = vmul.f32 -1.442695, %v4216_v43 }
  0x51   : > { %v2881_v55 = vpop.eup %2880  ;;  %2906 = vrcp.f32 %v1171_v52  ;;  %v1173_v56 = vadd.f32 1.0, %v2879_v53  ;;  %v4234_v52 = vld [vmem:[%s4093_s30 + $0xe8] sm:$0xff] }
  0x52   : > { %v2883_v58 = vpop.eup %2882  ;;  %2908 = vrcp.f32 %v1172_v54  ;;  %v1174_v59 = vadd.f32 1.0, %v2881_v55  ;;  %v2567_v54 = vmul.f32 -1.442695, %v4222_v46  ;;  %v4240_v55 = vld [vmem:[%s4093_s30 + $0xf0] sm:$0xff] }
  0x53   : > { %v2885_v61 = vpop.eup %2884  ;;  %2910 = vrcp.f32 %v1173_v56  ;;  %v1175_v62 = vadd.f32 1.0, %v2883_v58  ;;  %v2568_v58 = vmul.f32 -1.442695, %v4228_v49 }
  0x54   : > { %v2887_v3 = vpop.eup %2886  ;;  %2912 = vrcp.f32 %v1174_v59  ;;  %v1176_v4 = vadd.f32 1.0, %v2885_v61  ;;  %v4246_v59 = vld [vmem:[%s4093_s30 + $0xf8] sm:$0xff] }
  0x55   : > { %v2889_v10 = vpop.eup %2888  ;;  %2914 = vrcp.f32 %v1175_v62  ;;  %v1177_v11 = vadd.f32 1.0, %v2887_v3  ;;  %v2569_v62 = vmul.f32 -1.442695, %v4234_v52 }
  0x56   : > { %v2891_v19 = vpop.eup %2890  ;;  %v1930_v21 = vmul.f32 %v2889_v10, %v4100_v0  ;;  %2916 = vrcp.f32 %v1176_v4 }
  0x57   : > { %v2893_v27 = vpop.eup %2892  ;;  %v1931_v29 = vmul.f32 %v2891_v19, %v4103_v1  ;;  %2918 = vrcp.f32 %v1177_v11  ;;  %v2560_v1 = vmul.f32 -1.442695, %v4178_v16 }
  0x58   : > { %v2895_v32 = vpop.eup %2894  ;;  %2186 = vst [vmem:[%s4192_s17] sm:$0xff] %v1930_v21  ;;  %v1932_v0 = vmul.f32 %v2893_v27, %v4106_v2  ;;  %2920 = vpow2.f32 %v2556_v5 }
  0x59   : > { %v2897_v34 = vpop.eup %2896  ;;  %2187 = vst [vmem:[%s4192_s17 + $0x8] sm:$0xff] %v1931_v29  ;;  %v1933_v35 = vmul.f32 %v2895_v32, %v4112_v6  ;;  %2922 = vpow2.f32 %v2557_v15 }
  0x5a   : > { %v2899_v38 = vpop.eup %2898  ;;  %2188 = vst [vmem:[%s4192_s17 + $0x10] sm:$0xff] %v1932_v0  ;;  %v1934_v2 = vmul.f32 %v2897_v34, %v4115_v7  ;;  %2924 = vpow2.f32 %v2558_v23 }
  0x5b   : > { %v2901_v41 = vpop.eup %2900  ;;  %2189 = vst [vmem:[%s4192_s17 + $0x18] sm:$0xff] %v1933_v35  ;;  %v1935_v6 = vmul.f32 %v2899_v38, %v4118_v8  ;;  %2926 = vpow2.f32 %v2559_v30 }
  0x5c   : > { %v2903_v44 = vpop.eup %2902  ;;  %2190 = vst [vmem:[%s4192_s17 + $0x20] sm:$0xff] %v1934_v2  ;;  %v1936_v7 = vmul.f32 %v2901_v41, %v4124_v12  ;;  %2928 = vpow2.f32 %v2560_v1 }
  0x5d   : > { %v2905_v47 = vpop.eup %2904  ;;  %2191 = vst [vmem:[%s4192_s17 + $0x28] sm:$0xff] %v1935_v6  ;;  %v1937_v8 = vmul.f32 %v2903_v44, %v4127_v13  ;;  %2930 = vpow2.f32 %v2561_v36 }
  0x5e   : > { %v2907_v50 = vpop.eup %2906  ;;  %2192 = vst [vmem:[%s4192_s17 + $0x30] sm:$0xff] %v1936_v7  ;;  %v1938_v12 = vmul.f32 %v2905_v47, %v4130_v14  ;;  %2932 = vpow2.f32 %v2562_v39 }
  0x5f   : > { %v2909_v53 = vpop.eup %2908  ;;  %2193 = vst [vmem:[%s4192_s17 + $0x38] sm:$0xff] %v1937_v8  ;;  %v1939_v13 = vmul.f32 %v2907_v50, %v4135_v17  ;;  %2934 = vpow2.f32 %v2563_v42  ;;  %v4264_v8 = vld [vmem:[%s4093_s30 + $0x100] sm:$0xff] }
  0x60   : > { %v2911_v56 = vpop.eup %2910  ;;  %2194 = vst [vmem:[%s4192_s17 + $0x40] sm:$0xff] %v1938_v12  ;;  %v1940_v14 = vmul.f32 %v2909_v53, %v4138_v18  ;;  %2936 = vpow2.f32 %v2564_v45  ;;  %v2570_v18 = vmul.f32 -1.442695, %v4240_v55  ;;  %v4267_v12 = vld [vmem:[%s4093_s30 + $0x108] sm:$0xff] }
  0x61   : > { %v2913_v61 = vpop.eup %2912  ;;  %2195 = vst [vmem:[%s4192_s17 + $0x48] sm:$0xff] %v1939_v13  ;;  %v1941_v17 = vmul.f32 %v2911_v56, %v4142_v20  ;;  %2938 = vpow2.f32 %v2565_v48  ;;  %v2571_v20 = vmul.f32 -1.442695, %v4246_v59  ;;  %v4270_v13 = vld [vmem:[%s4093_s30 + $0x110] sm:$0xff] }
  0x62   : > { %v2915_v3 = vpop.eup %2914  ;;  %2196 = vst [vmem:[%s4192_s17 + $0x50] sm:$0xff] %v1940_v14  ;;  %v1942_v4 = vmul.f32 %v2913_v61, %v4146_v22  ;;  %2940 = vpow2.f32 %v2566_v51  ;;  %v2572_v14 = vmul.f32 -1.442695, %v4264_v8 }
  0x63   : > { %v2917_v5 = vpop.eup %2916  ;;  %2197 = vst [vmem:[%s4192_s17 + $0x58] sm:$0xff] %v1941_v17  ;;  %v1943_v10 = vmul.f32 %v2915_v3, %v4150_v24  ;;  %2942 = vpow2.f32 %v2567_v54  ;;  %v4278_v3 = vld [vmem:[%s4093_s30 + $0x120] sm:$0xff] }
  0x64   : > { %v2919_v11 = vpop.eup %2918  ;;  %2198 = vst [vmem:[%s4192_s17 + $0x60] sm:$0xff] %v1942_v4  ;;  %v1944_v15 = vmul.f32 %v2917_v5, %v4154_v26  ;;  %2944 = vpow2.f32 %v2568_v58  ;;  %v4274_v58 = vld [vmem:[%s4093_s30 + $0x118] sm:$0xff]  ;;  %v2574_v5 = vmul.f32 -1.442695, %v4270_v13 }
  0x65   : > { %v2921_v19 = vpop.eup %2920  ;;  %2199 = vst [vmem:[%s4192_s17 + $0x68] sm:$0xff] %v1943_v10  ;;  %v1945_v22 = vmul.f32 %v2919_v11, %v4158_v28  ;;  %2946 = vpow2.f32 %v2569_v62  ;;  %v2573_v62 = vmul.f32 -1.442695, %v4267_v12  ;;  %v4283_v10 = vld [vmem:[%s4093_s30 + $0x128] sm:$0xff] }
  0x66   : > { %v2923_v21 = vpop.eup %2922  ;;  %2200 = vst [vmem:[%s4192_s17 + $0x70] sm:$0xff] %v1944_v15  ;;  %v1178_v23 = vadd.f32 1.0, %v2921_v19  ;;  %2948 = vpow2.f32 %v2570_v18  ;;  %v2575_v15 = vmul.f32 -1.442695, %v4274_v58  ;;  %v4288_v19 = vld [vmem:[%s4093_s30 + $0x130] sm:$0xff] }
  0x67   : > { %v2925_v27 = vpop.eup %2924  ;;  %2201 = vst [vmem:[%s4192_s17 + $0x78] sm:$0xff] %v1945_v22  ;;  %v1179_v24 = vadd.f32 1.0, %v2923_v21  ;;  %2950 = vpow2.f32 %v2571_v20  ;;  %v2576_v21 = vmul.f32 -1.442695, %v4278_v3 }
  0x68   : > { %v2927_v29 = vpop.eup %2926  ;;  %2952 = vrcp.f32 %v1178_v23  ;;  %v1180_v30 = vadd.f32 1.0, %v2925_v27  ;;  %v4294_v23 = vld [vmem:[%s4093_s30 + $0x138] sm:$0xff] }
  0x69   : > { %v2929_v32 = vpop.eup %2928  ;;  %2954 = vrcp.f32 %v1179_v24  ;;  %v1181_v26 = vadd.f32 1.0, %v2927_v29  ;;  %v2577_v24 = vmul.f32 -1.442695, %v4283_v10  ;;  %v4300_v29 = vld [vmem:[%s4093_s30 + $0x140] sm:$0xff] }
  0x6a   : > { %v2931_v0 = vpop.eup %2930  ;;  %2956 = vrcp.f32 %v1180_v30  ;;  %v1182_v1 = vadd.f32 1.0, %v2929_v32  ;;  %v2578_v32 = vmul.f32 -1.442695, %v4288_v19 }
  0x6b   : > { %v2933_v34 = vpop.eup %2932  ;;  %2958 = vrcp.f32 %v1181_v26  ;;  %v1183_v28 = vadd.f32 1.0, %v2931_v0  ;;  %v4306_v26 = vld [vmem:[%s4093_s30 + $0x148] sm:$0xff] }
  0x6c   : > { %v2935_v35 = vpop.eup %2934  ;;  %2960 = vrcp.f32 %v1182_v1  ;;  %v1184_v36 = vadd.f32 1.0, %v2933_v34  ;;  %v2579_v1 = vmul.f32 -1.442695, %v4294_v23  ;;  %v4312_v34 = vld [vmem:[%s4093_s30 + $0x150] sm:$0xff] }
  0x6d   : > { %v2937_v38 = vpop.eup %2936  ;;  %2962 = vrcp.f32 %v1183_v28  ;;  %v1185_v2 = vadd.f32 1.0, %v2935_v35  ;;  %v2580_v35 = vmul.f32 -1.442695, %v4300_v29 }
  0x6e   : > { %v2939_v39 = vpop.eup %2938  ;;  %2964 = vrcp.f32 %v1184_v36  ;;  %v1186_v41 = vadd.f32 1.0, %v2937_v38  ;;  %v4318_v36 = vld [vmem:[%s4093_s30 + $0x158] sm:$0xff] }
  0x6f   : > { %v2941_v6 = vpop.eup %2940  ;;  %2966 = vrcp.f32 %v1185_v2  ;;  %v1187_v42 = vadd.f32 1.0, %v2939_v39  ;;  %v2581_v2 = vmul.f32 -1.442695, %v4306_v26  ;;  %v4324_v39 = vld [vmem:[%s4093_s30 + $0x160] sm:$0xff] }
  0x70   : > { %v2943_v44 = vpop.eup %2942  ;;  %2968 = vrcp.f32 %v1186_v41  ;;  %v1188_v7 = vadd.f32 1.0, %v2941_v6  ;;  %v2582_v6 = vmul.f32 -1.442695, %v4312_v34 }
  0x71   : > { %v2945_v45 = vpop.eup %2944  ;;  %2970 = vrcp.f32 %v1187_v42  ;;  %v1189_v47 = vadd.f32 1.0, %v2943_v44  ;;  %v4330_v42 = vld [vmem:[%s4093_s30 + $0x168] sm:$0xff] }
  0x72   : > { %v2947_v48 = vpop.eup %2946  ;;  %2972 = vrcp.f32 %v1188_v7  ;;  %v1190_v50 = vadd.f32 1.0, %v2945_v45  ;;  %v2583_v7 = vmul.f32 -1.442695, %v4318_v36  ;;  %v4336_v45 = vld [vmem:[%s4093_s30 + $0x170] sm:$0xff] }
  0x73   : > { %v2949_v51 = vpop.eup %2948  ;;  %2974 = vrcp.f32 %v1189_v47  ;;  %v1191_v53 = vadd.f32 1.0, %v2947_v48  ;;  %v2584_v48 = vmul.f32 -1.442695, %v4324_v39 }
  0x74   : > { %v2951_v54 = vpop.eup %2950  ;;  %2976 = vrcp.f32 %v1190_v50  ;;  %v1192_v56 = vadd.f32 1.0, %v2949_v51  ;;  %v4342_v50 = vld [vmem:[%s4093_s30 + $0x178] sm:$0xff] }
  0x75   : > { %v2953_v61 = vpop.eup %2952  ;;  %2978 = vrcp.f32 %v1191_v53  ;;  %v1193_v17 = vadd.f32 1.0, %v2951_v54  ;;  %v2585_v53 = vmul.f32 -1.442695, %v4330_v42 }
  0x76   : > { %v2955_v4 = vpop.eup %2954  ;;  %v1946_v18 = vmul.f32 %v2953_v61, %v4164_v57  ;;  %2980 = vrcp.f32 %v1192_v56 }
  0x77   : > { %v2957_v20 = vpop.eup %2956  ;;  %v1947_v11 = vmul.f32 %v2955_v4, %v4167_v60  ;;  %2982 = vrcp.f32 %v1193_v17 }
  0x78   : > { %v2959_v22 = vpop.eup %2958  ;;  %2202 = vst [vmem:[%s4192_s17 + $0x80] sm:$0xff] %v1946_v18  ;;  %v1948_v57 = vmul.f32 %v2957_v20, %v4170_v63  ;;  %2984 = vpow2.f32 %v2572_v14 }
  0x79   : > { %v2961_v27 = vpop.eup %2960  ;;  %2203 = vst [vmem:[%s4192_s17 + $0x88] sm:$0xff] %v1947_v11  ;;  %v1949_v60 = vmul.f32 %v2959_v22, %v4174_v9  ;;  %2986 = vpow2.f32 %v2573_v62 }
  0x7a   : > { %v2963_v30 = vpop.eup %2962  ;;  %2204 = vst [vmem:[%s4192_s17 + $0x90] sm:$0xff] %v1948_v57  ;;  %v1950_v63 = vmul.f32 %v2961_v27, %v4178_v16  ;;  %2988 = vpow2.f32 %v2574_v5 }
  0x7b   : > { %v2965_v0 = vpop.eup %2964  ;;  %2205 = vst [vmem:[%s4192_s17 + $0x98] sm:$0xff] %v1949_v60  ;;  %v1951_v9 = vmul.f32 %v2963_v30, %v4183_v25  ;;  %2990 = vpow2.f32 %v2575_v15 }
  0x7c   : > { %v2967_v28 = vpop.eup %2966  ;;  %2206 = vst [vmem:[%s4192_s17 + $0xa0] sm:$0xff] %v1950_v63  ;;  %v1952_v16 = vmul.f32 %v2965_v0, %v4188_v31  ;;  %2992 = vpow2.f32 %v2576_v21 }
  0x7d   : > { %v2969_v38 = vpop.eup %2968  ;;  %2207 = vst [vmem:[%s4192_s17 + $0xa8] sm:$0xff] %v1951_v9  ;;  %v1953_v25 = vmul.f32 %v2967_v28, %v4198_v33  ;;  %2994 = vpow2.f32 %v2577_v24 }
  0x7e   : > { %v2971_v41 = vpop.eup %2970  ;;  %2208 = vst [vmem:[%s4192_s17 + $0xb0] sm:$0xff] %v1952_v16  ;;  %v1954_v31 = vmul.f32 %v2969_v38, %v4204_v37  ;;  %2996 = vpow2.f32 %v2578_v32 }
  0x7f   : > { %v2973_v44 = vpop.eup %2972  ;;  %2209 = vst [vmem:[%s4192_s17 + $0xb8] sm:$0xff] %v1953_v25  ;;  %v1955_v33 = vmul.f32 %v2971_v41, %v4210_v40  ;;  %2998 = vpow2.f32 %v2579_v1  ;;  %v4360_v25 = vld [vmem:[%s4093_s30 + $0x180] sm:$0xff] }
  0x80   : > { %v2975_v47 = vpop.eup %2974  ;;  %2210 = vst [vmem:[%s4192_s17 + $0xc0] sm:$0xff] %v1954_v31  ;;  %v1956_v37 = vmul.f32 %v2973_v44, %v4216_v43  ;;  %3000 = vpow2.f32 %v2580_v35  ;;  %v2586_v43 = vmul.f32 -1.442695, %v4336_v45  ;;  %v4363_v31 = vld [vmem:[%s4093_s30 + $0x188] sm:$0xff] }
  0x81   : > { %v2977_v51 = vpop.eup %2976  ;;  %2211 = vst [vmem:[%s4192_s17 + $0xc8] sm:$0xff] %v1955_v33  ;;  %v1957_v40 = vmul.f32 %v2975_v47, %v4222_v46  ;;  %3002 = vpow2.f32 %v2581_v2  ;;  %v2587_v46 = vmul.f32 -1.442695, %v4342_v50  ;;  %v4366_v33 = vld [vmem:[%s4093_s30 + $0x190] sm:$0xff] }
  0x82   : > { %v2979_v54 = vpop.eup %2978  ;;  %2212 = vst [vmem:[%s4192_s17 + $0xd0] sm:$0xff] %v1956_v37  ;;  %v1958_v56 = vmul.f32 %v2977_v51, %v4228_v49  ;;  %3004 = vpow2.f32 %v2582_v6  ;;  %v2588_v37 = vmul.f32 -1.442695, %v4360_v25 }
  0x83   : > { %v2981_v14 = vpop.eup %2980  ;;  %2213 = vst [vmem:[%s4192_s17 + $0xd8] sm:$0xff] %v1957_v40  ;;  %v1959_v61 = vmul.f32 %v2979_v54, %v4234_v52  ;;  %3006 = vpow2.f32 %v2583_v7  ;;  %v4374_v54 = vld [vmem:[%s4093_s30 + $0x1a0] sm:$0xff] }
  0x84   : > { %v2983_v17 = vpop.eup %2982  ;;  %2214 = vst [vmem:[%s4192_s17 + $0xe0] sm:$0xff] %v1958_v56  ;;  %v1960_v62 = vmul.f32 %v2981_v14, %v4240_v55  ;;  %3008 = vpow2.f32 %v2584_v48  ;;  %v4370_v48 = vld [vmem:[%s4093_s30 + $0x198] sm:$0xff]  ;;  %v2590_v14 = vmul.f32 -1.442695, %v4366_v33 }
  0x85   : > { %v2985_v4 = vpop.eup %2984  ;;  %2215 = vst [vmem:[%s4192_s17 + $0xe8] sm:$0xff] %v1959_v61  ;;  %v1961_v49 = vmul.f32 %v2983_v17, %v4246_v59  ;;  %3010 = vpow2.f32 %v2585_v53  ;;  %v2589_v53 = vmul.f32 -1.442695, %v4363_v31  ;;  %v4379_v61 = vld [vmem:[%s4093_s30 + $0x1a8] sm:$0xff] }
  0x86   : > { %v2987_v18 = vpop.eup %2986  ;;  %2216 = vst [vmem:[%s4192_s17 + $0xf0] sm:$0xff] %v1960_v62  ;;  %v1194_v5 = vadd.f32 1.0, %v2985_v4  ;;  %3012 = vpow2.f32 %v2586_v43  ;;  %v2591_v62 = vmul.f32 -1.442695, %v4370_v48  ;;  %v4384_v4 = vld [vmem:[%s4093_s30 + $0x1b0] sm:$0xff] }
  0x87   : > { %v2989_v20 = vpop.eup %2988  ;;  %2217 = vst [vmem:[%s4192_s17 + $0xf8] sm:$0xff] %v1961_v49  ;;  %v1195_v52 = vadd.f32 1.0, %v2987_v18  ;;  %3014 = vpow2.f32 %v2587_v46  ;;  %v2592_v18 = vmul.f32 -1.442695, %v4374_v54 }
  0x88   : > { %v2991_v11 = vpop.eup %2990  ;;  %3016 = vrcp.f32 %v1194_v5  ;;  %v1196_v15 = vadd.f32 1.0, %v2989_v20  ;;  %v4390_v5 = vld [vmem:[%s4093_s30 + $0x1b8] sm:$0xff] }
  0x89   : > { %v2993_v22 = vpop.eup %2992  ;;  %3018 = vrcp.f32 %v1195_v52  ;;  %v1197_v55 = vadd.f32 1.0, %v2991_v11  ;;  %v2593_v52 = vmul.f32 -1.442695, %v4379_v61  ;;  %v4396_v11 = vld [vmem:[%s4093_s30 + $0x1c0] sm:$0xff] }
  0x8a   : > { %v2995_v57 = vpop.eup %2994  ;;  %3020 = vrcp.f32 %v1196_v15  ;;  %v1198_v21 = vadd.f32 1.0, %v2993_v22  ;;  %v2594_v22 = vmul.f32 -1.442695, %v4384_v4 }
  0x8b   : > { %v2997_v27 = vpop.eup %2996  ;;  %3022 = vrcp.f32 %v1197_v55  ;;  %v1199_v59 = vadd.f32 1.0, %v2995_v57  ;;  %v4402_v55 = vld [vmem:[%s4093_s30 + $0x1c8] sm:$0xff] }
  0x8c   : > { %v2999_v60 = vpop.eup %2998  ;;  %3024 = vrcp.f32 %v1198_v21  ;;  %v1200_v24 = vadd.f32 1.0, %v2997_v27  ;;  %v2595_v21 = vmul.f32 -1.442695, %v4390_v5  ;;  %v4408_v27 = vld [vmem:[%s4093_s30 + $0x1d0] sm:$0xff] }
  0x8d   : > { %v3001_v30 = vpop.eup %3000  ;;  %3026 = vrcp.f32 %v1199_v59  ;;  %v1201_v63 = vadd.f32 1.0, %v2999_v60  ;;  %v2596_v60 = vmul.f32 -1.442695, %v4396_v11 }
  0x8e   : > { %v3003_v32 = vpop.eup %3002  ;;  %3028 = vrcp.f32 %v1200_v24  ;;  %v1202_v0 = vadd.f32 1.0, %v3001_v30  ;;  %v4414_v24 = vld [vmem:[%s4093_s30 + $0x1d8] sm:$0xff] }
  0x8f   : > { %v3005_v9 = vpop.eup %3004  ;;  %3030 = vrcp.f32 %v1201_v63  ;;  %v1203_v1 = vadd.f32 1.0, %v3003_v32  ;;  %v2597_v63 = vmul.f32 -1.442695, %v4402_v55  ;;  %v4420_v32 = vld [vmem:[%s4093_s30 + $0x1e0] sm:$0xff] }
  0x90   : > { %v3007_v28 = vpop.eup %3006  ;;  %3032 = vrcp.f32 %v1202_v0  ;;  %v1204_v16 = vadd.f32 1.0, %v3005_v9  ;;  %v2598_v9 = vmul.f32 -1.442695, %v4408_v27 }
  0x91   : > { %v3009_v35 = vpop.eup %3008  ;;  %3034 = vrcp.f32 %v1203_v1  ;;  %v1205_v38 = vadd.f32 1.0, %v3007_v28  ;;  %v4426_v1 = vld [vmem:[%s4093_s30 + $0x1e8] sm:$0xff] }
  0x92   : > { %v3011_v2 = vpop.eup %3010  ;;  %3036 = vrcp.f32 %v1204_v16  ;;  %v1206_v41 = vadd.f32 1.0, %v3009_v35  ;;  %v2599_v16 = vmul.f32 -1.442695, %v4414_v24  ;;  %v4432_v35 = vld [vmem:[%s4093_s30 + $0x1f0] sm:$0xff] }
  0x93   : > { %v3013_v6 = vpop.eup %3012  ;;  %3038 = vrcp.f32 %v1205_v38  ;;  %v1207_v44 = vadd.f32 1.0, %v3011_v2  ;;  %v2600_v2 = vmul.f32 -1.442695, %v4420_v32 }
  0x94   : > { %v3015_v7 = vpop.eup %3014  ;;  %3040 = vrcp.f32 %v1206_v41  ;;  %v1208_v47 = vadd.f32 1.0, %v3013_v6  ;;  %v4438_v41 = vld [vmem:[%s4093_s30 + $0x1f8] sm:$0xff] }
  0x95   : > { %v3017_v51 = vpop.eup %3016  ;;  %3042 = vrcp.f32 %v1207_v44  ;;  %v1209_v40 = vadd.f32 1.0, %v3015_v7  ;;  %v2601_v44 = vmul.f32 -1.442695, %v4426_v1 }
  0x96   : > { %v3019_v56 = vpop.eup %3018  ;;  %v1962_v43 = vmul.f32 %v3017_v51, %v4264_v8  ;;  %3044 = vrcp.f32 %v1208_v47 }
  0x97   : > { %v3021_v46 = vpop.eup %3020  ;;  %v1963_v17 = vmul.f32 %v3019_v56, %v4267_v12  ;;  %3046 = vrcp.f32 %v1209_v40 }
  0x98   : > { %v3023_v49 = vpop.eup %3022  ;;  %2218 = vst [vmem:[%s4192_s17 + $0x100] sm:$0xff] %v1962_v43  ;;  %v1964_v8 = vmul.f32 %v3021_v46, %v4270_v13  ;;  %3048 = vpow2.f32 %v2588_v37 }
  0x99   : > { %v3025_v20 = vpop.eup %3024  ;;  %2219 = vst [vmem:[%s4192_s17 + $0x108] sm:$0xff] %v1963_v17  ;;  %v1965_v12 = vmul.f32 %v3023_v49, %v4274_v58  ;;  %3050 = vpow2.f32 %v2589_v53 }
  0x9a   : > { %v3027_v15 = vpop.eup %3026  ;;  %2220 = vst [vmem:[%s4192_s17 + $0x110] sm:$0xff] %v1964_v8  ;;  %v1966_v13 = vmul.f32 %v3025_v20, %v4278_v3  ;;  %3052 = vpow2.f32 %v2590_v14 }
  0x9b   : > { %v3029_v57 = vpop.eup %3028  ;;  %2221 = vst [vmem:[%s4192_s17 + $0x118] sm:$0xff] %v1965_v12  ;;  %v1967_v58 = vmul.f32 %v3027_v15, %v4283_v10  ;;  %3054 = vpow2.f32 %v2591_v62 }
  0x9c   : > { %v3031_v59 = vpop.eup %3030  ;;  %2222 = vst [vmem:[%s4192_s17 + $0x120] sm:$0xff] %v1966_v13  ;;  %v1968_v3 = vmul.f32 %v3029_v57, %v4288_v19  ;;  %3056 = vpow2.f32 %v2592_v18 }
  0x9d   : > { %v3033_v30 = vpop.eup %3032  ;;  %2223 = vst [vmem:[%s4192_s17 + $0x128] sm:$0xff] %v1967_v58  ;;  %v1969_v10 = vmul.f32 %v3031_v59, %v4294_v23  ;;  %3058 = vpow2.f32 %v2593_v52 }
  0x9e   : > { %v3035_v0 = vpop.eup %3034  ;;  %2224 = vst [vmem:[%s4192_s17 + $0x130] sm:$0xff] %v1968_v3  ;;  %v1970_v19 = vmul.f32 %v3033_v30, %v4300_v29  ;;  %3060 = vpow2.f32 %v2594_v22 }
  0x9f   : > { %v3037_v28 = vpop.eup %3036  ;;  %2225 = vst [vmem:[%s4192_s17 + $0x138] sm:$0xff] %v1969_v10  ;;  %v1971_v23 = vmul.f32 %v3035_v0, %v4306_v26  ;;  %3062 = vpow2.f32 %v2595_v21  ;;  %v4456_v10 = vld [vmem:[%s4093_s30 + $0x200] sm:$0xff] }
  0xa0   : > { %v3039_v38 = vpop.eup %3038  ;;  %2226 = vst [vmem:[%s4192_s17 + $0x140] sm:$0xff] %v1970_v19  ;;  %v1972_v29 = vmul.f32 %v3037_v28, %v4312_v34  ;;  %3064 = vpow2.f32 %v2596_v60  ;;  %v2602_v34 = vmul.f32 -1.442695, %v4432_v35  ;;  %v4459_v19 = vld [vmem:[%s4093_s30 + $0x208] sm:$0xff] }
  0xa1   : > { %v3041_v6 = vpop.eup %3040  ;;  %2227 = vst [vmem:[%s4192_s17 + $0x148] sm:$0xff] %v1971_v23  ;;  %v1973_v26 = vmul.f32 %v3039_v38, %v4318_v36  ;;  %3066 = vpow2.f32 %v2597_v63  ;;  %v2603_v36 = vmul.f32 -1.442695, %v4438_v41  ;;  %v4462_v23 = vld [vmem:[%s4093_s30 + $0x210] sm:$0xff] }
  0xa2   : > { %v3043_v7 = vpop.eup %3042  ;;  %2228 = vst [vmem:[%s4192_s17 + $0x150] sm:$0xff] %v1972_v29  ;;  %v1974_v47 = vmul.f32 %v3041_v6, %v4324_v39  ;;  %3068 = vpow2.f32 %v2598_v9  ;;  %v2604_v29 = vmul.f32 -1.442695, %v4456_v10 }
  0xa3   : > { %v3045_v37 = vpop.eup %3044  ;;  %2229 = vst [vmem:[%s4192_s17 + $0x158] sm:$0xff] %v1973_v26  ;;  %v1975_v51 = vmul.f32 %v3043_v7, %v4330_v42  ;;  %3070 = vpow2.f32 %v2599_v16  ;;  %v4470_v7 = vld [vmem:[%s4093_s30 + $0x220] sm:$0xff] }
  0xa4   : > { %v3047_v40 = vpop.eup %3046  ;;  %2230 = vst [vmem:[%s4192_s17 + $0x160] sm:$0xff] %v1974_v47  ;;  %v1976_v53 = vmul.f32 %v3045_v37, %v4336_v45  ;;  %3072 = vpow2.f32 %v2600_v2  ;;  %v4466_v2 = vld [vmem:[%s4093_s30 + $0x218] sm:$0xff]  ;;  %v2606_v37 = vmul.f32 -1.442695, %v4462_v23 }
  0xa5   : > { %v3049_v56 = vpop.eup %3048  ;;  %2231 = vst [vmem:[%s4192_s17 + $0x168] sm:$0xff] %v1975_v51  ;;  %v1977_v39 = vmul.f32 %v3047_v40, %v4342_v50  ;;  %3074 = vpow2.f32 %v2601_v44  ;;  %v2605_v44 = vmul.f32 -1.442695, %v4459_v19  ;;  %v4475_v51 = vld [vmem:[%s4093_s30 + $0x228] sm:$0xff] }
  0xa6   : > { %v3051_v43 = vpop.eup %3050  ;;  %2232 = vst [vmem:[%s4192_s17 + $0x170] sm:$0xff] %v1976_v53  ;;  %v1210_v14 = vadd.f32 1.0, %v3049_v56  ;;  %3076 = vpow2.f32 %v2602_v34  ;;  %v2607_v53 = vmul.f32 -1.442695, %v4466_v2  ;;  %v4480_v56 = vld [vmem:[%s4093_s30 + $0x230] sm:$0xff] }
  0xa7   : > { %v3053_v46 = vpop.eup %3052  ;;  %2233 = vst [vmem:[%s4192_s17 + $0x178] sm:$0xff] %v1977_v39  ;;  %v1211_v42 = vadd.f32 1.0, %v3051_v43  ;;  %3078 = vpow2.f32 %v2603_v36  ;;  %v2608_v43 = vmul.f32 -1.442695, %v4470_v7 }
  0xa8   : > { %v3055_v17 = vpop.eup %3054  ;;  %3080 = vrcp.f32 %v1210_v14  ;;  %v1212_v62 = vadd.f32 1.0, %v3053_v46  ;;  %v4486_v14 = vld [vmem:[%s4093_s30 + $0x238] sm:$0xff] }
  0xa9   : > { %v3057_v49 = vpop.eup %3056  ;;  %3082 = vrcp.f32 %v1211_v42  ;;  %v1213_v45 = vadd.f32 1.0, %v3055_v17  ;;  %v2609_v42 = vmul.f32 -1.442695, %v4475_v51  ;;  %v4492_v17 = vld [vmem:[%s4093_s30 + $0x240] sm:$0xff] }
  0xaa   : > { %v3059_v8 = vpop.eup %3058  ;;  %3084 = vrcp.f32 %v1212_v62  ;;  %v1214_v18 = vadd.f32 1.0, %v3057_v49  ;;  %v2610_v49 = vmul.f32 -1.442695, %v4480_v56 }
  0xab   : > { %v3061_v20 = vpop.eup %3060  ;;  %3086 = vrcp.f32 %v1213_v45  ;;  %v1215_v50 = vadd.f32 1.0, %v3059_v8  ;;  %v4498_v45 = vld [vmem:[%s4093_s30 + $0x248] sm:$0xff] }
  0xac   : > { %v3063_v12 = vpop.eup %3062  ;;  %3088 = vrcp.f32 %v1214_v18  ;;  %v1216_v52 = vadd.f32 1.0, %v3061_v20  ;;  %v2611_v18 = vmul.f32 -1.442695, %v4486_v14  ;;  %v4504_v20 = vld [vmem:[%s4093_s30 + $0x250] sm:$0xff] }
  0xad   : > { %v3065_v15 = vpop.eup %3064  ;;  %3090 = vrcp.f32 %v1215_v50  ;;  %v1217_v13 = vadd.f32 1.0, %v3063_v12  ;;  %v2612_v12 = vmul.f32 -1.442695, %v4492_v17 }
  0xae   : > { %v3067_v22 = vpop.eup %3066  ;;  %3092 = vrcp.f32 %v1216_v52  ;;  %v1218_v57 = vadd.f32 1.0, %v3065_v15  ;;  %v4510_v52 = vld [vmem:[%s4093_s30 + $0x258] sm:$0xff] }
  0xaf   : > { %v3069_v58 = vpop.eup %3068  ;;  %3094 = vrcp.f32 %v1217_v13  ;;  %v1219_v21 = vadd.f32 1.0, %v3067_v22  ;;  %v2613_v13 = vmul.f32 -1.442695, %v4498_v45  ;;  %v4516_v22 = vld [vmem:[%s4093_s30 + $0x260] sm:$0xff] }
  0xb0   : > { %v3071_v59 = vpop.eup %3070  ;;  %3096 = vrcp.f32 %v1218_v57  ;;  %v1220_v3 = vadd.f32 1.0, %v3069_v58  ;;  %v2614_v58 = vmul.f32 -1.442695, %v4504_v20 }
  0xb1   : > { %v3073_v60 = vpop.eup %3072  ;;  %3098 = vrcp.f32 %v1219_v21  ;;  %v1221_v30 = vadd.f32 1.0, %v3071_v59  ;;  %v4522_v21 = vld [vmem:[%s4093_s30 + $0x268] sm:$0xff] }
  0xb2   : > { %v3075_v63 = vpop.eup %3074  ;;  %3100 = vrcp.f32 %v1220_v3  ;;  %v1222_v0 = vadd.f32 1.0, %v3073_v60  ;;  %v2615_v3 = vmul.f32 -1.442695, %v4510_v52  ;;  %v4528_v60 = vld [vmem:[%s4093_s30 + $0x270] sm:$0xff] }
  0xb3   : > { %v3077_v9 = vpop.eup %3076  ;;  %3102 = vrcp.f32 %v1221_v30  ;;  %v1223_v28 = vadd.f32 1.0, %v3075_v63  ;;  %v2616_v63 = vmul.f32 -1.442695, %v4516_v22 }
  0xb4   : > { %v3079_v16 = vpop.eup %3078  ;;  %3104 = vrcp.f32 %v1222_v0  ;;  %v1224_v38 = vadd.f32 1.0, %v3077_v9  ;;  %v4534_v0 = vld [vmem:[%s4093_s30 + $0x278] sm:$0xff] }
  0xb5   : > { %v3081_v6 = vpop.eup %3080  ;;  %3106 = vrcp.f32 %v1223_v28  ;;  %v1225_v26 = vadd.f32 1.0, %v3079_v16  ;;  %v2617_v28 = vmul.f32 -1.442695, %v4522_v21 }
  0xb6   : > { %v3083_v47 = vpop.eup %3082  ;;  %v1978_v34 = vmul.f32 %v3081_v6, %v4360_v25  ;;  %3108 = vrcp.f32 %v1224_v38 }
  0xb7   : > { %v3085_v36 = vpop.eup %3084  ;;  %v1979_v40 = vmul.f32 %v3083_v47, %v4363_v31  ;;  %3110 = vrcp.f32 %v1225_v26 }
  0xb8   : > { %v3087_v39 = vpop.eup %3086  ;;  %2234 = vst [vmem:[%s4192_s17 + $0x180] sm:$0xff] %v1978_v34  ;;  %v1980_v25 = vmul.f32 %v3085_v36, %v4366_v33  ;;  %3112 = vpow2.f32 %v2604_v29 }
  0xb9   : > { %v3089_v46 = vpop.eup %3088  ;;  %2235 = vst [vmem:[%s4192_s17 + $0x188] sm:$0xff] %v1979_v40  ;;  %v1981_v31 = vmul.f32 %v3087_v39, %v4370_v48  ;;  %3114 = vpow2.f32 %v2605_v44 }
  0xba   : > { %v3091_v62 = vpop.eup %3090  ;;  %2236 = vst [vmem:[%s4192_s17 + $0x190] sm:$0xff] %v1980_v25  ;;  %v1982_v33 = vmul.f32 %v3089_v46, %v4374_v54  ;;  %3116 = vpow2.f32 %v2606_v37 }
  0xbb   : > { %v3093_v8 = vpop.eup %3092  ;;  %2237 = vst [vmem:[%s4192_s17 + $0x198] sm:$0xff] %v1981_v31  ;;  %v1983_v48 = vmul.f32 %v3091_v62, %v4379_v61  ;;  %3118 = vpow2.f32 %v2607_v53 }
  0xbc   : > { %v3095_v50 = vpop.eup %3094  ;;  %2238 = vst [vmem:[%s4192_s17 + $0x1a0] sm:$0xff] %v1982_v33  ;;  %v1984_v54 = vmul.f32 %v3093_v8, %v4384_v4  ;;  %3120 = vpow2.f32 %v2608_v43 }
  0xbd   : > { %v3097_v15 = vpop.eup %3096  ;;  %2239 = vst [vmem:[%s4192_s17 + $0x1a8] sm:$0xff] %v1983_v48  ;;  %v1985_v61 = vmul.f32 %v3095_v50, %v4390_v5  ;;  %3122 = vpow2.f32 %v2609_v42 }
  0xbe   : > { %v3099_v57 = vpop.eup %3098  ;;  %2240 = vst [vmem:[%s4192_s17 + $0x1b0] sm:$0xff] %v1984_v54  ;;  %v1986_v4 = vmul.f32 %v3097_v15, %v4396_v11  ;;  %3124 = vpow2.f32 %v2610_v49 }
  0xbf   : > { %v3101_v59 = vpop.eup %3100  ;;  %2241 = vst [vmem:[%s4192_s17 + $0x1b8] sm:$0xff] %v1985_v61  ;;  %v1987_v5 = vmul.f32 %v3099_v57, %v4402_v55  ;;  %3126 = vpow2.f32 %v2611_v18  ;;  %v4552_v61 = vld [vmem:[%s4093_s30 + $0x280] sm:$0xff] }
  0xc0   : > { %v3103_v30 = vpop.eup %3102  ;;  %2242 = vst [vmem:[%s4192_s17 + $0x1c0] sm:$0xff] %v1986_v4  ;;  %v1988_v11 = vmul.f32 %v3101_v59, %v4408_v27  ;;  %3128 = vpow2.f32 %v2612_v12  ;;  %v2618_v27 = vmul.f32 -1.442695, %v4528_v60  ;;  %v4555_v4 = vld [vmem:[%s4093_s30 + $0x288] sm:$0xff] }
  0xc1   : > { %v3105_v9 = vpop.eup %3104  ;;  %2243 = vst [vmem:[%s4192_s17 + $0x1c8] sm:$0xff] %v1987_v5  ;;  %v1989_v55 = vmul.f32 %v3103_v30, %v4414_v24  ;;  %3130 = vpow2.f32 %v2613_v13  ;;  %v2619_v24 = vmul.f32 -1.442695, %v4534_v0  ;;  %v4558_v5 = vld [vmem:[%s4093_s30 + $0x290] sm:$0xff] }
  0xc2   : > { %v3107_v16 = vpop.eup %3106  ;;  %2244 = vst [vmem:[%s4192_s17 + $0x1d0] sm:$0xff] %v1988_v11  ;;  %v1990_v38 = vmul.f32 %v3105_v9, %v4420_v32  ;;  %3132 = vpow2.f32 %v2614_v58  ;;  %v2620_v11 = vmul.f32 -1.442695, %v4552_v61 }
  0xc3   : > { %v3109_v29 = vpop.eup %3108  ;;  %2245 = vst [vmem:[%s4192_s17 + $0x1d8] sm:$0xff] %v1989_v55  ;;  %v1991_v6 = vmul.f32 %v3107_v16, %v4426_v1  ;;  %3134 = vpow2.f32 %v2615_v3  ;;  %v4566_v16 = vld [vmem:[%s4093_s30 + $0x2a0] sm:$0xff] }
  0xc4   : > { %v3111_v26 = vpop.eup %3110  ;;  %2246 = vst [vmem:[%s4192_s17 + $0x1e0] sm:$0xff] %v1990_v38  ;;  %v1992_v44 = vmul.f32 %v3109_v29, %v4432_v35  ;;  %3136 = vpow2.f32 %v2616_v63  ;;  %v4562_v63 = vld [vmem:[%s4093_s30 + $0x298] sm:$0xff]  ;;  %v2622_v29 = vmul.f32 -1.442695, %v4558_v5 }
  0xc5   : > { %v3113_v47 = vpop.eup %3112  ;;  %2247 = vst [vmem:[%s4192_s17 + $0x1e8] sm:$0xff] %v1991_v6  ;;  %v1993_v32 = vmul.f32 %v3111_v26, %v4438_v41  ;;  %3138 = vpow2.f32 %v2617_v28  ;;  %v2621_v28 = vmul.f32 -1.442695, %v4555_v4  ;;  %v4571_v6 = vld [vmem:[%s4093_s30 + $0x2a8] sm:$0xff] }
  0xc6   : > { %v3115_v34 = vpop.eup %3114  ;;  %2248 = vst [vmem:[%s4192_s17 + $0x1f0] sm:$0xff] %v1992_v44  ;;  %v1226_v37 = vadd.f32 1.0, %v3113_v47  ;;  %3140 = vpow2.f32 %v2618_v27  ;;  %v2623_v44 = vmul.f32 -1.442695, %v4562_v63  ;;  %v4576_v47 = vld [vmem:[%s4093_s30 + $0x2b0] sm:$0xff] }
  0xc7   : > { %v3117_v36 = vpop.eup %3116  ;;  %2249 = vst [vmem:[%s4192_s17 + $0x1f8] sm:$0xff] %v1993_v32  ;;  %v1227_v1 = vadd.f32 1.0, %v3115_v34  ;;  %3142 = vpow2.f32 %v2619_v24  ;;  %v2624_v34 = vmul.f32 -1.442695, %v4566_v16 }
  0xc8   : > { %v3119_v40 = vpop.eup %3118  ;;  %3144 = vrcp.f32 %v1226_v37  ;;  %v1228_v53 = vadd.f32 1.0, %v3117_v36  ;;  %v4582_v37 = vld [vmem:[%s4093_s30 + $0x2b8] sm:$0xff] }
  0xc9   : > { %v3121_v39 = vpop.eup %3120  ;;  %3146 = vrcp.f32 %v1227_v1  ;;  %v1229_v35 = vadd.f32 1.0, %v3119_v40  ;;  %v2625_v1 = vmul.f32 -1.442695, %v4571_v6  ;;  %v4588_v40 = vld [vmem:[%s4093_s30 + $0x2c0] sm:$0xff] }
  0xca   : > { %v3123_v25 = vpop.eup %3122  ;;  %3148 = vrcp.f32 %v1228_v53  ;;  %v1230_v43 = vadd.f32 1.0, %v3121_v39  ;;  %v2626_v39 = vmul.f32 -1.442695, %v4576_v47 }
  0xcb   : > { %v3125_v46 = vpop.eup %3124  ;;  %3150 = vrcp.f32 %v1229_v35  ;;  %v1231_v41 = vadd.f32 1.0, %v3123_v25  ;;  %v4594_v35 = vld [vmem:[%s4093_s30 + $0x2c8] sm:$0xff] }
  0xcc   : > { %v3127_v31 = vpop.eup %3126  ;;  %3152 = vrcp.f32 %v1230_v43  ;;  %v1232_v42 = vadd.f32 1.0, %v3125_v46  ;;  %v2627_v43 = vmul.f32 -1.442695, %v4582_v37  ;;  %v4600_v46 = vld [vmem:[%s4093_s30 + $0x2d0] sm:$0xff] }
  0xcd   : > { %v3129_v62 = vpop.eup %3128  ;;  %3154 = vrcp.f32 %v1231_v41  ;;  %v1233_v33 = vadd.f32 1.0, %v3127_v31  ;;  %v2628_v31 = vmul.f32 -1.442695, %v4588_v40 }
  0xce   : > { %v3131_v49 = vpop.eup %3130  ;;  %3156 = vrcp.f32 %v1232_v42  ;;  %v1234_v8 = vadd.f32 1.0, %v3129_v62  ;;  %v4606_v42 = vld [vmem:[%s4093_s30 + $0x2d8] sm:$0xff] }
  0xcf   : > { %v3133_v48 = vpop.eup %3132  ;;  %3158 = vrcp.f32 %v1233_v33  ;;  %v1235_v18 = vadd.f32 1.0, %v3131_v49  ;;  %v2629_v33 = vmul.f32 -1.442695, %v4594_v35  ;;  %v4612_v49 = vld [vmem:[%s4093_s30 + $0x2e0] sm:$0xff] }
  0xd0   : > { %v3135_v50 = vpop.eup %3134  ;;  %3160 = vrcp.f32 %v1234_v8  ;;  %v1236_v54 = vadd.f32 1.0, %v3133_v48  ;;  %v2630_v48 = vmul.f32 -1.442695, %v4600_v46 }
  0xd1   : > { %v3137_v12 = vpop.eup %3136  ;;  %3162 = vrcp.f32 %v1235_v18  ;;  %v1237_v15 = vadd.f32 1.0, %v3135_v50  ;;  %v4618_v18 = vld [vmem:[%s4093_s30 + $0x2e8] sm:$0xff] }
  0xd2   : > { %v3139_v13 = vpop.eup %3138  ;;  %3164 = vrcp.f32 %v1236_v54  ;;  %v1238_v57 = vadd.f32 1.0, %v3137_v12  ;;  %v2631_v54 = vmul.f32 -1.442695, %v4606_v42  ;;  %v4624_v12 = vld [vmem:[%s4093_s30 + $0x2f0] sm:$0xff] }
  0xd3   : > { %v3141_v58 = vpop.eup %3140  ;;  %3166 = vrcp.f32 %v1237_v15  ;;  %v1239_v59 = vadd.f32 1.0, %v3139_v13  ;;  %v2632_v13 = vmul.f32 -1.442695, %v4612_v49 }
  0xd4   : > { %v3143_v3 = vpop.eup %3142  ;;  %3168 = vrcp.f32 %v1238_v57  ;;  %v1240_v30 = vadd.f32 1.0, %v3141_v58  ;;  %v4630_v57 = vld [vmem:[%s4093_s30 + $0x2f8] sm:$0xff] }
  0xd5   : > { %v3145_v9 = vpop.eup %3144  ;;  %3170 = vrcp.f32 %v1239_v59  ;;  %v1241_v55 = vadd.f32 1.0, %v3143_v3  ;;  %v2633_v59 = vmul.f32 -1.442695, %v4618_v18 }
  0xd6   : > { %v3147_v38 = vpop.eup %3146  ;;  %v1994_v27 = vmul.f32 %v3145_v9, %v4456_v10  ;;  %3172 = vrcp.f32 %v1240_v30 }
  0xd7   : > { %v3149_v24 = vpop.eup %3148  ;;  %v1995_v26 = vmul.f32 %v3147_v38, %v4459_v19  ;;  %3174 = vrcp.f32 %v1241_v55 }
  0xd8   : > { %v3151_v32 = vpop.eup %3150  ;;  %2250 = vst [vmem:[%s4192_s17 + $0x200] sm:$0xff] %v1994_v27  ;;  %v1996_v10 = vmul.f32 %v3149_v24, %v4462_v23  ;;  %3176 = vpow2.f32 %v2620_v11 }
  0xd9   : > { %v3153_v36 = vpop.eup %3152  ;;  %2251 = vst [vmem:[%s4192_s17 + $0x208] sm:$0xff] %v1995_v26  ;;  %v1997_v19 = vmul.f32 %v3151_v32, %v4466_v2  ;;  %3178 = vpow2.f32 %v2621_v28 }
  0xda   : > { %v3155_v53 = vpop.eup %3154  ;;  %2252 = vst [vmem:[%s4192_s17 + $0x210] sm:$0xff] %v1996_v10  ;;  %v1998_v23 = vmul.f32 %v3153_v36, %v4470_v7  ;;  %3180 = vpow2.f32 %v2622_v29 }
  0xdb   : > { %v3157_v25 = vpop.eup %3156  ;;  %2253 = vst [vmem:[%s4192_s17 + $0x218] sm:$0xff] %v1997_v19  ;;  %v1999_v2 = vmul.f32 %v3155_v53, %v4475_v51  ;;  %3182 = vpow2.f32 %v2623_v44 }
  0xdc   : > { %v3159_v41 = vpop.eup %3158  ;;  %2254 = vst [vmem:[%s4192_s17 + $0x220] sm:$0xff] %v1998_v23  ;;  %v2000_v7 = vmul.f32 %v3157_v25, %v4480_v56  ;;  %3184 = vpow2.f32 %v2624_v34 }
  0xdd   : > { %v3161_v62 = vpop.eup %3160  ;;  %2255 = vst [vmem:[%s4192_s17 + $0x228] sm:$0xff] %v1999_v2  ;;  %v2001_v51 = vmul.f32 %v3159_v41, %v4486_v14  ;;  %3186 = vpow2.f32 %v2625_v1 }
  0xde   : > { %v3163_v8 = vpop.eup %3162  ;;  %2256 = vst [vmem:[%s4192_s17 + $0x230] sm:$0xff] %v2000_v7  ;;  %v2002_v56 = vmul.f32 %v3161_v62, %v4492_v17  ;;  %3188 = vpow2.f32 %v2626_v39 }
  0xdf   : > { %v3165_v50 = vpop.eup %3164  ;;  %2257 = vst [vmem:[%s4192_s17 + $0x238] sm:$0xff] %v2001_v51  ;;  %v2003_v14 = vmul.f32 %v3163_v8, %v4498_v45  ;;  %3190 = vpow2.f32 %v2627_v43  ;;  %v4648_v51 = vld [vmem:[%s4093_s30 + $0x300] sm:$0xff] }
  0xe0   : > { %v3167_v15 = vpop.eup %3166  ;;  %2258 = vst [vmem:[%s4192_s17 + $0x240] sm:$0xff] %v2002_v56  ;;  %v2004_v17 = vmul.f32 %v3165_v50, %v4504_v20  ;;  %3192 = vpow2.f32 %v2628_v31  ;;  %v2634_v20 = vmul.f32 -1.442695, %v4624_v12  ;;  %v4651_v56 = vld [vmem:[%s4093_s30 + $0x308] sm:$0xff] }
  0xe1   : > { %v3169_v58 = vpop.eup %3168  ;;  %2259 = vst [vmem:[%s4192_s17 + $0x248] sm:$0xff] %v2003_v14  ;;  %v2005_v45 = vmul.f32 %v3167_v15, %v4510_v52  ;;  %3194 = vpow2.f32 %v2629_v33  ;;  %v2635_v52 = vmul.f32 -1.442695, %v4630_v57  ;;  %v4654_v14 = vld [vmem:[%s4093_s30 + $0x310] sm:$0xff] }
  0xe2   : > { %v3171_v3 = vpop.eup %3170  ;;  %2260 = vst [vmem:[%s4192_s17 + $0x250] sm:$0xff] %v2004_v17  ;;  %v2006_v30 = vmul.f32 %v3169_v58, %v4516_v22  ;;  %3196 = vpow2.f32 %v2630_v48  ;;  %v2636_v17 = vmul.f32 -1.442695, %v4648_v51 }
  0xe3   : > { %v3173_v11 = vpop.eup %3172  ;;  %2261 = vst [vmem:[%s4192_s17 + $0x258] sm:$0xff] %v2005_v45  ;;  %v2007_v9 = vmul.f32 %v3171_v3, %v4522_v21  ;;  %3198 = vpow2.f32 %v2631_v54  ;;  %v4662_v3 = vld [vmem:[%s4093_s30 + $0x320] sm:$0xff] }
  0xe4   : > { %v3175_v55 = vpop.eup %3174  ;;  %2262 = vst [vmem:[%s4192_s17 + $0x260] sm:$0xff] %v2006_v30  ;;  %v2008_v28 = vmul.f32 %v3173_v11, %v4528_v60  ;;  %3200 = vpow2.f32 %v2632_v13  ;;  %v4658_v13 = vld [vmem:[%s4093_s30 + $0x318] sm:$0xff]  ;;  %v2638_v11 = vmul.f32 -1.442695, %v4654_v14 }
  0xe5   : > { %v3177_v38 = vpop.eup %3176  ;;  %2263 = vst [vmem:[%s4192_s17 + $0x268] sm:$0xff] %v2007_v9  ;;  %v2009_v22 = vmul.f32 %v3175_v55, %v4534_v0  ;;  %3202 = vpow2.f32 %v2633_v59  ;;  %v2637_v59 = vmul.f32 -1.442695, %v4651_v56  ;;  %v4667_v9 = vld [vmem:[%s4093_s30 + $0x328] sm:$0xff] }
  0xe6   : > { %v3179_v27 = vpop.eup %3178  ;;  %2264 = vst [vmem:[%s4192_s17 + $0x270] sm:$0xff] %v2008_v28  ;;  %v1242_v29 = vadd.f32 1.0, %v3177_v38  ;;  %3204 = vpow2.f32 %v2634_v20  ;;  %v2639_v28 = vmul.f32 -1.442695, %v4658_v13  ;;  %v4672_v38 = vld [vmem:[%s4093_s30 + $0x330] sm:$0xff] }
  0xe7   : > { %v3181_v24 = vpop.eup %3180  ;;  %2265 = vst [vmem:[%s4192_s17 + $0x278] sm:$0xff] %v2009_v22  ;;  %v1243_v21 = vadd.f32 1.0, %v3179_v27  ;;  %3206 = vpow2.f32 %v2635_v52  ;;  %v2640_v27 = vmul.f32 -1.442695, %v4662_v3 }
  0xe8   : > { %v3183_v26 = vpop.eup %3182  ;;  %3208 = vrcp.f32 %v1242_v29  ;;  %v1244_v44 = vadd.f32 1.0, %v3181_v24  ;;  %v4678_v29 = vld [vmem:[%s4093_s30 + $0x338] sm:$0xff] }
  0xe9   : > { %v3185_v32 = vpop.eup %3184  ;;  %3210 = vrcp.f32 %v1243_v21  ;;  %v1245_v60 = vadd.f32 1.0, %v3183_v26  ;;  %v2641_v21 = vmul.f32 -1.442695, %v4667_v9  ;;  %v4684_v26 = vld [vmem:[%s4093_s30 + $0x340] sm:$0xff] }
  0xea   : > { %v3187_v10 = vpop.eup %3186  ;;  %3212 = vrcp.f32 %v1244_v44  ;;  %v1246_v34 = vadd.f32 1.0, %v3185_v32  ;;  %v2642_v32 = vmul.f32 -1.442695, %v4672_v38 }
  0xeb   : > { %v3189_v36 = vpop.eup %3188  ;;  %3214 = vrcp.f32 %v1245_v60  ;;  %v1247_v0 = vadd.f32 1.0, %v3187_v10  ;;  %v4690_v60 = vld [vmem:[%s4093_s30 + $0x348] sm:$0xff] }
  0xec   : > { %v3191_v19 = vpop.eup %3190  ;;  %3216 = vrcp.f32 %v1246_v34  ;;  %v1248_v1 = vadd.f32 1.0, %v3189_v36  ;;  %v2643_v34 = vmul.f32 -1.442695, %v4678_v29  ;;  %v4696_v36 = vld [vmem:[%s4093_s30 + $0x350] sm:$0xff] }
  0xed   : > { %v3193_v53 = vpop.eup %3192  ;;  %3218 = vrcp.f32 %v1247_v0  ;;  %v1249_v23 = vadd.f32 1.0, %v3191_v19  ;;  %v2644_v19 = vmul.f32 -1.442695, %v4684_v26 }
  0xee   : > { %v3195_v39 = vpop.eup %3194  ;;  %3220 = vrcp.f32 %v1248_v1  ;;  %v1250_v25 = vadd.f32 1.0, %v3193_v53  ;;  %v4702_v1 = vld [vmem:[%s4093_s30 + $0x358] sm:$0xff] }
  0xef   : > { %v3197_v2 = vpop.eup %3196  ;;  %3222 = vrcp.f32 %v1249_v23  ;;  %v1251_v43 = vadd.f32 1.0, %v3195_v39  ;;  %v2645_v23 = vmul.f32 -1.442695, %v4690_v60  ;;  %v4708_v39 = vld [vmem:[%s4093_s30 + $0x360] sm:$0xff] }
  0xf0   : > { %v3199_v41 = vpop.eup %3198  ;;  %3224 = vrcp.f32 %v1250_v25  ;;  %v1252_v7 = vadd.f32 1.0, %v3197_v2  ;;  %v2646_v2 = vmul.f32 -1.442695, %v4696_v36 }
  0xf1   : > { %v3201_v31 = vpop.eup %3200  ;;  %3226 = vrcp.f32 %v1251_v43  ;;  %v1253_v62 = vadd.f32 1.0, %v3199_v41  ;;  %v4714_v43 = vld [vmem:[%s4093_s30 + $0x368] sm:$0xff] }
  0xf2   : > { %v3203_v33 = vpop.eup %3202  ;;  %3228 = vrcp.f32 %v1252_v7  ;;  %v1254_v8 = vadd.f32 1.0, %v3201_v31  ;;  %v2647_v7 = vmul.f32 -1.442695, %v4702_v1  ;;  %v4720_v31 = vld [vmem:[%s4093_s30 + $0x370] sm:$0xff] }
  0xf3   : > { %v3205_v48 = vpop.eup %3204  ;;  %3230 = vrcp.f32 %v1253_v62  ;;  %v1255_v50 = vadd.f32 1.0, %v3203_v33  ;;  %v2648_v33 = vmul.f32 -1.442695, %v4708_v39 }
  0xf4   : > { %v3207_v54 = vpop.eup %3206  ;;  %3232 = vrcp.f32 %v1254_v8  ;;  %v1256_v15 = vadd.f32 1.0, %v3205_v48  ;;  %v4726_v8 = vld [vmem:[%s4093_s30 + $0x378] sm:$0xff] }
  0xf5   : > { %v3209_v58 = vpop.eup %3208  ;;  %3234 = vrcp.f32 %v1255_v50  ;;  %v1257_v45 = vadd.f32 1.0, %v3207_v54  ;;  %v2649_v50 = vmul.f32 -1.442695, %v4714_v43 }
  0xf6   : > { %v3211_v30 = vpop.eup %3210  ;;  %v2010_v20 = vmul.f32 %v3209_v58, %v4552_v61  ;;  %3236 = vrcp.f32 %v1256_v15 }
  0xf7   : > { %v3213_v52 = vpop.eup %3212  ;;  %v2011_v55 = vmul.f32 %v3211_v30, %v4555_v4  ;;  %3238 = vrcp.f32 %v1257_v45 }
  0xf8   : > { %v3215_v22 = vpop.eup %3214  ;;  %2266 = vst [vmem:[%s4192_s17 + $0x280] sm:$0xff] %v2010_v20  ;;  %v2012_v61 = vmul.f32 %v3213_v52, %v4558_v5  ;;  %3240 = vpow2.f32 %v2636_v17 }
  0xf9   : > { %v3217_v24 = vpop.eup %3216  ;;  %2267 = vst [vmem:[%s4192_s17 + $0x288] sm:$0xff] %v2011_v55  ;;  %v2013_v4 = vmul.f32 %v3215_v22, %v4562_v63  ;;  %3242 = vpow2.f32 %v2637_v59 }
  0xfa   : > { %v3219_v44 = vpop.eup %3218  ;;  %2268 = vst [vmem:[%s4192_s17 + $0x290] sm:$0xff] %v2012_v61  ;;  %v2014_v5 = vmul.f32 %v3217_v24, %v4566_v16  ;;  %3244 = vpow2.f32 %v2638_v11 }
  0xfb   : > { %v3221_v10 = vpop.eup %3220  ;;  %2269 = vst [vmem:[%s4192_s17 + $0x298] sm:$0xff] %v2013_v4  ;;  %v2015_v63 = vmul.f32 %v3219_v44, %v4571_v6  ;;  %3246 = vpow2.f32 %v2639_v28 }
  0xfc   : > { %v3223_v0 = vpop.eup %3222  ;;  %2270 = vst [vmem:[%s4192_s17 + $0x2a0] sm:$0xff] %v2014_v5  ;;  %v2016_v16 = vmul.f32 %v3221_v10, %v4576_v47  ;;  %3248 = vpow2.f32 %v2640_v27 }
  0xfd   : > { %v3225_v53 = vpop.eup %3224  ;;  %2271 = vst [vmem:[%s4192_s17 + $0x2a8] sm:$0xff] %v2015_v63  ;;  %v2017_v6 = vmul.f32 %v3223_v0, %v4582_v37  ;;  %3250 = vpow2.f32 %v2641_v21 }
  0xfe   : > { %v3227_v25 = vpop.eup %3226  ;;  %2272 = vst [vmem:[%s4192_s17 + $0x2b0] sm:$0xff] %v2016_v16  ;;  %v2018_v47 = vmul.f32 %v3225_v53, %v4588_v40  ;;  %3252 = vpow2.f32 %v2642_v32 }
  0xff   : > { %v3229_v41 = vpop.eup %3228  ;;  %2273 = vst [vmem:[%s4192_s17 + $0x2b8] sm:$0xff] %v2017_v6  ;;  %v2019_v37 = vmul.f32 %v3227_v25, %v4594_v35  ;;  %3254 = vpow2.f32 %v2643_v34  ;;  %v4744_v6 = vld [vmem:[%s4093_s30 + $0x380] sm:$0xff] }
 0x100   : > { %v3231_v62 = vpop.eup %3230  ;;  %2274 = vst [vmem:[%s4192_s17 + $0x2c0] sm:$0xff] %v2018_v47  ;;  %v2020_v40 = vmul.f32 %v3229_v41, %v4600_v46  ;;  %3256 = vpow2.f32 %v2644_v19  ;;  %v2650_v46 = vmul.f32 -1.442695, %v4720_v31  ;;  %v4747_v47 = vld [vmem:[%s4093_s30 + $0x388] sm:$0xff] }
 0x101   : > { %v3233_v48 = vpop.eup %3232  ;;  %2275 = vst [vmem:[%s4192_s17 + $0x2c8] sm:$0xff] %v2019_v37  ;;  %v2021_v35 = vmul.f32 %v3231_v62, %v4606_v42  ;;  %3258 = vpow2.f32 %v2645_v23  ;;  %v2651_v42 = vmul.f32 -1.442695, %v4726_v8  ;;  %v4750_v37 = vld [vmem:[%s4093_s30 + $0x390] sm:$0xff] }
 0x102   : > { %v3235_v54 = vpop.eup %3234  ;;  %2276 = vst [vmem:[%s4192_s17 + $0x2d0] sm:$0xff] %v2020_v40  ;;  %v2022_v15 = vmul.f32 %v3233_v48, %v4612_v49  ;;  %3260 = vpow2.f32 %v2646_v2  ;;  %v2652_v40 = vmul.f32 -1.442695, %v4744_v6 }
 0x103   : > { %v3237_v17 = vpop.eup %3236  ;;  %2277 = vst [vmem:[%s4192_s17 + $0x2d8] sm:$0xff] %v2021_v35  ;;  %v2023_v58 = vmul.f32 %v3235_v54, %v4618_v18  ;;  %3262 = vpow2.f32 %v2647_v7  ;;  %v4758_v54 = vld [vmem:[%s4093_s30 + $0x3a0] sm:$0xff] }
 0x104   : > { %v3239_v45 = vpop.eup %3238  ;;  %2278 = vst [vmem:[%s4192_s17 + $0x2e0] sm:$0xff] %v2022_v15  ;;  %v2024_v59 = vmul.f32 %v3237_v17, %v4624_v12  ;;  %3264 = vpow2.f32 %v2648_v33  ;;  %v4754_v33 = vld [vmem:[%s4093_s30 + $0x398] sm:$0xff]  ;;  %v2654_v17 = vmul.f32 -1.442695, %v4750_v37 }
 0x105   : > { %v3241_v30 = vpop.eup %3240  ;;  %2279 = vst [vmem:[%s4192_s17 + $0x2e8] sm:$0xff] %v2023_v58  ;;  %v2025_v49 = vmul.f32 %v3239_v45, %v4630_v57  ;;  %3266 = vpow2.f32 %v2649_v50  ;;  %v2653_v50 = vmul.f32 -1.442695, %v4747_v47  ;;  %v4763_v58 = vld [vmem:[%s4093_s30 + $0x3a8] sm:$0xff] }
 0x106   : > { %v3243_v20 = vpop.eup %3242  ;;  %2280 = vst [vmem:[%s4192_s17 + $0x2f0] sm:$0xff] %v2024_v59  ;;  %v1258_v11 = vadd.f32 1.0, %v3241_v30  ;;  %3268 = vpow2.f32 %v2650_v46  ;;  %v2655_v59 = vmul.f32 -1.442695, %v4754_v33  ;;  %v4768_v30 = vld [vmem:[%s4093_s30 + $0x3b0] sm:$0xff] }
 0x107   : > { %v3245_v52 = vpop.eup %3244  ;;  %2281 = vst [vmem:[%s4192_s17 + $0x2f8] sm:$0xff] %v2025_v49  ;;  %v1259_v18 = vadd.f32 1.0, %v3243_v20  ;;  %3270 = vpow2.f32 %v2651_v42  ;;  %v2656_v20 = vmul.f32 -1.442695, %v4758_v54 }
 0x108   : > { %v3247_v55 = vpop.eup %3246  ;;  %3272 = vrcp.f32 %v1258_v11  ;;  %v1260_v28 = vadd.f32 1.0, %v3245_v52  ;;  %v4774_v11 = vld [vmem:[%s4093_s30 + $0x3b8] sm:$0xff] }
 0x109   : > { %v3249_v22 = vpop.eup %3248  ;;  %3274 = vrcp.f32 %v1259_v18  ;;  %v1261_v12 = vadd.f32 1.0, %v3247_v55  ;;  %v2657_v18 = vmul.f32 -1.442695, %v4763_v58  ;;  %v4780_v55 = vld [vmem:[%s4093_s30 + $0x3c0] sm:$0xff] }
 0x10a   : > { %v3251_v61 = vpop.eup %3250  ;;  %3276 = vrcp.f32 %v1260_v28  ;;  %v1262_v27 = vadd.f32 1.0, %v3249_v22  ;;  %v2658_v22 = vmul.f32 -1.442695, %v4768_v30 }
 0x10b   : > { %v3253_v24 = vpop.eup %3252  ;;  %3278 = vrcp.f32 %v1261_v12  ;;  %v1263_v57 = vadd.f32 1.0, %v3251_v61  ;;  %v4786_v12 = vld [vmem:[%s4093_s30 + $0x3c8] sm:$0xff] }
 0x10c   : > { %v3255_v4 = vpop.eup %3254  ;;  %3280 = vrcp.f32 %v1262_v27  ;;  %v1264_v21 = vadd.f32 1.0, %v3253_v24  ;;  %v2659_v27 = vmul.f32 -1.442695, %v4774_v11  ;;  %v4792_v24 = vld [vmem:[%s4093_s30 + $0x3d0] sm:$0xff] }
 0x10d   : > { %v3257_v44 = vpop.eup %3256  ;;  %3282 = vrcp.f32 %v1263_v57  ;;  %v1265_v5 = vadd.f32 1.0, %v3255_v4  ;;  %v2660_v4 = vmul.f32 -1.442695, %v4780_v55 }
 0x10e   : > { %v3259_v32 = vpop.eup %3258  ;;  %3284 = vrcp.f32 %v1264_v21  ;;  %v1266_v10 = vadd.f32 1.0, %v3257_v44  ;;  %v4798_v21 = vld [vmem:[%s4093_s30 + $0x3d8] sm:$0xff] }
 0x10f   : > { %v3261_v63 = vpop.eup %3260  ;;  %3286 = vrcp.f32 %v1265_v5  ;;  %v1267_v34 = vadd.f32 1.0, %v3259_v32  ;;  %v2661_v5 = vmul.f32 -1.442695, %v4786_v12  ;;  %v4804_v32 = vld [vmem:[%s4093_s30 + $0x3e0] sm:$0xff] }
 0x110   : > { %v3263_v0 = vpop.eup %3262  ;;  %3288 = vrcp.f32 %v1266_v10  ;;  %v1268_v16 = vadd.f32 1.0, %v3261_v63  ;;  %v2662_v63 = vmul.f32 -1.442695, %v4792_v24 }
 0x111   : > { %v3265_v19 = vpop.eup %3264  ;;  %3290 = vrcp.f32 %v1267_v34  ;;  %v1269_v53 = vadd.f32 1.0, %v3263_v0  ;;  %v4810_v34 = vld [vmem:[%s4093_s30 + $0x3e8] sm:$0xff] }
 0x112   : > { %v3267_v23 = vpop.eup %3266  ;;  %3292 = vrcp.f32 %v1268_v16  ;;  %v1270_v25 = vadd.f32 1.0, %v3265_v19  ;;  %v2663_v16 = vmul.f32 -1.442695, %v4798_v21  ;;  %v4816_v19 = vld [vmem:[%s4093_s30 + $0x3f0] sm:$0xff] }
 0x113   : > { %v3269_v2 = vpop.eup %3268  ;;  %3294 = vrcp.f32 %v1269_v53  ;;  %v1271_v41 = vadd.f32 1.0, %v3267_v23  ;;  %v2664_v23 = vmul.f32 -1.442695, %v4804_v32 }
 0x114   : > { %v3271_v7 = vpop.eup %3270  ;;  %3296 = vrcp.f32 %v1270_v25  ;;  %v1272_v62 = vadd.f32 1.0, %v3269_v2  ;;  %v4822_v25 = vld [vmem:[%s4093_s30 + $0x3f8] sm:$0xff] }
 0x115   : > { %v3273_v48 = vpop.eup %3272  ;;  %3298 = vrcp.f32 %v1271_v41  ;;  %v1273_v35 = vadd.f32 1.0, %v3271_v7  ;;  %v2665_v41 = vmul.f32 -1.442695, %v4810_v34 }
 0x116   : > { %v3275_v15 = vpop.eup %3274  ;;  %v2026_v46 = vmul.f32 %v3273_v48, %v4648_v51  ;;  %3300 = vrcp.f32 %v1272_v62 }
 0x117   : > { %v3277_v42 = vpop.eup %3276  ;;  %v2027_v45 = vmul.f32 %v3275_v15, %v4651_v56  ;;  %3302 = vrcp.f32 %v1273_v35 }
 0x118   : > { %v3279_v49 = vpop.eup %3278  ;;  %2282 = vst [vmem:[%s4192_s17 + $0x300] sm:$0xff] %v2026_v46  ;;  %v2028_v51 = vmul.f32 %v3277_v42, %v4654_v14  ;;  %3304 = vpow2.f32 %v2652_v40 }
 0x119   : > { %v3281_v52 = vpop.eup %3280  ;;  %2283 = vst [vmem:[%s4192_s17 + $0x308] sm:$0xff] %v2027_v45  ;;  %v2029_v56 = vmul.f32 %v3279_v49, %v4658_v13  ;;  %3306 = vpow2.f32 %v2653_v50 }
 0x11a   : > { %v3283_v28 = vpop.eup %3282  ;;  %2284 = vst [vmem:[%s4192_s17 + $0x310] sm:$0xff] %v2028_v51  ;;  %v2030_v14 = vmul.f32 %v3281_v52, %v4662_v3  ;;  %3308 = vpow2.f32 %v2654_v17 }
 0x11b   : > { %v3285_v61 = vpop.eup %3284  ;;  %2285 = vst [vmem:[%s4192_s17 + $0x318] sm:$0xff] %v2029_v56  ;;  %v2031_v13 = vmul.f32 %v3283_v28, %v4667_v9  ;;  %3310 = vpow2.f32 %v2655_v59 }
 0x11c   : > { %v3287_v57 = vpop.eup %3286  ;;  %2286 = vst [vmem:[%s4192_s17 + $0x320] sm:$0xff] %v2030_v14  ;;  %v2032_v3 = vmul.f32 %v3285_v61, %v4672_v38  ;;  %3312 = vpow2.f32 %v2656_v20 }
 0x11d   : > { %v3289_v44 = vpop.eup %3288  ;;  %2287 = vst [vmem:[%s4192_s17 + $0x328] sm:$0xff] %v2031_v13  ;;  %v2033_v9 = vmul.f32 %v3287_v57, %v4678_v29  ;;  %3314 = vpow2.f32 %v2657_v18 }
 0x11e   : > { %v3291_v10 = vpop.eup %3290  ;;  %2288 = vst [vmem:[%s4192_s17 + $0x330] sm:$0xff] %v2032_v3  ;;  %v2034_v38 = vmul.f32 %v3289_v44, %v4684_v26  ;;  %3316 = vpow2.f32 %v2658_v22 }
 0x11f   : > { %v3293_v0 = vpop.eup %3292  ;;  %2289 = vst [vmem:[%s4192_s17 + $0x338] sm:$0xff] %v2033_v9  ;;  %v2035_v29 = vmul.f32 %v3291_v10, %v4690_v60  ;;  %3318 = vpow2.f32 %v2659_v27  ;;  %v4840_v9 = vld [vmem:[%s4093_s30 + $0x400] sm:$0xff] }
 0x120   : > { %v3295_v53 = vpop.eup %3294  ;;  %2290 = vst [vmem:[%s4192_s17 + $0x340] sm:$0xff] %v2034_v38  ;;  %v2036_v26 = vmul.f32 %v3293_v0, %v4696_v36  ;;  %3320 = vpow2.f32 %v2660_v4  ;;  %v2666_v36 = vmul.f32 -1.442695, %v4816_v19  ;;  %v4843_v38 = vld [vmem:[%s4093_s30 + $0x408] sm:$0xff] }
 0x121   : > { %v3297_v2 = vpop.eup %3296  ;;  %2291 = vst [vmem:[%s4192_s17 + $0x348] sm:$0xff] %v2035_v29  ;;  %v2037_v60 = vmul.f32 %v3295_v53, %v4702_v1  ;;  %3322 = vpow2.f32 %v2661_v5  ;;  %v2667_v1 = vmul.f32 -1.442695, %v4822_v25  ;;  %v4846_v29 = vld [vmem:[%s4093_s30 + $0x410] sm:$0xff] }
 0x122   : > { %v3299_v7 = vpop.eup %3298  ;;  %2292 = vst [vmem:[%s4192_s17 + $0x350] sm:$0xff] %v2036_v26  ;;  %v2038_v62 = vmul.f32 %v3297_v2, %v4708_v39  ;;  %3324 = vpow2.f32 %v2662_v63  ;;  %v2668_v26 = vmul.f32 -1.442695, %v4840_v9 }
 0x123   : > { %v3301_v40 = vpop.eup %3300  ;;  %2293 = vst [vmem:[%s4192_s17 + $0x358] sm:$0xff] %v2037_v60  ;;  %v2039_v48 = vmul.f32 %v3299_v7, %v4714_v43  ;;  %3326 = vpow2.f32 %v2663_v16  ;;  %v4854_v7 = vld [vmem:[%s4093_s30 + $0x420] sm:$0xff] }
 0x124   : > { %v3303_v35 = vpop.eup %3302  ;;  %2294 = vst [vmem:[%s4192_s17 + $0x360] sm:$0xff] %v2038_v62  ;;  %v2040_v50 = vmul.f32 %v3301_v40, %v4720_v31  ;;  %3328 = vpow2.f32 %v2664_v23  ;;  %v4850_v23 = vld [vmem:[%s4093_s30 + $0x418] sm:$0xff]  ;;  %v2670_v40 = vmul.f32 -1.442695, %v4846_v29 }
 0x125   : > { %v3305_v15 = vpop.eup %3304  ;;  %2295 = vst [vmem:[%s4192_s17 + $0x368] sm:$0xff] %v2039_v48  ;;  %v2041_v39 = vmul.f32 %v3303_v35, %v4726_v8  ;;  %3330 = vpow2.f32 %v2665_v41  ;;  %v2669_v41 = vmul.f32 -1.442695, %v4843_v38  ;;  %v4859_v48 = vld [vmem:[%s4093_s30 + $0x428] sm:$0xff] }
 0x126   : > { %v3307_v46 = vpop.eup %3306  ;;  %2296 = vst [vmem:[%s4192_s17 + $0x370] sm:$0xff] %v2040_v50  ;;  %v1274_v17 = vadd.f32 1.0, %v3305_v15  ;;  %3332 = vpow2.f32 %v2666_v36  ;;  %v2671_v50 = vmul.f32 -1.442695, %v4850_v23  ;;  %v4864_v15 = vld [vmem:[%s4093_s30 + $0x430] sm:$0xff] }
 0x127   : > { %v3309_v42 = vpop.eup %3308  ;;  %2297 = vst [vmem:[%s4192_s17 + $0x378] sm:$0xff] %v2041_v39  ;;  %v1275_v43 = vadd.f32 1.0, %v3307_v46  ;;  %3334 = vpow2.f32 %v2667_v1  ;;  %v2672_v46 = vmul.f32 -1.442695, %v4854_v7 }
 0x128   : > { %v3311_v45 = vpop.eup %3310  ;;  %3336 = vrcp.f32 %v1274_v17  ;;  %v1276_v59 = vadd.f32 1.0, %v3309_v42  ;;  %v4870_v17 = vld [vmem:[%s4093_s30 + $0x438] sm:$0xff] }
 0x129   : > { %v3313_v49 = vpop.eup %3312  ;;  %3338 = vrcp.f32 %v1275_v43  ;;  %v1277_v31 = vadd.f32 1.0, %v3311_v45  ;;  %v2673_v43 = vmul.f32 -1.442695, %v4859_v48  ;;  %v4876_v45 = vld [vmem:[%s4093_s30 + $0x440] sm:$0xff] }
 0x12a   : > { %v3315_v51 = vpop.eup %3314  ;;  %3340 = vrcp.f32 %v1276_v59  ;;  %v1278_v20 = vadd.f32 1.0, %v3313_v49  ;;  %v2674_v49 = vmul.f32 -1.442695, %v4864_v15 }
 0x12b   : > { %v3317_v52 = vpop.eup %3316  ;;  %3342 = vrcp.f32 %v1277_v31  ;;  %v1279_v8 = vadd.f32 1.0, %v3315_v51  ;;  %v4882_v31 = vld [vmem:[%s4093_s30 + $0x448] sm:$0xff] }
 0x12c   : > { %v3319_v56 = vpop.eup %3318  ;;  %3344 = vrcp.f32 %v1278_v20  ;;  %v1280_v18 = vadd.f32 1.0, %v3317_v52  ;;  %v2675_v20 = vmul.f32 -1.442695, %v4870_v17  ;;  %v4888_v52 = vld [vmem:[%s4093_s30 + $0x450] sm:$0xff] }
 0x12d   : > { %v3321_v28 = vpop.eup %3320  ;;  %3346 = vrcp.f32 %v1279_v8  ;;  %v1281_v14 = vadd.f32 1.0, %v3319_v56  ;;  %v2676_v56 = vmul.f32 -1.442695, %v4876_v45 }
 0x12e   : > { %v3323_v22 = vpop.eup %3322  ;;  %3348 = vrcp.f32 %v1280_v18  ;;  %v1282_v61 = vadd.f32 1.0, %v3321_v28  ;;  %v4894_v18 = vld [vmem:[%s4093_s30 + $0x458] sm:$0xff] }
 0x12f   : > { %v3325_v13 = vpop.eup %3324  ;;  %3350 = vrcp.f32 %v1281_v14  ;;  %v1283_v27 = vadd.f32 1.0, %v3323_v22  ;;  %v2677_v14 = vmul.f32 -1.442695, %v4882_v31  ;;  %v4900_v22 = vld [vmem:[%s4093_s30 + $0x460] sm:$0xff] }
 0x130   : > { %v3327_v57 = vpop.eup %3326  ;;  %3352 = vrcp.f32 %v1282_v61  ;;  %v1284_v3 = vadd.f32 1.0, %v3325_v13  ;;  %v2678_v13 = vmul.f32 -1.442695, %v4888_v52 }
 0x131   : > { %v3329_v4 = vpop.eup %3328  ;;  %3354 = vrcp.f32 %v1283_v27  ;;  %v1285_v44 = vadd.f32 1.0, %v3327_v57  ;;  %v4906_v27 = vld [vmem:[%s4093_s30 + $0x468] sm:$0xff] }
 0x132   : > { %v3331_v5 = vpop.eup %3330  ;;  %3356 = vrcp.f32 %v1284_v3  ;;  %v1286_v10 = vadd.f32 1.0, %v3329_v4  ;;  %v2679_v3 = vmul.f32 -1.442695, %v4894_v18  ;;  %v4912_v4 = vld [vmem:[%s4093_s30 + $0x470] sm:$0xff] }
 0x133   : > { %v3333_v63 = vpop.eup %3332  ;;  %3358 = vrcp.f32 %v1285_v44  ;;  %v1287_v0 = vadd.f32 1.0, %v3331_v5  ;;  %v2680_v5 = vmul.f32 -1.442695, %v4900_v22 }
 0x134   : > { %v3335_v16 = vpop.eup %3334  ;;  %3360 = vrcp.f32 %v1286_v10  ;;  %v1288_v53 = vadd.f32 1.0, %v3333_v63  ;;  %v4918_v10 = vld [vmem:[%s4093_s30 + $0x478] sm:$0xff] }
 0x135   : > { %v3337_v2 = vpop.eup %3336  ;;  %3362 = vrcp.f32 %v1287_v0  ;;  %v1289_v60 = vadd.f32 1.0, %v3335_v16  ;;  %v2681_v0 = vmul.f32 -1.442695, %v4906_v27 }
 0x136   : > { %v3339_v62 = vpop.eup %3338  ;;  %v2042_v36 = vmul.f32 %v3337_v2, %v4744_v6  ;;  %3364 = vrcp.f32 %v1288_v53 }
 0x137   : > { %v3341_v1 = vpop.eup %3340  ;;  %v2043_v35 = vmul.f32 %v3339_v62, %v4747_v47  ;;  %3366 = vrcp.f32 %v1289_v60 }
 0x138   : > { %v3343_v39 = vpop.eup %3342  ;;  %2298 = vst [vmem:[%s4192_s17 + $0x380] sm:$0xff] %v2042_v36  ;;  %v2044_v6 = vmul.f32 %v3341_v1, %v4750_v37  ;;  %3368 = vpow2.f32 %v2668_v26 }
 0x139   : > { %v3345_v42 = vpop.eup %3344  ;;  %2299 = vst [vmem:[%s4192_s17 + $0x388] sm:$0xff] %v2043_v35  ;;  %v2045_v47 = vmul.f32 %v3343_v39, %v4754_v33  ;;  %3370 = vpow2.f32 %v2669_v41 }
 0x13a   : > { %v3347_v59 = vpop.eup %3346  ;;  %2300 = vst [vmem:[%s4192_s17 + $0x390] sm:$0xff] %v2044_v6  ;;  %v2046_v37 = vmul.f32 %v3345_v42, %v4758_v54  ;;  %3372 = vpow2.f32 %v2670_v40 }
 0x13b   : > { %v3349_v51 = vpop.eup %3348  ;;  %2301 = vst [vmem:[%s4192_s17 + $0x398] sm:$0xff] %v2045_v47  ;;  %v2047_v33 = vmul.f32 %v3347_v59, %v4763_v58  ;;  %3374 = vpow2.f32 %v2671_v50 }
 0x13c   : > { %v3351_v8 = vpop.eup %3350  ;;  %2302 = vst [vmem:[%s4192_s17 + $0x3a0] sm:$0xff] %v2046_v37  ;;  %v2048_v54 = vmul.f32 %v3349_v51, %v4768_v30  ;;  %3376 = vpow2.f32 %v2672_v46 }
 0x13d   : > { %v3353_v28 = vpop.eup %3352  ;;  %2303 = vst [vmem:[%s4192_s17 + $0x3a8] sm:$0xff] %v2047_v33  ;;  %v2049_v58 = vmul.f32 %v3351_v8, %v4774_v11  ;;  %3378 = vpow2.f32 %v2673_v43 }
 0x13e   : > { %v3355_v61 = vpop.eup %3354  ;;  %2304 = vst [vmem:[%s4192_s17 + $0x3b0] sm:$0xff] %v2048_v54  ;;  %v2050_v30 = vmul.f32 %v3353_v28, %v4780_v55  ;;  %3380 = vpow2.f32 %v2674_v49 }
 0x13f   : > { %v3357_v57 = vpop.eup %3356  ;;  %2305 = vst [vmem:[%s4192_s17 + $0x3b8] sm:$0xff] %v2049_v58  ;;  %v2051_v11 = vmul.f32 %v3355_v61, %v4786_v12  ;;  %3382 = vpow2.f32 %v2675_v20  ;;  %v4936_v58 = vld [vmem:[%s4093_s30 + $0x480] sm:$0xff] }
 0x140   : > { %v3359_v44 = vpop.eup %3358  ;;  %2306 = vst [vmem:[%s4192_s17 + $0x3c0] sm:$0xff] %v2050_v30  ;;  %v2052_v55 = vmul.f32 %v3357_v57, %v4792_v24  ;;  %3384 = vpow2.f32 %v2676_v56  ;;  %v2682_v24 = vmul.f32 -1.442695, %v4912_v4  ;;  %v4939_v30 = vld [vmem:[%s4093_s30 + $0x488] sm:$0xff] }
 0x141   : > { %v3361_v63 = vpop.eup %3360  ;;  %2307 = vst [vmem:[%s4192_s17 + $0x3c8] sm:$0xff] %v2051_v11  ;;  %v2053_v12 = vmul.f32 %v3359_v44, %v4798_v21  ;;  %3386 = vpow2.f32 %v2677_v14  ;;  %v2683_v21 = vmul.f32 -1.442695, %v4918_v10  ;;  %v4942_v11 = vld [vmem:[%s4093_s30 + $0x490] sm:$0xff] }
 0x142   : > { %v3363_v16 = vpop.eup %3362  ;;  %2308 = vst [vmem:[%s4192_s17 + $0x3d0] sm:$0xff] %v2052_v55  ;;  %v2054_v53 = vmul.f32 %v3361_v63, %v4804_v32  ;;  %3388 = vpow2.f32 %v2678_v13  ;;  %v2684_v55 = vmul.f32 -1.442695, %v4936_v58 }
 0x143   : > { %v3365_v26 = vpop.eup %3364  ;;  %2309 = vst [vmem:[%s4192_s17 + $0x3d8] sm:$0xff] %v2053_v12  ;;  %v2055_v2 = vmul.f32 %v3363_v16, %v4810_v34  ;;  %3390 = vpow2.f32 %v2679_v3  ;;  %v4950_v16 = vld [vmem:[%s4093_s30 + $0x4a0] sm:$0xff] }
 0x144   : > { %v3367_v60 = vpop.eup %3366  ;;  %2310 = vst [vmem:[%s4192_s17 + $0x3e0] sm:$0xff] %v2054_v53  ;;  %v2056_v41 = vmul.f32 %v3365_v26, %v4816_v19  ;;  %3392 = vpow2.f32 %v2680_v5  ;;  %v4946_v5 = vld [vmem:[%s4093_s30 + $0x498] sm:$0xff]  ;;  %v2686_v26 = vmul.f32 -1.442695, %v4942_v11 }
 0x145   : > { %v3369_v62 = vpop.eup %3368  ;;  %2311 = vst [vmem:[%s4192_s17 + $0x3e8] sm:$0xff] %v2055_v2  ;;  %v2057_v32 = vmul.f32 %v3367_v60, %v4822_v25  ;;  %3394 = vpow2.f32 %v2681_v0  ;;  %v2685_v0 = vmul.f32 -1.442695, %v4939_v30  ;;  %v4955_v2 = vld [vmem:[%s4093_s30 + $0x4a8] sm:$0xff] }
 0x146   : > { %v3371_v36 = vpop.eup %3370  ;;  %2312 = vst [vmem:[%s4192_s17 + $0x3f0] sm:$0xff] %v2056_v41  ;;  %v1290_v40 = vadd.f32 1.0, %v3369_v62  ;;  %3396 = vpow2.f32 %v2682_v24  ;;  %v2687_v41 = vmul.f32 -1.442695, %v4946_v5  ;;  %v4960_v62 = vld [vmem:[%s4093_s30 + $0x4b0] sm:$0xff] }
 0x147   : > { %v3373_v1 = vpop.eup %3372  ;;  %2313 = vst [vmem:[%s4192_s17 + $0x3f8] sm:$0xff] %v2057_v32  ;;  %v1291_v34 = vadd.f32 1.0, %v3371_v36  ;;  %3398 = vpow2.f32 %v2683_v21  ;;  %v2688_v36 = vmul.f32 -1.442695, %v4950_v16 }
 0x148   : > { %v3375_v35 = vpop.eup %3374  ;;  %3400 = vrcp.f32 %v1290_v40  ;;  %v1292_v50 = vadd.f32 1.0, %v3373_v1  ;;  %v4966_v40 = vld [vmem:[%s4093_s30 + $0x4b8] sm:$0xff] }
 0x149   : > { %v3377_v39 = vpop.eup %3376  ;;  %3402 = vrcp.f32 %v1291_v34  ;;  %v1293_v19 = vadd.f32 1.0, %v3375_v35  ;;  %v2689_v34 = vmul.f32 -1.442695, %v4955_v2  ;;  %v4972_v35 = vld [vmem:[%s4093_s30 + $0x4c0] sm:$0xff] }
 0x14a   : > { %v3379_v6 = vpop.eup %3378  ;;  %3404 = vrcp.f32 %v1292_v50  ;;  %v1294_v46 = vadd.f32 1.0, %v3377_v39  ;;  %v2690_v39 = vmul.f32 -1.442695, %v4960_v62 }
 0x14b   : > { %v3381_v42 = vpop.eup %3380  ;;  %3406 = vrcp.f32 %v1293_v19  ;;  %v1295_v25 = vadd.f32 1.0, %v3379_v6  ;;  %v4978_v19 = vld [vmem:[%s4093_s30 + $0x4c8] sm:$0xff] }
 0x14c   : > { %v3383_v47 = vpop.eup %3382  ;;  %3408 = vrcp.f32 %v1294_v46  ;;  %v1296_v43 = vadd.f32 1.0, %v3381_v42  ;;  %v2691_v46 = vmul.f32 -1.442695, %v4966_v40  ;;  %v4984_v42 = vld [vmem:[%s4093_s30 + $0x4d0] sm:$0xff] }
 0x14d   : > { %v3385_v59 = vpop.eup %3384  ;;  %3410 = vrcp.f32 %v1295_v25  ;;  %v1297_v37 = vadd.f32 1.0, %v3383_v47  ;;  %v2692_v47 = vmul.f32 -1.442695, %v4972_v35 }
 0x14e   : > { %v3387_v49 = vpop.eup %3386  ;;  %3412 = vrcp.f32 %v1296_v43  ;;  %v1298_v51 = vadd.f32 1.0, %v3385_v59  ;;  %v4990_v43 = vld [vmem:[%s4093_s30 + $0x4d8] sm:$0xff] }
 0x14f   : > { %v3389_v33 = vpop.eup %3388  ;;  %3414 = vrcp.f32 %v1297_v37  ;;  %v1299_v20 = vadd.f32 1.0, %v3387_v49  ;;  %v2693_v37 = vmul.f32 -1.442695, %v4978_v19  ;;  %v4996_v49 = vld [vmem:[%s4093_s30 + $0x4e0] sm:$0xff] }
 0x150   : > { %v3391_v8 = vpop.eup %3390  ;;  %3416 = vrcp.f32 %v1298_v51  ;;  %v1300_v54 = vadd.f32 1.0, %v3389_v33  ;;  %v2694_v33 = vmul.f32 -1.442695, %v4984_v42 }
 0x151   : > { %v3393_v56 = vpop.eup %3392  ;;  %3418 = vrcp.f32 %v1299_v20  ;;  %v1301_v28 = vadd.f32 1.0, %v3391_v8  ;;  %v5002_v20 = vld [vmem:[%s4093_s30 + $0x4e8] sm:$0xff] }
 0x152   : > { %v3395_v14 = vpop.eup %3394  ;;  %3420 = vrcp.f32 %v1300_v54  ;;  %v1302_v61 = vadd.f32 1.0, %v3393_v56  ;;  %v2695_v54 = vmul.f32 -1.442695, %v4990_v43  ;;  %v5008_v56 = vld [vmem:[%s4093_s30 + $0x4f0] sm:$0xff] }
 0x153   : > { %v3397_v13 = vpop.eup %3396  ;;  %3422 = vrcp.f32 %v1301_v28  ;;  %v1303_v57 = vadd.f32 1.0, %v3395_v14  ;;  %v2696_v14 = vmul.f32 -1.442695, %v4996_v49 }
 0x154   : > { %v3399_v3 = vpop.eup %3398  ;;  %3424 = vrcp.f32 %v1302_v61  ;;  %v1304_v44 = vadd.f32 1.0, %v3397_v13  ;;  %v5014_v61 = vld [vmem:[%s4093_s30 + $0x4f8] sm:$0xff] }
 0x155   : > { %v3401_v63 = vpop.eup %3400  ;;  %3426 = vrcp.f32 %v1303_v57  ;;  %v1305_v12 = vadd.f32 1.0, %v3399_v3  ;;  %v2697_v57 = vmul.f32 -1.442695, %v5002_v20 }
 0x156   : > { %v3403_v53 = vpop.eup %3402  ;;  %v2058_v24 = vmul.f32 %v3401_v63, %v4840_v9  ;;  %3428 = vrcp.f32 %v1304_v44 }
 0x157   : > { %v3405_v21 = vpop.eup %3404  ;;  %v2059_v60 = vmul.f32 %v3403_v53, %v4843_v38  ;;  %3430 = vrcp.f32 %v1305_v12 }
 0x158   : > { %v3407_v32 = vpop.eup %3406  ;;  %2314 = vst [vmem:[%s4192_s17 + $0x400] sm:$0xff] %v2058_v24  ;;  %v2060_v9 = vmul.f32 %v3405_v21, %v4846_v29  ;;  %3432 = vpow2.f32 %v2684_v55 }
 0x159   : > { %v3409_v1 = vpop.eup %3408  ;;  %2315 = vst [vmem:[%s4192_s17 + $0x408] sm:$0xff] %v2059_v60  ;;  %v2061_v38 = vmul.f32 %v3407_v32, %v4850_v23  ;;  %3434 = vpow2.f32 %v2685_v0 }
 0x15a   : > { %v3411_v50 = vpop.eup %3410  ;;  %2316 = vst [vmem:[%s4192_s17 + $0x410] sm:$0xff] %v2060_v9  ;;  %v2062_v29 = vmul.f32 %v3409_v1, %v4854_v7  ;;  %3436 = vpow2.f32 %v2686_v26 }
 0x15b   : > { %v3413_v6 = vpop.eup %3412  ;;  %2317 = vst [vmem:[%s4192_s17 + $0x418] sm:$0xff] %v2061_v38  ;;  %v2063_v23 = vmul.f32 %v3411_v50, %v4859_v48  ;;  %3438 = vpow2.f32 %v2687_v41 }
 0x15c   : > { %v3415_v25 = vpop.eup %3414  ;;  %2318 = vst [vmem:[%s4192_s17 + $0x420] sm:$0xff] %v2062_v29  ;;  %v2064_v7 = vmul.f32 %v3413_v6, %v4864_v15  ;;  %3440 = vpow2.f32 %v2688_v36 }
 0x15d   : > { %v3417_v59 = vpop.eup %3416  ;;  %2319 = vst [vmem:[%s4192_s17 + $0x428] sm:$0xff] %v2063_v23  ;;  %v2065_v48 = vmul.f32 %v3415_v25, %v4870_v17  ;;  %3442 = vpow2.f32 %v2689_v34 }
 0x15e   : > { %v3419_v51 = vpop.eup %3418  ;;  %2320 = vst [vmem:[%s4192_s17 + $0x430] sm:$0xff] %v2064_v7  ;;  %v2066_v15 = vmul.f32 %v3417_v59, %v4876_v45  ;;  %3444 = vpow2.f32 %v2690_v39 }
 0x15f   : > { %v3421_v8 = vpop.eup %3420  ;;  %2321 = vst [vmem:[%s4192_s17 + $0x438] sm:$0xff] %v2065_v48  ;;  %v2067_v17 = vmul.f32 %v3419_v51, %v4882_v31  ;;  %3446 = vpow2.f32 %v2691_v46  ;;  %v5032_v48 = vld [vmem:[%s4093_s30 + $0x500] sm:$0xff] }
 0x160   : > { %v3423_v28 = vpop.eup %3422  ;;  %2322 = vst [vmem:[%s4192_s17 + $0x440] sm:$0xff] %v2066_v15  ;;  %v2068_v45 = vmul.f32 %v3421_v8, %v4888_v52  ;;  %3448 = vpow2.f32 %v2692_v47  ;;  %v2698_v52 = vmul.f32 -1.442695, %v5008_v56  ;;  %v5035_v15 = vld [vmem:[%s4093_s30 + $0x508] sm:$0xff] }
 0x161   : > { %v3425_v13 = vpop.eup %3424  ;;  %2323 = vst [vmem:[%s4192_s17 + $0x448] sm:$0xff] %v2067_v17  ;;  %v2069_v31 = vmul.f32 %v3423_v28, %v4894_v18  ;;  %3450 = vpow2.f32 %v2693_v37  ;;  %v2699_v18 = vmul.f32 -1.442695, %v5014_v61  ;;  %v5038_v17 = vld [vmem:[%s4093_s30 + $0x510] sm:$0xff] }
 0x162   : > { %v3427_v3 = vpop.eup %3426  ;;  %2324 = vst [vmem:[%s4192_s17 + $0x450] sm:$0xff] %v2068_v45  ;;  %v2070_v44 = vmul.f32 %v3425_v13, %v4900_v22  ;;  %3452 = vpow2.f32 %v2694_v33  ;;  %v2700_v45 = vmul.f32 -1.442695, %v5032_v48 }
 0x163   : > { %v3429_v55 = vpop.eup %3428  ;;  %2325 = vst [vmem:[%s4192_s17 + $0x458] sm:$0xff] %v2069_v31  ;;  %v2071_v63 = vmul.f32 %v3427_v3, %v4906_v27  ;;  %3454 = vpow2.f32 %v2695_v54  ;;  %v5046_v3 = vld [vmem:[%s4093_s30 + $0x520] sm:$0xff] }
 0x164   : > { %v3431_v12 = vpop.eup %3430  ;;  %2326 = vst [vmem:[%s4192_s17 + $0x460] sm:$0xff] %v2070_v44  ;;  %v2072_v0 = vmul.f32 %v3429_v55, %v4912_v4  ;;  %3456 = vpow2.f32 %v2696_v14  ;;  %v5042_v14 = vld [vmem:[%s4093_s30 + $0x518] sm:$0xff]  ;;  %v2702_v55 = vmul.f32 -1.442695, %v5038_v17 }
 0x165   : > { %v3433_v53 = vpop.eup %3432  ;;  %2327 = vst [vmem:[%s4192_s17 + $0x468] sm:$0xff] %v2071_v63  ;;  %v2073_v22 = vmul.f32 %v3431_v12, %v4918_v10  ;;  %3458 = vpow2.f32 %v2697_v57  ;;  %v2701_v57 = vmul.f32 -1.442695, %v5035_v15  ;;  %v5051_v63 = vld [vmem:[%s4093_s30 + $0x528] sm:$0xff] }
 0x166   : > { %v3435_v24 = vpop.eup %3434  ;;  %2328 = vst [vmem:[%s4192_s17 + $0x470] sm:$0xff] %v2072_v0  ;;  %v1306_v26 = vadd.f32 1.0, %v3433_v53  ;;  %3460 = vpow2.f32 %v2698_v52  ;;  %v2703_v0 = vmul.f32 -1.442695, %v5042_v14  ;;  %v5056_v53 = vld [vmem:[%s4093_s30 + $0x530] sm:$0xff] }
 0x167   : > { %v3437_v21 = vpop.eup %3436  ;;  %2329 = vst [vmem:[%s4192_s17 + $0x478] sm:$0xff] %v2073_v22  ;;  %v1307_v27 = vadd.f32 1.0, %v3435_v24  ;;  %3462 = vpow2.f32 %v2699_v18  ;;  %v2704_v24 = vmul.f32 -1.442695, %v5046_v3 }
 0x168   : > { %v3439_v60 = vpop.eup %3438  ;;  %3464 = vrcp.f32 %v1306_v26  ;;  %v1308_v41 = vadd.f32 1.0, %v3437_v21  ;;  %v5062_v26 = vld [vmem:[%s4093_s30 + $0x538] sm:$0xff] }
 0x169   : > { %v3441_v32 = vpop.eup %3440  ;;  %3466 = vrcp.f32 %v1307_v27  ;;  %v1309_v4 = vadd.f32 1.0, %v3439_v60  ;;  %v2705_v27 = vmul.f32 -1.442695, %v5051_v63  ;;  %v5068_v60 = vld [vmem:[%s4093_s30 + $0x540] sm:$0xff] }
 0x16a   : > { %v3443_v9 = vpop.eup %3442  ;;  %3468 = vrcp.f32 %v1308_v41  ;;  %v1310_v36 = vadd.f32 1.0, %v3441_v32  ;;  %v2706_v32 = vmul.f32 -1.442695, %v5056_v53 }
 0x16b   : > { %v3445_v1 = vpop.eup %3444  ;;  %3470 = vrcp.f32 %v1309_v4  ;;  %v1311_v10 = vadd.f32 1.0, %v3443_v9  ;;  %v5074_v4 = vld [vmem:[%s4093_s30 + $0x548] sm:$0xff] }
 0x16c   : > { %v3447_v38 = vpop.eup %3446  ;;  %3472 = vrcp.f32 %v1310_v36  ;;  %v1312_v34 = vadd.f32 1.0, %v3445_v1  ;;  %v2707_v36 = vmul.f32 -1.442695, %v5062_v26  ;;  %v5080_v1 = vld [vmem:[%s4093_s30 + $0x550] sm:$0xff] }
 0x16d   : > { %v3449_v50 = vpop.eup %3448  ;;  %3474 = vrcp.f32 %v1311_v10  ;;  %v1313_v29 = vadd.f32 1.0, %v3447_v38  ;;  %v2708_v38 = vmul.f32 -1.442695, %v5068_v60 }
 0x16e   : > { %v3451_v39 = vpop.eup %3450  ;;  %3476 = vrcp.f32 %v1312_v34  ;;  %v1314_v6 = vadd.f32 1.0, %v3449_v50  ;;  %v5086_v34 = vld [vmem:[%s4093_s30 + $0x558] sm:$0xff] }
 0x16f   : > { %v3453_v23 = vpop.eup %3452  ;;  %3478 = vrcp.f32 %v1313_v29  ;;  %v1315_v46 = vadd.f32 1.0, %v3451_v39  ;;  %v2709_v29 = vmul.f32 -1.442695, %v5074_v4  ;;  %v5092_v39 = vld [vmem:[%s4093_s30 + $0x560] sm:$0xff] }
 0x170   : > { %v3455_v25 = vpop.eup %3454  ;;  %3480 = vrcp.f32 %v1314_v6  ;;  %v1316_v7 = vadd.f32 1.0, %v3453_v23  ;;  %v2710_v23 = vmul.f32 -1.442695, %v5080_v1 }
 0x171   : > { %v3457_v47 = vpop.eup %3456  ;;  %3482 = vrcp.f32 %v1315_v46  ;;  %v1317_v59 = vadd.f32 1.0, %v3455_v25  ;;  %v5098_v46 = vld [vmem:[%s4093_s30 + $0x568] sm:$0xff] }
 0x172   : > { %v3459_v37 = vpop.eup %3458  ;;  %3484 = vrcp.f32 %v1316_v7  ;;  %v1318_v51 = vadd.f32 1.0, %v3457_v47  ;;  %v2711_v7 = vmul.f32 -1.442695, %v5086_v34  ;;  %v5104_v47 = vld [vmem:[%s4093_s30 + $0x570] sm:$0xff] }
 0x173   : > { %v3461_v33 = vpop.eup %3460  ;;  %3486 = vrcp.f32 %v1317_v59  ;;  %v1319_v8 = vadd.f32 1.0, %v3459_v37  ;;  %v2712_v37 = vmul.f32 -1.442695, %v5092_v39 }
 0x174   : > { %v3463_v54 = vpop.eup %3462  ;;  %3488 = vrcp.f32 %v1318_v51  ;;  %v1320_v28 = vadd.f32 1.0, %v3461_v33  ;;  %v5110_v51 = vld [vmem:[%s4093_s30 + $0x578] sm:$0xff] }
 0x175   : > { %v3465_v13 = vpop.eup %3464  ;;  %3490 = vrcp.f32 %v1319_v8  ;;  %v1321_v31 = vadd.f32 1.0, %v3463_v54  ;;  %v2713_v8 = vmul.f32 -1.442695, %v5098_v46 }
 0x176   : > { %v3467_v44 = vpop.eup %3466  ;;  %v2074_v52 = vmul.f32 %v3465_v13, %v4936_v58  ;;  %3492 = vrcp.f32 %v1320_v28 }
 0x177   : > { %v3469_v18 = vpop.eup %3468  ;;  %v2075_v12 = vmul.f32 %v3467_v44, %v4939_v30  ;;  %3494 = vrcp.f32 %v1321_v31 }
 0x178   : > { %v3471_v22 = vpop.eup %3470  ;;  %2330 = vst [vmem:[%s4192_s17 + $0x480] sm:$0xff] %v2074_v52  ;;  %v2076_v58 = vmul.f32 %v3469_v18, %v4942_v11  ;;  %3496 = vpow2.f32 %v2700_v45 }
 0x179   : > { %v3473_v21 = vpop.eup %3472  ;;  %2331 = vst [vmem:[%s4192_s17 + $0x488] sm:$0xff] %v2075_v12  ;;  %v2077_v30 = vmul.f32 %v3471_v22, %v4946_v5  ;;  %3498 = vpow2.f32 %v2701_v57 }
 0x17a   : > { %v3475_v41 = vpop.eup %3474  ;;  %2332 = vst [vmem:[%s4192_s17 + $0x490] sm:$0xff] %v2076_v58  ;;  %v2078_v11 = vmul.f32 %v3473_v21, %v4950_v16  ;;  %3500 = vpow2.f32 %v2702_v55 }
 0x17b   : > { %v3477_v9 = vpop.eup %3476  ;;  %2333 = vst [vmem:[%s4192_s17 + $0x498] sm:$0xff] %v2077_v30  ;;  %v2079_v5 = vmul.f32 %v3475_v41, %v4955_v2  ;;  %3502 = vpow2.f32 %v2703_v0 }
 0x17c   : > { %v3479_v10 = vpop.eup %3478  ;;  %2334 = vst [vmem:[%s4192_s17 + $0x4a0] sm:$0xff] %v2078_v11  ;;  %v2080_v16 = vmul.f32 %v3477_v9, %v4960_v62  ;;  %3504 = vpow2.f32 %v2704_v24 }
 0x17d   : > { %v3481_v50 = vpop.eup %3480  ;;  %2335 = vst [vmem:[%s4192_s17 + $0x4a8] sm:$0xff] %v2079_v5  ;;  %v2081_v2 = vmul.f32 %v3479_v10, %v4966_v40  ;;  %3506 = vpow2.f32 %v2705_v27 }
 0x17e   : > { %v3483_v6 = vpop.eup %3482  ;;  %2336 = vst [vmem:[%s4192_s17 + $0x4b0] sm:$0xff] %v2080_v16  ;;  %v2082_v62 = vmul.f32 %v3481_v50, %v4972_v35  ;;  %3508 = vpow2.f32 %v2706_v32 }
 0x17f   : > { %v3485_v25 = vpop.eup %3484  ;;  %2337 = vst [vmem:[%s4192_s17 + $0x4b8] sm:$0xff] %v2081_v2  ;;  %v2083_v40 = vmul.f32 %v3483_v6, %v4978_v19  ;;  %3510 = vpow2.f32 %v2707_v36  ;;  %v5128_v2 = vld [vmem:[%s4093_s30 + $0x580] sm:$0xff] }
 0x180   : > { %v3487_v59 = vpop.eup %3486  ;;  %2338 = vst [vmem:[%s4192_s17 + $0x4c0] sm:$0xff] %v2082_v62  ;;  %v2084_v35 = vmul.f32 %v3485_v25, %v4984_v42  ;;  %3512 = vpow2.f32 %v2708_v38  ;;  %v2714_v42 = vmul.f32 -1.442695, %v5104_v47  ;;  %v5131_v62 = vld [vmem:[%s4093_s30 + $0x588] sm:$0xff] }
 0x181   : > { %v3489_v33 = vpop.eup %3488  ;;  %2339 = vst [vmem:[%s4192_s17 + $0x4c8] sm:$0xff] %v2083_v40  ;;  %v2085_v19 = vmul.f32 %v3487_v59, %v4990_v43  ;;  %3514 = vpow2.f32 %v2709_v29  ;;  %v2715_v43 = vmul.f32 -1.442695, %v5110_v51  ;;  %v5134_v40 = vld [vmem:[%s4093_s30 + $0x590] sm:$0xff] }
 0x182   : > { %v3491_v54 = vpop.eup %3490  ;;  %2340 = vst [vmem:[%s4192_s17 + $0x4d0] sm:$0xff] %v2084_v35  ;;  %v2086_v28 = vmul.f32 %v3489_v33, %v4996_v49  ;;  %3516 = vpow2.f32 %v2710_v23  ;;  %v2716_v35 = vmul.f32 -1.442695, %v5128_v2 }
 0x183   : > { %v3493_v45 = vpop.eup %3492  ;;  %2341 = vst [vmem:[%s4192_s17 + $0x4d8] sm:$0xff] %v2085_v19  ;;  %v2087_v13 = vmul.f32 %v3491_v54, %v5002_v20  ;;  %3518 = vpow2.f32 %v2711_v7  ;;  %v5142_v54 = vld [vmem:[%s4093_s30 + $0x5a0] sm:$0xff] }
 0x184   : > { %v3495_v31 = vpop.eup %3494  ;;  %2342 = vst [vmem:[%s4192_s17 + $0x4e0] sm:$0xff] %v2086_v28  ;;  %v2088_v57 = vmul.f32 %v3493_v45, %v5008_v56  ;;  %3520 = vpow2.f32 %v2712_v37  ;;  %v5138_v37 = vld [vmem:[%s4093_s30 + $0x598] sm:$0xff]  ;;  %v2718_v45 = vmul.f32 -1.442695, %v5134_v40 }
 0x185   : > { %v3497_v44 = vpop.eup %3496  ;;  %2343 = vst [vmem:[%s4192_s17 + $0x4e8] sm:$0xff] %v2087_v13  ;;  %v2089_v49 = vmul.f32 %v3495_v31, %v5014_v61  ;;  %3522 = vpow2.f32 %v2713_v8  ;;  %v2717_v8 = vmul.f32 -1.442695, %v5131_v62  ;;  %v5147_v13 = vld [vmem:[%s4093_s30 + $0x5a8] sm:$0xff] }
 0x186   : > { %v3499_v52 = vpop.eup %3498  ;;  %2344 = vst [vmem:[%s4192_s17 + $0x4f0] sm:$0xff] %v2088_v57  ;;  %v1322_v55 = vadd.f32 1.0, %v3497_v44  ;;  %3524 = vpow2.f32 %v2714_v42  ;;  %v2719_v57 = vmul.f32 -1.442695, %v5138_v37  ;;  %v5152_v44 = vld [vmem:[%s4093_s30 + $0x5b0] sm:$0xff] }
 0x187   : > { %v3501_v18 = vpop.eup %3500  ;;  %2345 = vst [vmem:[%s4192_s17 + $0x4f8] sm:$0xff] %v2089_v49  ;;  %v1323_v20 = vadd.f32 1.0, %v3499_v52  ;;  %3526 = vpow2.f32 %v2715_v43  ;;  %v2720_v52 = vmul.f32 -1.442695, %v5142_v54 }
 0x188   : > { %v3503_v12 = vpop.eup %3502  ;;  %3528 = vrcp.f32 %v1322_v55  ;;  %v1324_v0 = vadd.f32 1.0, %v3501_v18  ;;  %v5158_v55 = vld [vmem:[%s4093_s30 + $0x5b8] sm:$0xff] }
 0x189   : > { %v3505_v22 = vpop.eup %3504  ;;  %3530 = vrcp.f32 %v1323_v20  ;;  %v1325_v56 = vadd.f32 1.0, %v3503_v12  ;;  %v2721_v20 = vmul.f32 -1.442695, %v5147_v13  ;;  %v5164_v12 = vld [vmem:[%s4093_s30 + $0x5c0] sm:$0xff] }
 0x18a   : > { %v3507_v58 = vpop.eup %3506  ;;  %3532 = vrcp.f32 %v1324_v0  ;;  %v1326_v24 = vadd.f32 1.0, %v3505_v22  ;;  %v2722_v22 = vmul.f32 -1.442695, %v5152_v44 }
 0x18b   : > { %v3509_v21 = vpop.eup %3508  ;;  %3534 = vrcp.f32 %v1325_v56  ;;  %v1327_v61 = vadd.f32 1.0, %v3507_v58  ;;  %v5170_v56 = vld [vmem:[%s4093_s30 + $0x5c8] sm:$0xff] }
 0x18c   : > { %v3511_v30 = vpop.eup %3510  ;;  %3536 = vrcp.f32 %v1326_v24  ;;  %v1328_v27 = vadd.f32 1.0, %v3509_v21  ;;  %v2723_v24 = vmul.f32 -1.442695, %v5158_v55  ;;  %v5176_v21 = vld [vmem:[%s4093_s30 + $0x5d0] sm:$0xff] }
 0x18d   : > { %v3513_v41 = vpop.eup %3512  ;;  %3538 = vrcp.f32 %v1327_v61  ;;  %v1329_v11 = vadd.f32 1.0, %v3511_v30  ;;  %v2724_v30 = vmul.f32 -1.442695, %v5164_v12 }
 0x18e   : > { %v3515_v32 = vpop.eup %3514  ;;  %3540 = vrcp.f32 %v1328_v27  ;;  %v1330_v9 = vadd.f32 1.0, %v3513_v41  ;;  %v5182_v27 = vld [vmem:[%s4093_s30 + $0x5d8] sm:$0xff] }
 0x18f   : > { %v3517_v5 = vpop.eup %3516  ;;  %3542 = vrcp.f32 %v1329_v11  ;;  %v1331_v36 = vadd.f32 1.0, %v3515_v32  ;;  %v2725_v11 = vmul.f32 -1.442695, %v5170_v56  ;;  %v5188_v32 = vld [vmem:[%s4093_s30 + $0x5e0] sm:$0xff] }
 0x190   : > { %v3519_v10 = vpop.eup %3518  ;;  %3544 = vrcp.f32 %v1330_v9  ;;  %v1332_v16 = vadd.f32 1.0, %v3517_v5  ;;  %v2726_v5 = vmul.f32 -1.442695, %v5176_v21 }
 0x191   : > { %v3521_v38 = vpop.eup %3520  ;;  %3546 = vrcp.f32 %v1331_v36  ;;  %v1333_v50 = vadd.f32 1.0, %v3519_v10  ;;  %v5194_v36 = vld [vmem:[%s4093_s30 + $0x5e8] sm:$0xff] }
 0x192   : > { %v3523_v29 = vpop.eup %3522  ;;  %3548 = vrcp.f32 %v1332_v16  ;;  %v1334_v6 = vadd.f32 1.0, %v3521_v38  ;;  %v2727_v16 = vmul.f32 -1.442695, %v5182_v27  ;;  %v5200_v38 = vld [vmem:[%s4093_s30 + $0x5f0] sm:$0xff] }
 0x193   : > { %v3525_v23 = vpop.eup %3524  ;;  %3550 = vrcp.f32 %v1333_v50  ;;  %v1335_v25 = vadd.f32 1.0, %v3523_v29  ;;  %v2728_v29 = vmul.f32 -1.442695, %v5188_v32 }
 0x194   : > { %v3527_v7 = vpop.eup %3526  ;;  %3552 = vrcp.f32 %v1334_v6  ;;  %v1336_v59 = vadd.f32 1.0, %v3525_v23  ;;  %v5206_v6 = vld [vmem:[%s4093_s30 + $0x5f8] sm:$0xff] }
 0x195   : > { %v3529_v33 = vpop.eup %3528  ;;  %3554 = vrcp.f32 %v1335_v25  ;;  %v1337_v19 = vadd.f32 1.0, %v3527_v7  ;;  %v2729_v25 = vmul.f32 -1.442695, %v5194_v36 }
 0x196   : > { %v3531_v28 = vpop.eup %3530  ;;  %v2090_v42 = vmul.f32 %v3529_v33, %v5032_v48  ;;  %3556 = vrcp.f32 %v1336_v59 }
 0x197   : > { %v3533_v43 = vpop.eup %3532  ;;  %v2091_v31 = vmul.f32 %v3531_v28, %v5035_v15  ;;  %3558 = vrcp.f32 %v1337_v19 }
 0x198   : > { %v3535_v49 = vpop.eup %3534  ;;  %2346 = vst [vmem:[%s4192_s17 + $0x500] sm:$0xff] %v2090_v42  ;;  %v2092_v48 = vmul.f32 %v3533_v43, %v5038_v17  ;;  %3560 = vpow2.f32 %v2716_v35 }
 0x199   : > { %v3537_v18 = vpop.eup %3536  ;;  %2347 = vst [vmem:[%s4192_s17 + $0x508] sm:$0xff] %v2091_v31  ;;  %v2093_v15 = vmul.f32 %v3535_v49, %v5042_v14  ;;  %3562 = vpow2.f32 %v2717_v8 }
 0x19a   : > { %v3539_v0 = vpop.eup %3538  ;;  %2348 = vst [vmem:[%s4192_s17 + $0x510] sm:$0xff] %v2092_v48  ;;  %v2094_v17 = vmul.f32 %v3537_v18, %v5046_v3  ;;  %3564 = vpow2.f32 %v2718_v45 }
 0x19b   : > { %v3541_v58 = vpop.eup %3540  ;;  %2349 = vst [vmem:[%s4192_s17 + $0x518] sm:$0xff] %v2093_v15  ;;  %v2095_v14 = vmul.f32 %v3539_v0, %v5051_v63  ;;  %3566 = vpow2.f32 %v2719_v57 }
 0x19c   : > { %v3543_v61 = vpop.eup %3542  ;;  %2350 = vst [vmem:[%s4192_s17 + $0x520] sm:$0xff] %v2094_v17  ;;  %v2096_v3 = vmul.f32 %v3541_v58, %v5056_v53  ;;  %3568 = vpow2.f32 %v2720_v52 }
 0x19d   : > { %v3545_v41 = vpop.eup %3544  ;;  %2351 = vst [vmem:[%s4192_s17 + $0x528] sm:$0xff] %v2095_v14  ;;  %v2097_v63 = vmul.f32 %v3543_v61, %v5062_v26  ;;  %3570 = vpow2.f32 %v2721_v20 }
 0x19e   : > { %v3547_v9 = vpop.eup %3546  ;;  %2352 = vst [vmem:[%s4192_s17 + $0x530] sm:$0xff] %v2096_v3  ;;  %v2098_v53 = vmul.f32 %v3545_v41, %v5068_v60  ;;  %3572 = vpow2.f32 %v2722_v22 }
 0x19f   : > { %v3549_v10 = vpop.eup %3548  ;;  %2353 = vst [vmem:[%s4192_s17 + $0x538] sm:$0xff] %v2097_v63  ;;  %v2099_v26 = vmul.f32 %v3547_v9, %v5074_v4  ;;  %3574 = vpow2.f32 %v2723_v24  ;;  %v5224_v63 = vld [vmem:[%s4093_s30 + $0x600] sm:$0xff] }
 0x1a0   : > { %v3551_v50 = vpop.eup %3550  ;;  %2354 = vst [vmem:[%s4192_s17 + $0x540] sm:$0xff] %v2098_v53  ;;  %v2100_v60 = vmul.f32 %v3549_v10, %v5080_v1  ;;  %3576 = vpow2.f32 %v2724_v30  ;;  %v2730_v1 = vmul.f32 -1.442695, %v5200_v38  ;;  %v5227_v53 = vld [vmem:[%s4093_s30 + $0x608] sm:$0xff] }
 0x1a1   : > { %v3553_v23 = vpop.eup %3552  ;;  %2355 = vst [vmem:[%s4192_s17 + $0x548] sm:$0xff] %v2099_v26  ;;  %v2101_v4 = vmul.f32 %v3551_v50, %v5086_v34  ;;  %3578 = vpow2.f32 %v2725_v11  ;;  %v2731_v34 = vmul.f32 -1.442695, %v5206_v6  ;;  %v5230_v26 = vld [vmem:[%s4093_s30 + $0x610] sm:$0xff] }
 0x1a2   : > { %v3555_v7 = vpop.eup %3554  ;;  %2356 = vst [vmem:[%s4192_s17 + $0x550] sm:$0xff] %v2100_v60  ;;  %v2102_v59 = vmul.f32 %v3553_v23, %v5092_v39  ;;  %3580 = vpow2.f32 %v2726_v5  ;;  %v2732_v60 = vmul.f32 -1.442695, %v5224_v63 }
 0x1a3   : > { %v3557_v35 = vpop.eup %3556  ;;  %2357 = vst [vmem:[%s4192_s17 + $0x558] sm:$0xff] %v2101_v4  ;;  %v2103_v33 = vmul.f32 %v3555_v7, %v5098_v46  ;;  %3582 = vpow2.f32 %v2727_v16  ;;  %v5238_v7 = vld [vmem:[%s4093_s30 + $0x620] sm:$0xff] }
 0x1a4   : > { %v3559_v19 = vpop.eup %3558  ;;  %2358 = vst [vmem:[%s4192_s17 + $0x560] sm:$0xff] %v2102_v59  ;;  %v2104_v8 = vmul.f32 %v3557_v35, %v5104_v47  ;;  %3584 = vpow2.f32 %v2728_v29  ;;  %v5234_v29 = vld [vmem:[%s4093_s30 + $0x618] sm:$0xff]  ;;  %v2734_v35 = vmul.f32 -1.442695, %v5230_v26 }
 0x1a5   : > { %v3561_v28 = vpop.eup %3560  ;;  %2359 = vst [vmem:[%s4192_s17 + $0x568] sm:$0xff] %v2103_v33  ;;  %v2105_v39 = vmul.f32 %v3559_v19, %v5110_v51  ;;  %3586 = vpow2.f32 %v2729_v25  ;;  %v2733_v25 = vmul.f32 -1.442695, %v5227_v53  ;;  %v5243_v33 = vld [vmem:[%s4093_s30 + $0x628] sm:$0xff] }
 0x1a6   : > { %v3563_v42 = vpop.eup %3562  ;;  %2360 = vst [vmem:[%s4192_s17 + $0x570] sm:$0xff] %v2104_v8  ;;  %v1338_v45 = vadd.f32 1.0, %v3561_v28  ;;  %3588 = vpow2.f32 %v2730_v1  ;;  %v2735_v8 = vmul.f32 -1.442695, %v5234_v29  ;;  %v5248_v28 = vld [vmem:[%s4093_s30 + $0x630] sm:$0xff] }
 0x1a7   : > { %v3565_v43 = vpop.eup %3564  ;;  %2361 = vst [vmem:[%s4192_s17 + $0x578] sm:$0xff] %v2105_v39  ;;  %v1339_v46 = vadd.f32 1.0, %v3563_v42  ;;  %3590 = vpow2.f32 %v2731_v34  ;;  %v2736_v42 = vmul.f32 -1.442695, %v5238_v7 }
 0x1a8   : > { %v3567_v31 = vpop.eup %3566  ;;  %3592 = vrcp.f32 %v1338_v45  ;;  %v1340_v57 = vadd.f32 1.0, %v3565_v43  ;;  %v5254_v45 = vld [vmem:[%s4093_s30 + $0x638] sm:$0xff] }
 0x1a9   : > { %v3569_v49 = vpop.eup %3568  ;;  %3594 = vrcp.f32 %v1339_v46  ;;  %v1341_v47 = vadd.f32 1.0, %v3567_v31  ;;  %v2737_v46 = vmul.f32 -1.442695, %v5243_v33  ;;  %v5260_v31 = vld [vmem:[%s4093_s30 + $0x640] sm:$0xff] }
 0x1aa   : > { %v3571_v48 = vpop.eup %3570  ;;  %3596 = vrcp.f32 %v1340_v57  ;;  %v1342_v52 = vadd.f32 1.0, %v3569_v49  ;;  %v2738_v49 = vmul.f32 -1.442695, %v5248_v28 }
 0x1ab   : > { %v3573_v18 = vpop.eup %3572  ;;  %3598 = vrcp.f32 %v1341_v47  ;;  %v1343_v51 = vadd.f32 1.0, %v3571_v48  ;;  %v5266_v47 = vld [vmem:[%s4093_s30 + $0x648] sm:$0xff] }
 0x1ac   : > { %v3575_v15 = vpop.eup %3574  ;;  %3600 = vrcp.f32 %v1342_v52  ;;  %v1344_v20 = vadd.f32 1.0, %v3573_v18  ;;  %v2739_v52 = vmul.f32 -1.442695, %v5254_v45  ;;  %v5272_v18 = vld [vmem:[%s4093_s30 + $0x650] sm:$0xff] }
 0x1ad   : > { %v3577_v0 = vpop.eup %3576  ;;  %3602 = vrcp.f32 %v1343_v51  ;;  %v1345_v17 = vadd.f32 1.0, %v3575_v15  ;;  %v2740_v15 = vmul.f32 -1.442695, %v5260_v31 }
 0x1ae   : > { %v3579_v22 = vpop.eup %3578  ;;  %3604 = vrcp.f32 %v1344_v20  ;;  %v1346_v58 = vadd.f32 1.0, %v3577_v0  ;;  %v5278_v20 = vld [vmem:[%s4093_s30 + $0x658] sm:$0xff] }
 0x1af   : > { %v3581_v14 = vpop.eup %3580  ;;  %3606 = vrcp.f32 %v1345_v17  ;;  %v1347_v24 = vadd.f32 1.0, %v3579_v22  ;;  %v2741_v17 = vmul.f32 -1.442695, %v5266_v47  ;;  %v5284_v22 = vld [vmem:[%s4093_s30 + $0x660] sm:$0xff] }
 0x1b0   : > { %v3583_v61 = vpop.eup %3582  ;;  %3608 = vrcp.f32 %v1346_v58  ;;  %v1348_v3 = vadd.f32 1.0, %v3581_v14  ;;  %v2742_v14 = vmul.f32 -1.442695, %v5272_v18 }
 0x1b1   : > { %v3585_v30 = vpop.eup %3584  ;;  %3610 = vrcp.f32 %v1347_v24  ;;  %v1349_v41 = vadd.f32 1.0, %v3583_v61  ;;  %v5290_v24 = vld [vmem:[%s4093_s30 + $0x668] sm:$0xff] }
 0x1b2   : > { %v3587_v11 = vpop.eup %3586  ;;  %3612 = vrcp.f32 %v1348_v3  ;;  %v1350_v9 = vadd.f32 1.0, %v3585_v30  ;;  %v2743_v3 = vmul.f32 -1.442695, %v5278_v20  ;;  %v5296_v30 = vld [vmem:[%s4093_s30 + $0x670] sm:$0xff] }
 0x1b3   : > { %v3589_v5 = vpop.eup %3588  ;;  %3614 = vrcp.f32 %v1349_v41  ;;  %v1351_v10 = vadd.f32 1.0, %v3587_v11  ;;  %v2744_v11 = vmul.f32 -1.442695, %v5284_v22 }
 0x1b4   : > { %v3591_v16 = vpop.eup %3590  ;;  %3616 = vrcp.f32 %v1350_v9  ;;  %v1352_v50 = vadd.f32 1.0, %v3589_v5  ;;  %v5302_v9 = vld [vmem:[%s4093_s30 + $0x678] sm:$0xff] }
 0x1b5   : > { %v3593_v23 = vpop.eup %3592  ;;  %3618 = vrcp.f32 %v1351_v10  ;;  %v1353_v4 = vadd.f32 1.0, %v3591_v16  ;;  %v2745_v10 = vmul.f32 -1.442695, %v5290_v24 }
 0x1b6   : > { %v3595_v59 = vpop.eup %3594  ;;  %v2106_v1 = vmul.f32 %v3593_v23, %v5128_v2  ;;  %3620 = vrcp.f32 %v1352_v50 }
 0x1b7   : > { %v3597_v34 = vpop.eup %3596  ;;  %v2107_v19 = vmul.f32 %v3595_v59, %v5131_v62  ;;  %3622 = vrcp.f32 %v1353_v4 }
 0x1b8   : > { %v3599_v39 = vpop.eup %3598  ;;  %2362 = vst [vmem:[%s4192_s17 + $0x580] sm:$0xff] %v2106_v1  ;;  %v2108_v2 = vmul.f32 %v3597_v34, %v5134_v40  ;;  %3624 = vpow2.f32 %v2732_v60 }
 0x1b9   : > { %v3601_v43 = vpop.eup %3600  ;;  %2363 = vst [vmem:[%s4192_s17 + $0x588] sm:$0xff] %v2107_v19  ;;  %v2109_v62 = vmul.f32 %v3599_v39, %v5138_v37  ;;  %3626 = vpow2.f32 %v2733_v25 }
 0x1ba   : > { %v3603_v57 = vpop.eup %3602  ;;  %2364 = vst [vmem:[%s4192_s17 + $0x590] sm:$0xff] %v2108_v2  ;;  %v2110_v40 = vmul.f32 %v3601_v43, %v5142_v54  ;;  %3628 = vpow2.f32 %v2734_v35 }
 0x1bb   : > { %v3605_v48 = vpop.eup %3604  ;;  %2365 = vst [vmem:[%s4192_s17 + $0x598] sm:$0xff] %v2109_v62  ;;  %v2111_v37 = vmul.f32 %v3603_v57, %v5147_v13  ;;  %3630 = vpow2.f32 %v2735_v8 }
 0x1bc   : > { %v3607_v51 = vpop.eup %3606  ;;  %2366 = vst [vmem:[%s4192_s17 + $0x5a0] sm:$0xff] %v2110_v40  ;;  %v2112_v54 = vmul.f32 %v3605_v48, %v5152_v44  ;;  %3632 = vpow2.f32 %v2736_v42 }
 0x1bd   : > { %v3609_v0 = vpop.eup %3608  ;;  %2367 = vst [vmem:[%s4192_s17 + $0x5a8] sm:$0xff] %v2111_v37  ;;  %v2113_v13 = vmul.f32 %v3607_v51, %v5158_v55  ;;  %3634 = vpow2.f32 %v2737_v46 }
 0x1be   : > { %v3611_v58 = vpop.eup %3610  ;;  %2368 = vst [vmem:[%s4192_s17 + $0x5b0] sm:$0xff] %v2112_v54  ;;  %v2114_v44 = vmul.f32 %v3609_v0, %v5164_v12  ;;  %3636 = vpow2.f32 %v2738_v49 }
 0x1bf   : > { %v3613_v61 = vpop.eup %3612  ;;  %2369 = vst [vmem:[%s4192_s17 + $0x5b8] sm:$0xff] %v2113_v13  ;;  %v2115_v55 = vmul.f32 %v3611_v58, %v5170_v56  ;;  %3638 = vpow2.f32 %v2739_v52  ;;  %v5320_v13 = vld [vmem:[%s4093_s30 + $0x680] sm:$0xff] }
 0x1c0   : > { %v3615_v41 = vpop.eup %3614  ;;  %2370 = vst [vmem:[%s4192_s17 + $0x5c0] sm:$0xff] %v2114_v44  ;;  %v2116_v12 = vmul.f32 %v3613_v61, %v5176_v21  ;;  %3640 = vpow2.f32 %v2740_v15  ;;  %v2746_v21 = vmul.f32 -1.442695, %v5296_v30  ;;  %v5323_v44 = vld [vmem:[%s4093_s30 + $0x688] sm:$0xff] }
 0x1c1   : > { %v3617_v5 = vpop.eup %3616  ;;  %2371 = vst [vmem:[%s4192_s17 + $0x5c8] sm:$0xff] %v2115_v55  ;;  %v2117_v56 = vmul.f32 %v3615_v41, %v5182_v27  ;;  %3642 = vpow2.f32 %v2741_v17  ;;  %v2747_v27 = vmul.f32 -1.442695, %v5302_v9  ;;  %v5326_v55 = vld [vmem:[%s4093_s30 + $0x690] sm:$0xff] }
 0x1c2   : > { %v3619_v16 = vpop.eup %3618  ;;  %2372 = vst [vmem:[%s4192_s17 + $0x5d0] sm:$0xff] %v2116_v12  ;;  %v2118_v50 = vmul.f32 %v3617_v5, %v5188_v32  ;;  %3644 = vpow2.f32 %v2742_v14  ;;  %v2748_v12 = vmul.f32 -1.442695, %v5320_v13 }
 0x1c3   : > { %v3621_v60 = vpop.eup %3620  ;;  %2373 = vst [vmem:[%s4192_s17 + $0x5d8] sm:$0xff] %v2117_v56  ;;  %v2119_v23 = vmul.f32 %v3619_v16, %v5194_v36  ;;  %3646 = vpow2.f32 %v2743_v3  ;;  %v5334_v16 = vld [vmem:[%s4093_s30 + $0x6a0] sm:$0xff] }
 0x1c4   : > { %v3623_v4 = vpop.eup %3622  ;;  %2374 = vst [vmem:[%s4192_s17 + $0x5e0] sm:$0xff] %v2118_v50  ;;  %v2120_v25 = vmul.f32 %v3621_v60, %v5200_v38  ;;  %3648 = vpow2.f32 %v2744_v11  ;;  %v5330_v11 = vld [vmem:[%s4093_s30 + $0x698] sm:$0xff]  ;;  %v2750_v60 = vmul.f32 -1.442695, %v5326_v55 }
 0x1c5   : > { %v3625_v59 = vpop.eup %3624  ;;  %2375 = vst [vmem:[%s4192_s17 + $0x5e8] sm:$0xff] %v2119_v23  ;;  %v2121_v32 = vmul.f32 %v3623_v4, %v5206_v6  ;;  %3650 = vpow2.f32 %v2745_v10  ;;  %v2749_v10 = vmul.f32 -1.442695, %v5323_v44  ;;  %v5339_v23 = vld [vmem:[%s4093_s30 + $0x6a8] sm:$0xff] }
 0x1c6   : > { %v3627_v1 = vpop.eup %3626  ;;  %2376 = vst [vmem:[%s4192_s17 + $0x5f0] sm:$0xff] %v2120_v25  ;;  %v1354_v35 = vadd.f32 1.0, %v3625_v59  ;;  %3652 = vpow2.f32 %v2746_v21  ;;  %v2751_v25 = vmul.f32 -1.442695, %v5330_v11  ;;  %v5344_v59 = vld [vmem:[%s4093_s30 + $0x6b0] sm:$0xff] }
 0x1c7   : > { %v3629_v34 = vpop.eup %3628  ;;  %2377 = vst [vmem:[%s4192_s17 + $0x5f8] sm:$0xff] %v2121_v32  ;;  %v1355_v36 = vadd.f32 1.0, %v3627_v1  ;;  %3654 = vpow2.f32 %v2747_v27  ;;  %v2752_v1 = vmul.f32 -1.442695, %v5334_v16 }
 0x1c8   : > { %v3631_v19 = vpop.eup %3630  ;;  %3656 = vrcp.f32 %v1354_v35  ;;  %v1356_v8 = vadd.f32 1.0, %v3629_v34  ;;  %v5350_v35 = vld [vmem:[%s4093_s30 + $0x6b8] sm:$0xff] }
 0x1c9   : > { %v3633_v39 = vpop.eup %3632  ;;  %3658 = vrcp.f32 %v1355_v36  ;;  %v1357_v38 = vadd.f32 1.0, %v3631_v19  ;;  %v2753_v36 = vmul.f32 -1.442695, %v5339_v23  ;;  %v5356_v19 = vld [vmem:[%s4093_s30 + $0x6c0] sm:$0xff] }
 0x1ca   : > { %v3635_v2 = vpop.eup %3634  ;;  %3660 = vrcp.f32 %v1356_v8  ;;  %v1358_v42 = vadd.f32 1.0, %v3633_v39  ;;  %v2754_v39 = vmul.f32 -1.442695, %v5344_v59 }
 0x1cb   : > { %v3637_v43 = vpop.eup %3636  ;;  %3662 = vrcp.f32 %v1357_v38  ;;  %v1359_v6 = vadd.f32 1.0, %v3635_v2  ;;  %v5362_v38 = vld [vmem:[%s4093_s30 + $0x6c8] sm:$0xff] }
 0x1cc   : > { %v3639_v62 = vpop.eup %3638  ;;  %3664 = vrcp.f32 %v1358_v42  ;;  %v1360_v46 = vadd.f32 1.0, %v3637_v43  ;;  %v2755_v42 = vmul.f32 -1.442695, %v5350_v35  ;;  %v5368_v43 = vld [vmem:[%s4093_s30 + $0x6d0] sm:$0xff] }
 0x1cd   : > { %v3641_v57 = vpop.eup %3640  ;;  %3666 = vrcp.f32 %v1359_v6  ;;  %v1361_v40 = vadd.f32 1.0, %v3639_v62  ;;  %v2756_v62 = vmul.f32 -1.442695, %v5356_v19 }
 0x1ce   : > { %v3643_v49 = vpop.eup %3642  ;;  %3668 = vrcp.f32 %v1360_v46  ;;  %v1362_v48 = vadd.f32 1.0, %v3641_v57  ;;  %v5374_v46 = vld [vmem:[%s4093_s30 + $0x6d8] sm:$0xff] }
 0x1cf   : > { %v3645_v37 = vpop.eup %3644  ;;  %3670 = vrcp.f32 %v1361_v40  ;;  %v1363_v52 = vadd.f32 1.0, %v3643_v49  ;;  %v2757_v40 = vmul.f32 -1.442695, %v5362_v38  ;;  %v5380_v49 = vld [vmem:[%s4093_s30 + $0x6e0] sm:$0xff] }
 0x1d0   : > { %v3647_v51 = vpop.eup %3646  ;;  %3672 = vrcp.f32 %v1362_v48  ;;  %v1364_v54 = vadd.f32 1.0, %v3645_v37  ;;  %v2758_v37 = vmul.f32 -1.442695, %v5368_v43 }
 0x1d1   : > { %v3649_v15 = vpop.eup %3648  ;;  %3674 = vrcp.f32 %v1363_v52  ;;  %v1365_v0 = vadd.f32 1.0, %v3647_v51  ;;  %v5386_v52 = vld [vmem:[%s4093_s30 + $0x6e8] sm:$0xff] }
 0x1d2   : > { %v3651_v17 = vpop.eup %3650  ;;  %3676 = vrcp.f32 %v1364_v54  ;;  %v1366_v58 = vadd.f32 1.0, %v3649_v15  ;;  %v2759_v54 = vmul.f32 -1.442695, %v5374_v46  ;;  %v5392_v15 = vld [vmem:[%s4093_s30 + $0x6f0] sm:$0xff] }
 0x1d3   : > { %v3653_v14 = vpop.eup %3652  ;;  %3678 = vrcp.f32 %v1365_v0  ;;  %v1367_v61 = vadd.f32 1.0, %v3651_v17  ;;  %v2760_v17 = vmul.f32 -1.442695, %v5380_v49 }
 0x1d4   : > { %v3655_v3 = vpop.eup %3654  ;;  %3680 = vrcp.f32 %v1366_v58  ;;  %v1368_v41 = vadd.f32 1.0, %v3653_v14  ;;  %v5398_v58 = vld [vmem:[%s4093_s30 + $0x6f8] sm:$0xff] }
 0x1d5   : > { %v3657_v5 = vpop.eup %3656  ;;  %3682 = vrcp.f32 %v1367_v61  ;;  %v1369_v56 = vadd.f32 1.0, %v3655_v3  ;;  %v2761_v61 = vmul.f32 -1.442695, %v5386_v52 }
 0x1d6   : > { %v3659_v50 = vpop.eup %3658  ;;  %v2122_v21 = vmul.f32 %v3657_v5, %v5224_v63  ;;  %3684 = vrcp.f32 %v1368_v41 }
 0x1d7   : > { %v3661_v27 = vpop.eup %3660  ;;  %v2123_v4 = vmul.f32 %v3659_v50, %v5227_v53  ;;  %3686 = vrcp.f32 %v1369_v56 }
 0x1d8   : > { %v3663_v32 = vpop.eup %3662  ;;  %2378 = vst [vmem:[%s4192_s17 + $0x600] sm:$0xff] %v2122_v21  ;;  %v2124_v63 = vmul.f32 %v3661_v27, %v5230_v26  ;;  %3688 = vpow2.f32 %v2748_v12 }
 0x1d9   : > { %v3665_v34 = vpop.eup %3664  ;;  %2379 = vst [vmem:[%s4192_s17 + $0x608] sm:$0xff] %v2123_v4  ;;  %v2125_v53 = vmul.f32 %v3663_v32, %v5234_v29  ;;  %3690 = vpow2.f32 %v2749_v10 }
 0x1da   : > { %v3667_v8 = vpop.eup %3666  ;;  %2380 = vst [vmem:[%s4192_s17 + $0x610] sm:$0xff] %v2124_v63  ;;  %v2126_v26 = vmul.f32 %v3665_v34, %v5238_v7  ;;  %3692 = vpow2.f32 %v2750_v60 }
 0x1db   : > { %v3669_v2 = vpop.eup %3668  ;;  %2381 = vst [vmem:[%s4192_s17 + $0x618] sm:$0xff] %v2125_v53  ;;  %v2127_v29 = vmul.f32 %v3667_v8, %v5243_v33  ;;  %3694 = vpow2.f32 %v2751_v25 }
 0x1dc   : > { %v3671_v6 = vpop.eup %3670  ;;  %2382 = vst [vmem:[%s4192_s17 + $0x620] sm:$0xff] %v2126_v26  ;;  %v2128_v7 = vmul.f32 %v3669_v2, %v5248_v28  ;;  %3696 = vpow2.f32 %v2752_v1 }
 0x1dd   : > { %v3673_v57 = vpop.eup %3672  ;;  %2383 = vst [vmem:[%s4192_s17 + $0x628] sm:$0xff] %v2127_v29  ;;  %v2129_v33 = vmul.f32 %v3671_v6, %v5254_v45  ;;  %3698 = vpow2.f32 %v2753_v36 }
 0x1de   : > { %v3675_v48 = vpop.eup %3674  ;;  %2384 = vst [vmem:[%s4192_s17 + $0x630] sm:$0xff] %v2128_v7  ;;  %v2130_v28 = vmul.f32 %v3673_v57, %v5260_v31  ;;  %3700 = vpow2.f32 %v2754_v39 }
 0x1df   : > { %v3677_v51 = vpop.eup %3676  ;;  %2385 = vst [vmem:[%s4192_s17 + $0x638] sm:$0xff] %v2129_v33  ;;  %v2131_v45 = vmul.f32 %v3675_v48, %v5266_v47  ;;  %3702 = vpow2.f32 %v2755_v42  ;;  %v5416_v33 = vld [vmem:[%s4093_s30 + $0x700] sm:$0xff] }
 0x1e0   : > { %v3679_v0 = vpop.eup %3678  ;;  %2386 = vst [vmem:[%s4192_s17 + $0x640] sm:$0xff] %v2130_v28  ;;  %v2132_v31 = vmul.f32 %v3677_v51, %v5272_v18  ;;  %3704 = vpow2.f32 %v2756_v62  ;;  %v2762_v18 = vmul.f32 -1.442695, %v5392_v15  ;;  %v5419_v28 = vld [vmem:[%s4093_s30 + $0x708] sm:$0xff] }
 0x1e1   : > { %v3681_v14 = vpop.eup %3680  ;;  %2387 = vst [vmem:[%s4192_s17 + $0x648] sm:$0xff] %v2131_v45  ;;  %v2133_v47 = vmul.f32 %v3679_v0, %v5278_v20  ;;  %3706 = vpow2.f32 %v2757_v40  ;;  %v2763_v20 = vmul.f32 -1.442695, %v5398_v58  ;;  %v5422_v45 = vld [vmem:[%s4093_s30 + $0x710] sm:$0xff] }
 0x1e2   : > { %v3683_v3 = vpop.eup %3682  ;;  %2388 = vst [vmem:[%s4192_s17 + $0x650] sm:$0xff] %v2132_v31  ;;  %v2134_v41 = vmul.f32 %v3681_v14, %v5284_v22  ;;  %3708 = vpow2.f32 %v2758_v37  ;;  %v2764_v31 = vmul.f32 -1.442695, %v5416_v33 }
 0x1e3   : > { %v3685_v12 = vpop.eup %3684  ;;  %2389 = vst [vmem:[%s4192_s17 + $0x658] sm:$0xff] %v2133_v47  ;;  %v2135_v5 = vmul.f32 %v3683_v3, %v5290_v24  ;;  %3710 = vpow2.f32 %v2759_v54  ;;  %v5430_v3 = vld [vmem:[%s4093_s30 + $0x720] sm:$0xff] }
 0x1e4   : > { %v3687_v56 = vpop.eup %3686  ;;  %2390 = vst [vmem:[%s4192_s17 + $0x660] sm:$0xff] %v2134_v41  ;;  %v2136_v10 = vmul.f32 %v3685_v12, %v5296_v30  ;;  %3712 = vpow2.f32 %v2760_v17  ;;  %v5426_v17 = vld [vmem:[%s4093_s30 + $0x718] sm:$0xff]  ;;  %v2766_v12 = vmul.f32 -1.442695, %v5422_v45 }
 0x1e5   : > { %v3689_v50 = vpop.eup %3688  ;;  %2391 = vst [vmem:[%s4192_s17 + $0x668] sm:$0xff] %v2135_v5  ;;  %v2137_v22 = vmul.f32 %v3687_v56, %v5302_v9  ;;  %3714 = vpow2.f32 %v2761_v61  ;;  %v2765_v61 = vmul.f32 -1.442695, %v5419_v28  ;;  %v5435_v5 = vld [vmem:[%s4093_s30 + $0x728] sm:$0xff] }
 0x1e6   : > { %v3691_v21 = vpop.eup %3690  ;;  %2392 = vst [vmem:[%s4192_s17 + $0x670] sm:$0xff] %v2136_v10  ;;  %v1370_v60 = vadd.f32 1.0, %v3689_v50  ;;  %3716 = vpow2.f32 %v2762_v18  ;;  %v2767_v10 = vmul.f32 -1.442695, %v5426_v17  ;;  %v5440_v50 = vld [vmem:[%s4093_s30 + $0x730] sm:$0xff] }
 0x1e7   : > { %v3693_v27 = vpop.eup %3692  ;;  %2393 = vst [vmem:[%s4192_s17 + $0x678] sm:$0xff] %v2137_v22  ;;  %v1371_v24 = vadd.f32 1.0, %v3691_v21  ;;  %3718 = vpow2.f32 %v2763_v20  ;;  %v2768_v21 = vmul.f32 -1.442695, %v5430_v3 }
 0x1e8   : > { %v3695_v4 = vpop.eup %3694  ;;  %3720 = vrcp.f32 %v1370_v60  ;;  %v1372_v25 = vadd.f32 1.0, %v3693_v27  ;;  %v5446_v60 = vld [vmem:[%s4093_s30 + $0x738] sm:$0xff] }
 0x1e9   : > { %v3697_v32 = vpop.eup %3696  ;;  %3722 = vrcp.f32 %v1371_v24  ;;  %v1373_v30 = vadd.f32 1.0, %v3695_v4  ;;  %v2769_v24 = vmul.f32 -1.442695, %v5435_v5  ;;  %v5452_v4 = vld [vmem:[%s4093_s30 + $0x740] sm:$0xff] }
 0x1ea   : > { %v3699_v63 = vpop.eup %3698  ;;  %3724 = vrcp.f32 %v1372_v25  ;;  %v1374_v1 = vadd.f32 1.0, %v3697_v32  ;;  %v2770_v32 = vmul.f32 -1.442695, %v5440_v50 }
 0x1eb   : > { %v3701_v34 = vpop.eup %3700  ;;  %3726 = vrcp.f32 %v1373_v30  ;;  %v1375_v9 = vadd.f32 1.0, %v3699_v63  ;;  %v5458_v30 = vld [vmem:[%s4093_s30 + $0x748] sm:$0xff] }
 0x1ec   : > { %v3703_v53 = vpop.eup %3702  ;;  %3728 = vrcp.f32 %v1374_v1  ;;  %v1376_v36 = vadd.f32 1.0, %v3701_v34  ;;  %v2771_v1 = vmul.f32 -1.442695, %v5446_v60  ;;  %v5464_v34 = vld [vmem:[%s4093_s30 + $0x750] sm:$0xff] }
 0x1ed   : > { %v3705_v8 = vpop.eup %3704  ;;  %3730 = vrcp.f32 %v1375_v9  ;;  %v1377_v26 = vadd.f32 1.0, %v3703_v53  ;;  %v2772_v53 = vmul.f32 -1.442695, %v5452_v4 }
 0x1ee   : > { %v3707_v39 = vpop.eup %3706  ;;  %3732 = vrcp.f32 %v1376_v36  ;;  %v1378_v2 = vadd.f32 1.0, %v3705_v8  ;;  %v5470_v36 = vld [vmem:[%s4093_s30 + $0x758] sm:$0xff] }
 0x1ef   : > { %v3709_v29 = vpop.eup %3708  ;;  %3734 = vrcp.f32 %v1377_v26  ;;  %v1379_v42 = vadd.f32 1.0, %v3707_v39  ;;  %v2773_v26 = vmul.f32 -1.442695, %v5458_v30  ;;  %v5476_v39 = vld [vmem:[%s4093_s30 + $0x760] sm:$0xff] }
 0x1f0   : > { %v3711_v6 = vpop.eup %3710  ;;  %3736 = vrcp.f32 %v1378_v2  ;;  %v1380_v7 = vadd.f32 1.0, %v3709_v29  ;;  %v2774_v29 = vmul.f32 -1.442695, %v5464_v34 }
 0x1f1   : > { %v3713_v62 = vpop.eup %3712  ;;  %3738 = vrcp.f32 %v1379_v42  ;;  %v1381_v57 = vadd.f32 1.0, %v3711_v6  ;;  %v5482_v42 = vld [vmem:[%s4093_s30 + $0x768] sm:$0xff] }
 0x1f2   : > { %v3715_v40 = vpop.eup %3714  ;;  %3740 = vrcp.f32 %v1380_v7  ;;  %v1382_v48 = vadd.f32 1.0, %v3713_v62  ;;  %v2775_v7 = vmul.f32 -1.442695, %v5470_v36  ;;  %v5488_v62 = vld [vmem:[%s4093_s30 + $0x770] sm:$0xff] }
 0x1f3   : > { %v3717_v37 = vpop.eup %3716  ;;  %3742 = vrcp.f32 %v1381_v57  ;;  %v1383_v51 = vadd.f32 1.0, %v3715_v40  ;;  %v2776_v40 = vmul.f32 -1.442695, %v5476_v39 }
 0x1f4   : > { %v3719_v54 = vpop.eup %3718  ;;  %3744 = vrcp.f32 %v1382_v48  ;;  %v1384_v0 = vadd.f32 1.0, %v3717_v37  ;;  %v5494_v48 = vld [vmem:[%s4093_s30 + $0x778] sm:$0xff] }
 0x1f5   : > { %v3721_v14 = vpop.eup %3720  ;;  %3746 = vrcp.f32 %v1383_v51  ;;  %v1385_v47 = vadd.f32 1.0, %v3719_v54  ;;  %v2777_v51 = vmul.f32 -1.442695, %v5482_v42 }
 0x1f6   : > { %v3723_v41 = vpop.eup %3722  ;;  %v2138_v18 = vmul.f32 %v3721_v14, %v5320_v13  ;;  %3748 = vrcp.f32 %v1384_v0 }
 0x1f7   : > { %v3725_v20 = vpop.eup %3724  ;;  %v2139_v56 = vmul.f32 %v3723_v41, %v5323_v44  ;;  %3750 = vrcp.f32 %v1385_v47 }
 0x1f8   : > { %v3727_v22 = vpop.eup %3726  ;;  %2394 = vst [vmem:[%s4192_s17 + $0x680] sm:$0xff] %v2138_v18  ;;  %v2140_v13 = vmul.f32 %v3725_v20, %v5326_v55  ;;  %3752 = vpow2.f32 %v2764_v31 }
 0x1f9   : > { %v3729_v27 = vpop.eup %3728  ;;  %2395 = vst [vmem:[%s4192_s17 + $0x688] sm:$0xff] %v2139_v56  ;;  %v2141_v44 = vmul.f32 %v3727_v22, %v5330_v11  ;;  %3754 = vpow2.f32 %v2765_v61 }
 0x1fa   : > { %v3731_v25 = vpop.eup %3730  ;;  %2396 = vst [vmem:[%s4192_s17 + $0x690] sm:$0xff] %v2140_v13  ;;  %v2142_v55 = vmul.f32 %v3729_v27, %v5334_v16  ;;  %3756 = vpow2.f32 %v2766_v12 }
 0x1fb   : > { %v3733_v63 = vpop.eup %3732  ;;  %2397 = vst [vmem:[%s4192_s17 + $0x698] sm:$0xff] %v2141_v44  ;;  %v2143_v11 = vmul.f32 %v3731_v25, %v5339_v23  ;;  %3758 = vpow2.f32 %v2767_v10 }
 0x1fc   : > { %v3735_v9 = vpop.eup %3734  ;;  %2398 = vst [vmem:[%s4192_s17 + $0x6a0] sm:$0xff] %v2142_v55  ;;  %v2144_v16 = vmul.f32 %v3733_v63, %v5344_v59  ;;  %3760 = vpow2.f32 %v2768_v21 }
 0x1fd   : > { %v3737_v8 = vpop.eup %3736  ;;  %2399 = vst [vmem:[%s4192_s17 + $0x6a8] sm:$0xff] %v2143_v11  ;;  %v2145_v23 = vmul.f32 %v3735_v9, %v5350_v35  ;;  %3762 = vpow2.f32 %v2769_v24 }
 0x1fe   : > { %v3739_v2 = vpop.eup %3738  ;;  %2400 = vst [vmem:[%s4192_s17 + $0x6b0] sm:$0xff] %v2144_v16  ;;  %v2146_v59 = vmul.f32 %v3737_v8, %v5356_v19  ;;  %3764 = vpow2.f32 %v2770_v32 }
 0x1ff   : > { %v3741_v6 = vpop.eup %3740  ;;  %2401 = vst [vmem:[%s4192_s17 + $0x6b8] sm:$0xff] %v2145_v23  ;;  %v2147_v35 = vmul.f32 %v3739_v2, %v5362_v38  ;;  %3766 = vpow2.f32 %v2771_v1  ;;  %v5512_v23 = vld [vmem:[%s4093_s30 + $0x780] sm:$0xff] }
 0x200   : > { %v3743_v57 = vpop.eup %3742  ;;  %2402 = vst [vmem:[%s4192_s17 + $0x6c0] sm:$0xff] %v2146_v59  ;;  %v2148_v19 = vmul.f32 %v3741_v6, %v5368_v43  ;;  %3768 = vpow2.f32 %v2772_v53  ;;  %v2778_v43 = vmul.f32 -1.442695, %v5488_v62  ;;  %v5515_v59 = vld [vmem:[%s4093_s30 + $0x788] sm:$0xff] }
 0x201   : > { %v3745_v37 = vpop.eup %3744  ;;  %2403 = vst [vmem:[%s4192_s17 + $0x6c8] sm:$0xff] %v2147_v35  ;;  %v2149_v38 = vmul.f32 %v3743_v57, %v5374_v46  ;;  %3770 = vpow2.f32 %v2773_v26  ;;  %v2779_v46 = vmul.f32 -1.442695, %v5494_v48  ;;  %v5518_v35 = vld [vmem:[%s4093_s30 + $0x790] sm:$0xff] }
 0x202   : > { %v3747_v54 = vpop.eup %3746  ;;  %2404 = vst [vmem:[%s4192_s17 + $0x6d0] sm:$0xff] %v2148_v19  ;;  %v2150_v0 = vmul.f32 %v3745_v37, %v5380_v49  ;;  %3772 = vpow2.f32 %v2774_v29  ;;  %v2780_v19 = vmul.f32 -1.442695, %v5512_v23 }
 0x203   : > { %v3749_v31 = vpop.eup %3748  ;;  %2405 = vst [vmem:[%s4192_s17 + $0x6d8] sm:$0xff] %v2149_v38  ;;  %v2151_v14 = vmul.f32 %v3747_v54, %v5386_v52  ;;  %3774 = vpow2.f32 %v2775_v7  ;;  %v5526_v54 = vld [vmem:[%s4093_s30 + $0x7a0] sm:$0xff] }
 0x204   : > { %v3751_v47 = vpop.eup %3750  ;;  %2406 = vst [vmem:[%s4192_s17 + $0x6e0] sm:$0xff] %v2150_v0  ;;  %v2152_v61 = vmul.f32 %v3749_v31, %v5392_v15  ;;  %3776 = vpow2.f32 %v2776_v40  ;;  %v5522_v40 = vld [vmem:[%s4093_s30 + $0x798] sm:$0xff]  ;;  %v2782_v31 = vmul.f32 -1.442695, %v5518_v35 }
 0x205   : > { %v3753_v41 = vpop.eup %3752  ;;  %2407 = vst [vmem:[%s4192_s17 + $0x6e8] sm:$0xff] %v2151_v14  ;;  %v2153_v49 = vmul.f32 %v3751_v47, %v5398_v58  ;;  %3778 = vpow2.f32 %v2777_v51  ;;  %v2781_v51 = vmul.f32 -1.442695, %v5515_v59  ;;  %v5531_v14 = vld [vmem:[%s4093_s30 + $0x7a8] sm:$0xff] }
 0x206   : > { %v3755_v18 = vpop.eup %3754  ;;  %2408 = vst [vmem:[%s4192_s17 + $0x6f0] sm:$0xff] %v2152_v61  ;;  %v1386_v12 = vadd.f32 1.0, %v3753_v41  ;;  %3780 = vpow2.f32 %v2778_v43  ;;  %v2783_v61 = vmul.f32 -1.442695, %v5522_v40  ;;  %v5536_v41 = vld [vmem:[%s4093_s30 + $0x7b0] sm:$0xff] }
 0x207   : > { %v3757_v20 = vpop.eup %3756  ;;  %2409 = vst [vmem:[%s4192_s17 + $0x6f8] sm:$0xff] %v2153_v49  ;;  %v1387_v52 = vadd.f32 1.0, %v3755_v18  ;;  %3782 = vpow2.f32 %v2779_v46  ;;  %v2784_v18 = vmul.f32 -1.442695, %v5526_v54 }
 0x208   : > { %v3759_v56 = vpop.eup %3758  ;;  %3784 = vrcp.f32 %v1386_v12  ;;  %v1388_v10 = vadd.f32 1.0, %v3757_v20  ;;  %v5542_v12 = vld [vmem:[%s4093_s30 + $0x7b8] sm:$0xff] }
 0x209   : > { %v3761_v22 = vpop.eup %3760  ;;  %3786 = vrcp.f32 %v1387_v52  ;;  %v1389_v15 = vadd.f32 1.0, %v3759_v56  ;;  %v2785_v52 = vmul.f32 -1.442695, %v5531_v14  ;;  %v5548_v56 = vld [vmem:[%s4093_s30 + $0x7c0] sm:$0xff] }
 0x20a   : > { %v3763_v13 = vpop.eup %3762  ;;  %3788 = vrcp.f32 %v1388_v10  ;;  %v1390_v21 = vadd.f32 1.0, %v3761_v22  ;;  %v2786_v22 = vmul.f32 -1.442695, %v5536_v41 }
 0x20b   : > { %v3765_v27 = vpop.eup %3764  ;;  %3790 = vrcp.f32 %v1389_v15  ;;  %v1391_v58 = vadd.f32 1.0, %v3763_v13  ;;  %v5554_v15 = vld [vmem:[%s4093_s30 + $0x7c8] sm:$0xff] }
 0x20c   : > { %v3767_v44 = vpop.eup %3766  ;;  %3792 = vrcp.f32 %v1390_v21  ;;  %v1392_v24 = vadd.f32 1.0, %v3765_v27  ;;  %v2787_v21 = vmul.f32 -1.442695, %v5542_v12  ;;  %v5560_v27 = vld [vmem:[%s4093_s30 + $0x7d0] sm:$0xff] }
 0x20d   : > { %v3769_v25 = vpop.eup %3768  ;;  %3794 = vrcp.f32 %v1391_v58  ;;  %v1393_v55 = vadd.f32 1.0, %v3767_v44  ;;  %v2788_v44 = vmul.f32 -1.442695, %v5548_v56 }
 0x20e   : > { %v3771_v32 = vpop.eup %3770  ;;  %3796 = vrcp.f32 %v1392_v24  ;;  %v1394_v63 = vadd.f32 1.0, %v3769_v25  ;;  %v5566_v24 = vld [vmem:[%s4093_s30 + $0x7d8] sm:$0xff] }
 0x20f   : > { %v3773_v11 = vpop.eup %3772  ;;  %3798 = vrcp.f32 %v1393_v55  ;;  %v1395_v1 = vadd.f32 1.0, %v3771_v32  ;;  %v2789_v55 = vmul.f32 -1.442695, %v5554_v15  ;;  %v5572_v32 = vld [vmem:[%s4093_s30 + $0x7e0] sm:$0xff] }
 0x210   : > { %v3775_v9 = vpop.eup %3774  ;;  %3800 = vrcp.f32 %v1394_v63  ;;  %v1396_v16 = vadd.f32 1.0, %v3773_v11  ;;  %v2790_v11 = vmul.f32 -1.442695, %v5560_v27 }
 0x211   : > { %v3777_v53 = vpop.eup %3776  ;;  %3802 = vrcp.f32 %v1395_v1  ;;  %v1397_v8 = vadd.f32 1.0, %v3775_v9  ;;  %v5578_v1 = vld [vmem:[%s4093_s30 + $0x7e8] sm:$0xff] }
 0x212   : > { %v3779_v26 = vpop.eup %3778  ;;  %3804 = vrcp.f32 %v1396_v16  ;;  %v1398_v2 = vadd.f32 1.0, %v3777_v53  ;;  %v2791_v16 = vmul.f32 -1.442695, %v5566_v24  ;;  %v5584_v53 = vld [vmem:[%s4093_s30 + $0x7f0] sm:$0xff] }
 0x213   : > { %v3781_v29 = vpop.eup %3780  ;;  %3806 = vrcp.f32 %v1397_v8  ;;  %v1399_v6 = vadd.f32 1.0, %v3779_v26  ;;  %v2792_v26 = vmul.f32 -1.442695, %v5572_v32 }
 0x214   : > { %v3783_v7 = vpop.eup %3782  ;;  %3808 = vrcp.f32 %v1398_v2  ;;  %v1400_v57 = vadd.f32 1.0, %v3781_v29  ;;  %v5590_v2 = vld [vmem:[%s4093_s30 + $0x7f8] sm:$0xff] }
 0x215   : > { %v3785_v37 = vpop.eup %3784  ;;  %3810 = vrcp.f32 %v1399_v6  ;;  %v1401_v38 = vadd.f32 1.0, %v3783_v7  ;;  %v2793_v6 = vmul.f32 -1.442695, %v5578_v1 }
 0x216   : > { %v3787_v0 = vpop.eup %3786  ;;  %v2154_v43 = vmul.f32 %v3785_v37, %v5416_v33  ;;  %3812 = vrcp.f32 %v1400_v57 }
 0x217   : > { %v3789_v46 = vpop.eup %3788  ;;  %v2155_v47 = vmul.f32 %v3787_v0, %v5419_v28  ;;  %3814 = vrcp.f32 %v1401_v38 }
 0x218   : > { %v3791_v49 = vpop.eup %3790  ;;  %2410 = vst [vmem:[%s4192_s17 + $0x700] sm:$0xff] %v2154_v43  ;;  %v2156_v33 = vmul.f32 %v3789_v46, %v5422_v45  ;;  %3816 = vpow2.f32 %v2780_v19 }
 0x219   : > { %v3793_v20 = vpop.eup %3792  ;;  %2411 = vst [vmem:[%s4192_s17 + $0x708] sm:$0xff] %v2155_v47  ;;  %v2157_v28 = vmul.f32 %v3791_v49, %v5426_v17  ;;  %3818 = vpow2.f32 %v2781_v51 }
 0x21a   : > { %v3795_v10 = vpop.eup %3794  ;;  %2412 = vst [vmem:[%s4192_s17 + $0x710] sm:$0xff] %v2156_v33  ;;  %v2158_v45 = vmul.f32 %v3793_v20, %v5430_v3  ;;  %3820 = vpow2.f32 %v2782_v31 }
 0x21b   : > { %v3797_v13 = vpop.eup %3796  ;;  %2413 = vst [vmem:[%s4192_s17 + $0x718] sm:$0xff] %v2157_v28  ;;  %v2159_v17 = vmul.f32 %v3795_v10, %v5435_v5  ;;  %3822 = vpow2.f32 %v2783_v61 }
 0x21c   : > { %v3799_v58 = vpop.eup %3798  ;;  %2414 = vst [vmem:[%s4192_s17 + $0x720] sm:$0xff] %v2158_v45  ;;  %v2160_v3 = vmul.f32 %v3797_v13, %v5440_v50  ;;  %3824 = vpow2.f32 %v2784_v18 }
 0x21d   : > { %v3801_v25 = vpop.eup %3800  ;;  %2415 = vst [vmem:[%s4192_s17 + $0x728] sm:$0xff] %v2159_v17  ;;  %v2161_v5 = vmul.f32 %v3799_v58, %v5446_v60  ;;  %3826 = vpow2.f32 %v2785_v52 }
 0x21e   : > { %v3803_v63 = vpop.eup %3802  ;;  %2416 = vst [vmem:[%s4192_s17 + $0x730] sm:$0xff] %v2160_v3  ;;  %v2162_v50 = vmul.f32 %v3801_v25, %v5452_v4  ;;  %3828 = vpow2.f32 %v2786_v22 }
 0x21f   : > { %v3805_v9 = vpop.eup %3804  ;;  %2417 = vst [vmem:[%s4192_s17 + $0x738] sm:$0xff] %v2161_v5  ;;  %v2163_v60 = vmul.f32 %v3803_v63, %v5458_v30  ;;  %3830 = vpow2.f32 %v2787_v21 }
 0x220   : > { %v3807_v8 = vpop.eup %3806  ;;  %2418 = vst [vmem:[%s4192_s17 + $0x740] sm:$0xff] %v2162_v50  ;;  %v2164_v4 = vmul.f32 %v3805_v9, %v5464_v34  ;;  %3832 = vpow2.f32 %v2788_v44  ;;  %v2794_v34 = vmul.f32 -1.442695, %v5584_v53 }
 0x221   : > { %v3809_v29 = vpop.eup %3808  ;;  %2419 = vst [vmem:[%s4192_s17 + $0x748] sm:$0xff] %v2163_v60  ;;  %v2165_v30 = vmul.f32 %v3807_v8, %v5470_v36  ;;  %3834 = vpow2.f32 %v2789_v55  ;;  %v2795_v36 = vmul.f32 -1.442695, %v5590_v2 }
 0x222   : > { %v3811_v7 = vpop.eup %3810  ;;  %2420 = vst [vmem:[%s4192_s17 + $0x750] sm:$0xff] %v2164_v4  ;;  %v2166_v57 = vmul.f32 %v3809_v29, %v5476_v39  ;;  %3836 = vpow2.f32 %v2790_v11 }
 0x223   : > { %v3813_v19 = vpop.eup %3812  ;;  %2421 = vst [vmem:[%s4192_s17 + $0x758] sm:$0xff] %v2165_v30  ;;  %v2167_v37 = vmul.f32 %v3811_v7, %v5482_v42  ;;  %3838 = vpow2.f32 %v2791_v16 }
 0x224   : > { %v3815_v38 = vpop.eup %3814  ;;  %2422 = vst [vmem:[%s4192_s17 + $0x760] sm:$0xff] %v2166_v57  ;;  %v2168_v51 = vmul.f32 %v3813_v19, %v5488_v62  ;;  %3840 = vpow2.f32 %v2792_v26 }
 0x225   : > { %v3817_v0 = vpop.eup %3816  ;;  %2423 = vst [vmem:[%s4192_s17 + $0x768] sm:$0xff] %v2167_v37  ;;  %v2169_v39 = vmul.f32 %v3815_v38, %v5494_v48  ;;  %3842 = vpow2.f32 %v2793_v6 }
 0x226   : > { %v3819_v43 = vpop.eup %3818  ;;  %2424 = vst [vmem:[%s4192_s17 + $0x770] sm:$0xff] %v2168_v51  ;;  %v1402_v31 = vadd.f32 1.0, %v3817_v0  ;;  %3844 = vpow2.f32 %v2794_v34 }
 0x227   : > { %v3821_v46 = vpop.eup %3820  ;;  %2425 = vst [vmem:[%s4192_s17 + $0x778] sm:$0xff] %v2169_v39  ;;  %v1403_v42 = vadd.f32 1.0, %v3819_v43  ;;  %3846 = vpow2.f32 %v2795_v36 }
 0x228   : > { %v3823_v47 = vpop.eup %3822  ;;  %3848 = vrcp.f32 %v1402_v31  ;;  %v1404_v61 = vadd.f32 1.0, %v3821_v46 }
 0x229   : > { %v3825_v49 = vpop.eup %3824  ;;  %3850 = vrcp.f32 %v1403_v42  ;;  %v1405_v62 = vadd.f32 1.0, %v3823_v47 }
 0x22a   : > { %v3827_v33 = vpop.eup %3826  ;;  %3852 = vrcp.f32 %v1404_v61  ;;  %v1406_v18 = vadd.f32 1.0, %v3825_v49 }
 0x22b   : > { %v3829_v20 = vpop.eup %3828  ;;  %3854 = vrcp.f32 %v1405_v62  ;;  %v1407_v48 = vadd.f32 1.0, %v3827_v33 }
 0x22c   : > { %v3831_v28 = vpop.eup %3830  ;;  %3856 = vrcp.f32 %v1406_v18  ;;  %v1408_v52 = vadd.f32 1.0, %v3829_v20 }
 0x22d   : > { %v3833_v10 = vpop.eup %3832  ;;  %3858 = vrcp.f32 %v1407_v48  ;;  %v1409_v45 = vadd.f32 1.0, %v3831_v28 }
 0x22e   : > { %v3835_v22 = vpop.eup %3834  ;;  %3860 = vrcp.f32 %v1408_v52  ;;  %v1410_v13 = vadd.f32 1.0, %v3833_v10 }
 0x22f   : > { %v3837_v17 = vpop.eup %3836  ;;  %3862 = vrcp.f32 %v1409_v45  ;;  %v1411_v21 = vadd.f32 1.0, %v3835_v22 }
 0x230   : > { %v3839_v58 = vpop.eup %3838  ;;  %3864 = vrcp.f32 %v1410_v13  ;;  %v1412_v3 = vadd.f32 1.0, %v3837_v17 }
 0x231   : > { %v3841_v44 = vpop.eup %3840  ;;  %3866 = vrcp.f32 %v1411_v21  ;;  %v1413_v25 = vadd.f32 1.0, %v3839_v58 }
 0x232   : > { %v3843_v5 = vpop.eup %3842  ;;  %3868 = vrcp.f32 %v1412_v3  ;;  %v1414_v55 = vadd.f32 1.0, %v3841_v44 }
 0x233   : > { %v3845_v63 = vpop.eup %3844  ;;  %3870 = vrcp.f32 %v1413_v25  ;;  %v1415_v50 = vadd.f32 1.0, %v3843_v5 }
 0x234   : > { %v3847_v11 = vpop.eup %3846  ;;  %3872 = vrcp.f32 %v1414_v55  ;;  %v1416_v9 = vadd.f32 1.0, %v3845_v63 }
 0x235   : > { %v3849_v60 = vpop.eup %3848  ;;  %3874 = vrcp.f32 %v1415_v50  ;;  %v1417_v16 = vadd.f32 1.0, %v3847_v11 }
 0x236   : > { %v3851_v8 = vpop.eup %3850  ;;  %v2170_v4 = vmul.f32 %v3849_v60, %v5512_v23  ;;  %3876 = vrcp.f32 %v1416_v9 }
 0x237   : > { %v3853_v26 = vpop.eup %3852  ;;  %v2171_v29 = vmul.f32 %v3851_v8, %v5515_v59  ;;  %3878 = vrcp.f32 %v1417_v16 }
 0x238   : > { %v3855_v30 = vpop.eup %3854  ;;  %2426 = vst [vmem:[%s4192_s17 + $0x780] sm:$0xff] %v2170_v4  ;;  %v2172_v6 = vmul.f32 %v3853_v26, %v5518_v35 }
 0x239   : > { %v3857_v7 = vpop.eup %3856  ;;  %2427 = vst [vmem:[%s4192_s17 + $0x788] sm:$0xff] %v2171_v29  ;;  %v2173_v57 = vmul.f32 %v3855_v30, %v5522_v40 }
 0x23a   : > { %v3859_v34 = vpop.eup %3858  ;;  %2428 = vst [vmem:[%s4192_s17 + $0x790] sm:$0xff] %v2172_v6  ;;  %v2174_v23 = vmul.f32 %v3857_v7, %v5526_v54 }
 0x23b   : > { %v3861_v19 = vpop.eup %3860  ;;  %2429 = vst [vmem:[%s4192_s17 + $0x798] sm:$0xff] %v2173_v57  ;;  %v2175_v59 = vmul.f32 %v3859_v34, %v5531_v14 }
 0x23c   : > { %v3863_v37 = vpop.eup %3862  ;;  %2430 = vst [vmem:[%s4192_s17 + $0x7a0] sm:$0xff] %v2174_v23  ;;  %v2176_v35 = vmul.f32 %v3861_v19, %v5536_v41 }
 0x23d   : > { %v3865_v36 = vpop.eup %3864  ;;  %2431 = vst [vmem:[%s4192_s17 + $0x7a8] sm:$0xff] %v2175_v59  ;;  %v2177_v40 = vmul.f32 %v3863_v37, %v5542_v12 }
 0x23e   : > { %v3867_v38 = vpop.eup %3866  ;;  %2432 = vst [vmem:[%s4192_s17 + $0x7b0] sm:$0xff] %v2176_v35  ;;  %v2178_v54 = vmul.f32 %v3865_v36, %v5548_v56 }
 0x23f   : > { %v3869_v51 = vpop.eup %3868  ;;  %2433 = vst [vmem:[%s4192_s17 + $0x7b8] sm:$0xff] %v2177_v40  ;;  %v2179_v14 = vmul.f32 %v3867_v38, %v5554_v15 }
 0x240   : > { %v3871_v0 = vpop.eup %3870  ;;  %2434 = vst [vmem:[%s4192_s17 + $0x7c0] sm:$0xff] %v2178_v54  ;;  %v2180_v41 = vmul.f32 %v3869_v51, %v5560_v27 }
 0x241   : > { %v3873_v39 = vpop.eup %3872  ;;  %2435 = vst [vmem:[%s4192_s17 + $0x7c8] sm:$0xff] %v2179_v14  ;;  %v2181_v12 = vmul.f32 %v3871_v0, %v5566_v24 }
 0x242   : > { %v3875_v56 = vpop.eup %3874  ;;  %2436 = vst [vmem:[%s4192_s17 + $0x7d0] sm:$0xff] %v2180_v41  ;;  %v2182_v43 = vmul.f32 %v3873_v39, %v5572_v32 }
 0x243   : > { %v3877_v15 = vpop.eup %3876  ;;  %2437 = vst [vmem:[%s4192_s17 + $0x7d8] sm:$0xff] %v2181_v12  ;;  %v2183_v31 = vmul.f32 %v3875_v56, %v5578_v1 }
 0x244   : > { %v3879_v27 = vpop.eup %3878  ;;  %2438 = vst [vmem:[%s4192_s17 + $0x7e0] sm:$0xff] %v2182_v43  ;;  %v2184_v46 = vmul.f32 %v3877_v15, %v5584_v53 }
 0x245   : > { %2439 = vst [vmem:[%s4192_s17 + $0x7e8] sm:$0xff] %v2183_v31  ;;  %v2185_v24 = vmul.f32 %v3879_v27, %v5590_v2 }
 0x246   : > { %2440 = vst [vmem:[%s4192_s17 + $0x7f0] sm:$0xff] %v2184_v46 }
 0x247   : > { %2441 = vst [vmem:[%s4192_s17 + $0x7f8] sm:$0xff] %v2185_v24 }
 0x248   : > { %3921 = shalt.err (!%p3918_p10)
}
 0x249   : > { %s3922_s13 = scalar_lea.hbm %s5640_s10, 32768  ;;  %s3926_s20 = scalar_lea.hbm %s5690_s1, 65536 }
 0x24a   : > { %p3923_p0 = scmp.ne.s32.totalorder %s5640_s10, %s3922_s13  ;;  %p3927_p1 = scmp.lt.s32.totalorder %s5640_s10, %s5690_s1 }
 0x24b   : > { %p3928_p3 = scmp.lt.s32.totalorder %s3926_s20, %s3922_s13 }
 0x24c   : > { %p3924_p2 = pnand %p3923_p0, %p5699_p12 }
 0x24d   : > { %p3929_p6 = por %p3928_p3, %p3927_p1 }
 0x24e   : > { %p3925_p9 = pneg %p3924_p2 }
 0x250   : > { %p3930_p11 = pnand %p3929_p6, %p3925_p9 }
 0x252   : > { %3933 = shalt.err (!%p3930_p11)
}
 0x253   : > { %s3978_s24 = smov 4096   ;;  %s3979_s26 = smov 256  }
 0x254   : > { %2808 = dma.vmem_to_hbm [thread:$0]  (%p5699_p12), %s5642_s27, 32768, %s5640_s10, %s2443_s2, %s3978_s24, %s3978_s24, %s3979_s26  }
 0x255 PF: > { %s2472_s30 = sand.u32 1, %s3960_s6   ;;  %p5700_p13 = scmp.ne.s32.totalorder %s5696_s19, 0 }
 0x256   : > { %p5701_p4 = scmp.ge.s32.totalorder %s3972_s9, 2  ;;  %s2473_s17 = scalar_lea.sflag [#allocation4], %s2472_s30 }
 0x258   : > { %p2815_p5 = pnand %p5701_p4, %p5700_p13 }
 0x25a   : > { %p2816_p7 = pneg %p2815_p5 }
 0x25c   : > { %3955 = dma.done.wait (%p2816_p7), %s2473_s17, 32768  }
 0x25d   : > { %3957 = vsyncadd (%p2816_p7), %s2473_s17, 4294934528  ;;  %p14_p8 = scmp.ge.s32.totalorder %s4015_s12, 4   ;;  %s5702_s6 = smov %s3964_s7 }
 0x25e   : > { %s5703_s7 = smov %s3968_s8  ;;  %s5704_s8 = smov %s4027_s15 }
 0x25f   : > { %s5705_s9 = smov %s4015_s12  ;;  %16 = sbr.rel (!%p14_p8) target bundleno = 5 (0x5), region = 69 }
 0x264   :  { %2478 = vsyncpa [#allocation3], 1 }
 0x265   :  { %2480 = vsyncpa [#allocation3 + $0x1], 1 }
 0x266   :  { %2481 = vsyncpa [#allocation4], 1 }
 0x267   :  { %2483 = vsyncpa [#allocation4 + $0x1], 1 }

</bundles_post_ra>
